<compile_context>
chip_gen: v7x
topology: tpu7x:2x2x1
jax: 0.10.0
libtpu: 0.0.40
codegen_flags: <defaults>
</compile_context>

<pallas_src>
import jax
import jax.numpy as jnp
from jax.experimental import pallas as pl
from jax.experimental.pallas import tpu as pltpu

HIGH = jax.lax.Precision.HIGHEST


# ---------------------------------- kernel ----------------------------------
def sem_kernel(x_ref, wsq_ref, bcat_ref, wg_ref, bg_ref, wab_ref, bab_ref,
               out_ref, pad_ref):
    N, H, W, C = x_ref.shape            # C = 128 packed lanes = [l | l+h]
    Cout = C // 2
    HW = H * W
    M = N * HW
    bf16 = jnp.bfloat16

    # -- stage the packed input into a zeroed halo-padded scratch (single grid
    #    step -> one whole-buffer zero; the halo is every conv's zero padding).
    pad_ref[...] = jnp.zeros_like(pad_ref)
    pad_ref[:, 2:2 + H, 2:2 + W, :] = x_ref[...].astype(pad_ref.dtype)

    lane = jax.lax.broadcasted_iota(jnp.int32, (M, C), 1)
    low = lane < Cout                                   # lanes of l / l_out

    # -- merged squeeze1 + squeeze2: 9 direct-accumulated MXU taps.
    #    lanes [0:64]   <- dilation-1 window of l      -> cat[:, :64]  (l_sq)
    #    lanes [64:128] <- dilation-2 window of (l+h)  -> cat[:, 64:]  (h_sq)
    acc = jnp.zeros((M, C), jnp.float32)
    for ky in range(3):
        for kx in range(3):
            t = ky * 3 + kx
            s1 = pad_ref[:, 1 + ky:1 + ky + H, 1 + kx:1 + kx + W, :].reshape(M, C)
            s2 = pad_ref[:, 2 * ky:2 * ky + H, 2 * kx:2 * kx + W, :].reshape(M, C)
            slab = jnp.where(low, s1, s2).astype(bf16)
            acc = acc + jnp.dot(slab, wsq_ref[t],
                                preferred_element_type=jnp.float32)
    cat = jnp.maximum(acc + bcat_ref[...], 0.0)         # (M, C) = [l_sq | h_sq]

    # -- gate: per-image GAP -> 1x1 conv -> softmax * C (exact reciprocal)
    cat3 = cat.reshape(N, HW, C)
    g = jnp.sum(cat3, axis=1) * (1.0 / HW)              # (N, C)
    y = jnp.dot(g.astype(bf16), wg_ref[...],
                preferred_element_type=jnp.float32) + bg_ref[...]
    e = jnp.exp(y - jnp.max(y, axis=-1, keepdims=True))
    s = (e / jnp.sum(e, axis=-1, keepdims=True)) * C    # (N, C)

    # -- channel re-weighting written back into the pad interior
    #    (halo is still zero -> acts as convAB's zero padding).
    pad_ref[:, 2:2 + H, 2:2 + W, :] = (cat3 * s[:, None, :]).reshape(N, H, W, C)

    # -- convAB (3x3, pad=1, 2C -> Cout, output lanes padded to C).
    acc_ab = jnp.zeros((M, C), jnp.float32)
    for ky in range(3):
        for kx in range(3):
            t = ky * 3 + kx
            slab = pad_ref[:, 1 + ky:1 + ky + H, 1 + kx:1 + kx + W, :].reshape(
                M, C).astype(bf16)
            acc_ab = acc_ab + jnp.dot(slab, wab_ref[t],
                                      preferred_element_type=jnp.float32)
    l_out = jnp.maximum(acc_ab + bab_ref[...], 0.0)     # lanes [64:] are zero

    # -- lane-masked combine + single unmasked 128-lane store: [l_out | h_sq]
    out_ref[...] = jnp.where(low, l_out, cat).reshape(N, H, W, C).astype(
        out_ref.dtype)


# --------------------------------- wrappers ---------------------------------
def sem_block_nhwc(l, h, params):
    """l: (N,H,W,Cin) f32, h: (N,H,W,Cout) f32. Returns (l_out, h_out) NHWC f32."""
    N, H, W, Cin = l.shape
    Cout = h.shape[-1]
    assert Cin == Cout, "SEMblock's l + h requires inplanes == outplanes"
    C = Cin + Cout                                    # 128 packed lanes
    Wp = ((W + 4 + 15) // 16) * 16                    # sublane-aligned pad width

    # pack [l | l+h] -> lane-dense bf16 input (halves input DMA bytes)
    x = jnp.concatenate([l, l + h], axis=-1).astype(jnp.bfloat16)

    grid_spec = pltpu.PrefetchScalarGridSpec(
        num_scalar_prefetch=0,
        grid=(1,),                                    # batch folded into M
        in_specs=[
            pl.BlockSpec((N, H, W, C), lambda i: (0, 0, 0, 0)),   # packed input
            pl.BlockSpec((9, C, C), lambda i: (0, 0, 0)),         # merged squeeze w
            pl.BlockSpec((1, C), lambda i: (0, 0)),               # b_cat
            pl.BlockSpec((C, C), lambda i: (0, 0)),               # wg (1x1 gate)
            pl.BlockSpec((1, C), lambda i: (0, 0)),               # bg
            pl.BlockSpec((9, C, C), lambda i: (0, 0, 0)),         # wAB (out-padded)
            pl.BlockSpec((1, C), lambda i: (0, 0)),               # bAB (out-padded)
        ],
        out_specs=pl.BlockSpec((N, H, W, C), lambda i: (0, 0, 0, 0)),
        scratch_shapes=[
            pltpu.VMEM((N, H + 4, Wp, C), jnp.float32),  # shared halo-padded tile
        ],
    )
    out = pl.pallas_call(
        sem_kernel,
        out_shape=jax.ShapeDtypeStruct((N, H, W, C), jnp.float32),
        grid_spec=grid_spec,
        compiler_params=pltpu.CompilerParams(dimension_semantics=("arbitrary",)),
    )(x, params["wsq"], params["bcat"], params["wg"], params["bg"],
      params["wab"], params["bab"])

    return out[..., :Cout], out[..., Cout:]           # (l_out, h_out)


def sem_block_nchw(l_nchw, h_nchw, params):
    """PyTorch-facing wrapper: NCHW in, NCHW out (matches SEMblock.forward)."""
    l = jnp.transpose(l_nchw, (0, 2, 3, 1))
    h = jnp.transpose(h_nchw, (0, 2, 3, 1))
    l_out, h_out = sem_block_nhwc(l, h, params)
    return jnp.transpose(l_out, (0, 3, 1, 2)), jnp.transpose(h_out, (0, 3, 1, 2))


# ------------------------- parameter construction (glue) -------------------------
def make_params(key, cin, cout):
    eps = 1e-5
    c2 = 2 * cout
    assert cin == cout
    k1, k2, k3, k4 = jax.random.split(key, 4)

    def kaiming(k, shape, fan_in):        # kaiming_normal_(mode='fan_in', relu)
        return jax.random.normal(k, shape, jnp.float32) * jnp.sqrt(2.0 / fan_in)

    # HWIO conv weights (PyTorch OIHW transposed to HWIO)
    w1 = kaiming(k1, (3, 3, cin, cout), cin * 9)      # squeeze1 (dil=2, on l+h)
    w2 = kaiming(k2, (3, 3, cin, cout), cin * 9)      # squeeze2 (dil=1, on l)
    wg = kaiming(k3, (c2, c2), c2)                    # 1x1 gate conv as (in,out)
    wab = kaiming(k4, (3, 3, c2, cout), c2 * 9)       # convAB

    # fold inference BN (gamma=1, beta=0, mean=0, var=1) into the conv weights
    bn_scale = 1.0 / jnp.sqrt(1.0 + eps)
    w1f, w2f, wabf = w1 * bn_scale, w2 * bn_scale, wab * bn_scale

    # round once to bf16: the MXU consumes exactly these operand values
    w1b, w2b = w1f.astype(jnp.bfloat16), w2f.astype(jnp.bfloat16)
    wgb, wabb = wg.astype(jnp.bfloat16), wabf.astype(jnp.bfloat16)

    # merged squeeze weight: per tap t, block-diagonal
    #   rows [0:cin]   (l lanes,   dil-1 window) -> cols [0:cout]   (squeeze2)
    #   rows [cin:2cin] (l+h lanes, dil-2 window) -> cols [cout:2cout] (squeeze1)
    wsq = jnp.zeros((9, c2, c2), jnp.bfloat16)
    wsq = wsq.at[:, :cin, :cout].set(w2b.reshape(9, cin, cout))
    wsq = wsq.at[:, cin:, cout:].set(w1b.reshape(9, cin, cout))

    # convAB weight with output lanes padded to c2 (upper 64 columns zero)
    wabp = jnp.zeros((9, c2, c2), jnp.bfloat16)
    wabp = wabp.at[:, :, :cout].set(wabb.reshape(9, c2, cout))

    kernel_params = {
        "wsq": wsq,
        "bcat": jnp.zeros((1, c2), jnp.float32),
        "wg": wgb,
        "bg": jnp.zeros((1, c2), jnp.float32),
        "wab": wabp,
        "bab": jnp.zeros((1, c2), jnp.float32),
    }
    ref_params = {
        "w1": w1b.astype(jnp.float32), "b1": jnp.zeros((cout,), jnp.float32),
        "w2": w2b.astype(jnp.float32), "b2": jnp.zeros((cout,), jnp.float32),
        "wg": wgb.astype(jnp.float32), "bg": jnp.zeros((c2,), jnp.float32),
        "wab": wabb.astype(jnp.float32), "bab": jnp.zeros((cout,), jnp.float32),
    }
    return kernel_params, ref_params


# ------------------------------- pure-JAX reference -------------------------------
def _conv3x3(x, w, b, dilation):
    y = jax.lax.conv_general_dilated(
        x, w, window_strides=(1, 1),
        padding=((dilation, dilation), (dilation, dilation)),
        rhs_dilation=(dilation, dilation),
        dimension_numbers=("NHWC", "HWIO", "NHWC"),
        precision=HIGH)
    return y + b


def sem_ref_nhwc(l, h, p):
    # mirror the kernel's operand quantization (inputs are packed to bf16 once)
    lh = (l + h).astype(jnp.bfloat16).astype(jnp.float32)
    lq = l.astype(jnp.bfloat16).astype(jnp.float32)
    hs = jax.nn.relu(_conv3x3(lh, p["w1"], p["b1"], 2))
    ls = jax.nn.relu(_conv3x3(lq, p["w2"], p["b2"], 1))
    cat = jnp.concatenate([ls, hs], axis=-1)
    g = jnp.mean(cat, axis=(1, 2), keepdims=True)
    y = jnp.einsum("nhwc,cd->nhwd", g, p["wg"], precision=HIGH) + p["bg"]
    s = jax.nn.softmax(y, axis=-1) * y.shape[-1]
    out = jax.nn.relu(_conv3x3(cat * s, p["wab"], p["bab"], 1))
    return out, hs


# ----------------------------------------- main -----------------------------------------
if __name__ == "__main__":
    # SEMblock hard-codes a 128-channel cat internally, so inplanes = outplanes = 64.
    N, Cin, Cout, H, W = 2, 64, 64, 8, 8
    key = jax.random.PRNGKey(0)
    kp, kl, kh = jax.random.split(key, 3)

    kernel_params, ref_params = make_params(kp, Cin, Cout)

    l_nchw = jax.random.normal(kl, (N, Cin, H, W), jnp.float32)   # PyTorch NCHW input
    h_nchw = jax.random.normal(kh, (N, Cout, H, W), jnp.float32)  # previous-stage h

    l_out, h_out = sem_block_nchw(l_nchw, h_nchw, kernel_params)
    l_out, h_out = jax.block_until_ready(l_out), jax.block_until_ready(h_out)

    # correctness check against a plain-JAX (f32, HIGHEST) reference
    l_ref, h_ref = sem_ref_nhwc(jnp.transpose(l_nchw, (0, 2, 3, 1)),
                                jnp.transpose(h_nchw, (0, 2, 3, 1)), ref_params)
    l_ref = jnp.transpose(l_ref, (0, 3, 1, 2))
    h_ref = jnp.transpose(h_ref, (0, 3, 1, 2))
    assert l_out.shape == (N, Cout, H, W) and h_out.shape == (N, Cout, H, W)
    assert jnp.allclose(h_out, h_ref, atol=3e-2, rtol=3e-2)
    assert jnp.allclose(l_out, l_ref, atol=3e-2, rtol=3e-2)

    print("KERNEL_OK")
</pallas_src>

<mosaic_0001>
module attributes {stable_mosaic.version = 11 : i64} {
  func.func @sem_kernel(%arg0: i32, %arg1: memref<2x8x8x128xbf16, #tpu.memory_space<vmem>>, %arg2: memref<9x128x128xbf16, #tpu.memory_space<vmem>>, %arg3: memref<1x128xf32, #tpu.memory_space<vmem>>, %arg4: memref<128x128xbf16, #tpu.memory_space<vmem>>, %arg5: memref<1x128xf32, #tpu.memory_space<vmem>>, %arg6: memref<9x128x128xbf16, #tpu.memory_space<vmem>>, %arg7: memref<1x128xf32, #tpu.memory_space<vmem>>, %arg8: memref<2x8x8x128xf32, #tpu.memory_space<vmem>>, %arg9: memref<2x12x16x128xf32, #tpu.memory_space<vmem>>) attributes {dimension_semantics = [#tpu.dimension_semantics<arbitrary>], iteration_bounds = array<i64: 1>, scalar_prefetch = 0 : i64, scratch_operands = 1 : i64, tpu.core_type = #tpu.core_type<tc>, window_params = [{pipeline_mode = #tpu.pipeline_mode<synchronous>, transform_indices = @transform_0, window_bounds = array<i64: 2, 8, 8, 128>}, {pipeline_mode = #tpu.pipeline_mode<synchronous>, transform_indices = @transform_1, window_bounds = array<i64: 9, 128, 128>}, {pipeline_mode = #tpu.pipeline_mode<synchronous>, transform_indices = @transform_2, window_bounds = array<i64: 1, 128>}, {pipeline_mode = #tpu.pipeline_mode<synchronous>, transform_indices = @transform_3, window_bounds = array<i64: 128, 128>}, {pipeline_mode = #tpu.pipeline_mode<synchronous>, transform_indices = @transform_4, window_bounds = array<i64: 1, 128>}, {pipeline_mode = #tpu.pipeline_mode<synchronous>, transform_indices = @transform_5, window_bounds = array<i64: 9, 128, 128>}, {pipeline_mode = #tpu.pipeline_mode<synchronous>, transform_indices = @transform_6, window_bounds = array<i64: 1, 128>}, {pipeline_mode = #tpu.pipeline_mode<synchronous>, transform_indices = @transform_7, window_bounds = array<i64: 2, 8, 8, 128>}]} {
    %cst = arith.constant 0.000000e+00 : f32
    %0 = vector.broadcast %cst : f32 to vector<2x12x16x128xf32>
    %c0 = arith.constant 0 : index
    %c0_0 = arith.constant 0 : index
    %c0_1 = arith.constant 0 : index
    %c0_2 = arith.constant 0 : index
    %1 = vector.load %arg9[%c0, %c0_0, %c0_1, %c0_2] : memref<2x12x16x128xf32, #tpu.memory_space<vmem>>, vector<2x12x16x128xf32>
    tpu.vector_store %arg9[%c0, %c0_0, %c0_1, %c0_2], %0 {strides = array<i32>} : memref<2x12x16x128xf32, #tpu.memory_space<vmem>>, vector<2x12x16x128xf32>,
    %c0_3 = arith.constant 0 : index
    %c0_4 = arith.constant 0 : index
    %c0_5 = arith.constant 0 : index
    %c0_6 = arith.constant 0 : index
    %2 = vector.load %arg1[%c0_3, %c0_4, %c0_5, %c0_6] : memref<2x8x8x128xbf16, #tpu.memory_space<vmem>>, vector<2x8x8x128xbf16>
    %3 = arith.extf %2 : vector<2x8x8x128xbf16> to vector<2x8x8x128xf32>
    %c0_7 = arith.constant 0 : index
    %c2 = arith.constant 2 : index
    %c2_8 = arith.constant 2 : index
    %c0_9 = arith.constant 0 : index
    %4 = vector.load %arg9[%c0_7, %c2, %c2_8, %c0_9] : memref<2x12x16x128xf32, #tpu.memory_space<vmem>>, vector<2x8x8x128xf32>
    tpu.vector_store %arg9[%c0_7, %c2, %c2_8, %c0_9], %3 {strides = array<i32>} : memref<2x12x16x128xf32, #tpu.memory_space<vmem>>, vector<2x8x8x128xf32>,
    %5 = tpu.iota {dimensions = array<i32: 1>} : vector<128x128xi32>
    %c64_i32 = arith.constant 64 : i32
    %6 = vector.broadcast %c64_i32 : i32 to vector<128x128xi32>
    %7 = arith.cmpi slt, %5, %6 : vector<128x128xi32>
    %cst_10 = arith.constant 0.000000e+00 : f32
    %8 = vector.broadcast %cst_10 : f32 to vector<128x128xf32>
    %c0_11 = arith.constant 0 : index
    %c1 = arith.constant 1 : index
    %c1_12 = arith.constant 1 : index
    %c0_13 = arith.constant 0 : index
    %9 = vector.load %arg9[%c0_11, %c1, %c1_12, %c0_13] : memref<2x12x16x128xf32, #tpu.memory_space<vmem>>, vector<2x8x8x128xf32>
    %10 = vector.shape_cast %9 : vector<2x8x8x128xf32> to vector<128x128xf32>
    %c0_14 = arith.constant 0 : index
    %c0_15 = arith.constant 0 : index
    %c0_16 = arith.constant 0 : index
    %c0_17 = arith.constant 0 : index
    %11 = vector.load %arg9[%c0_14, %c0_15, %c0_16, %c0_17] : memref<2x12x16x128xf32, #tpu.memory_space<vmem>>, vector<2x8x8x128xf32>
    %12 = vector.shape_cast %11 : vector<2x8x8x128xf32> to vector<128x128xf32>
    %13 = arith.select %7, %10, %12 : vector<128x128xi1>, vector<128x128xf32>
    %14 = arith.truncf %13 : vector<128x128xf32> to vector<128x128xbf16>
    %c0_18 = arith.constant 0 : index
    %c0_19 = arith.constant 0 : index
    %c0_20 = arith.constant 0 : index
    %15 = vector.load %arg2[%c0_18, %c0_19, %c0_20] : memref<9x128x128xbf16, #tpu.memory_space<vmem>>, vector<1x128x128xbf16>
    %16 = vector.shape_cast %15 : vector<1x128x128xbf16> to vector<128x128xbf16>
    %cst_21 = arith.constant dense<0.000000e+00> : vector<128x128xf32>
    %17 = tpu.matmul %14, %16, %cst_21 {dimension_numbers = #tpu.dot_dimension_numbers<[1], [0], [0], [1], [0, 0, 1, 1], [], []>} : vector<128x128xbf16>, vector<128x128xbf16>, vector<128x128xf32> -> vector<128x128xf32>
    %18 = arith.addf %8, %17 : vector<128x128xf32>
    %c0_22 = arith.constant 0 : index
    %c1_23 = arith.constant 1 : index
    %c2_24 = arith.constant 2 : index
    %c0_25 = arith.constant 0 : index
    %19 = vector.load %arg9[%c0_22, %c1_23, %c2_24, %c0_25] : memref<2x12x16x128xf32, #tpu.memory_space<vmem>>, vector<2x8x8x128xf32>
    %20 = vector.shape_cast %19 : vector<2x8x8x128xf32> to vector<128x128xf32>
    %c0_26 = arith.constant 0 : index
    %c0_27 = arith.constant 0 : index
    %c2_28 = arith.constant 2 : index
    %c0_29 = arith.constant 0 : index
    %21 = vector.load %arg9[%c0_26, %c0_27, %c2_28, %c0_29] : memref<2x12x16x128xf32, #tpu.memory_space<vmem>>, vector<2x8x8x128xf32>
    %22 = vector.shape_cast %21 : vector<2x8x8x128xf32> to vector<128x128xf32>
    %23 = arith.select %7, %20, %22 : vector<128x128xi1>, vector<128x128xf32>
    %24 = arith.truncf %23 : vector<128x128xf32> to vector<128x128xbf16>
    %c1_30 = arith.constant 1 : index
    %c0_31 = arith.constant 0 : index
    %c0_32 = arith.constant 0 : index
    %25 = vector.load %arg2[%c1_30, %c0_31, %c0_32] : memref<9x128x128xbf16, #tpu.memory_space<vmem>>, vector<1x128x128xbf16>
    %26 = vector.shape_cast %25 : vector<1x128x128xbf16> to vector<128x128xbf16>
    %cst_33 = arith.constant dense<0.000000e+00> : vector<128x128xf32>
    %27 = tpu.matmul %24, %26, %cst_33 {dimension_numbers = #tpu.dot_dimension_numbers<[1], [0], [0], [1], [0, 0, 1, 1], [], []>} : vector<128x128xbf16>, vector<128x128xbf16>, vector<128x128xf32> -> vector<128x128xf32>
    %28 = arith.addf %18, %27 : vector<128x128xf32>
    %c0_34 = arith.constant 0 : index
    %c1_35 = arith.constant 1 : index
    %c3 = arith.constant 3 : index
    %c0_36 = arith.constant 0 : index
    %29 = vector.load %arg9[%c0_34, %c1_35, %c3, %c0_36] : memref<2x12x16x128xf32, #tpu.memory_space<vmem>>, vector<2x8x8x128xf32>
    %30 = vector.shape_cast %29 : vector<2x8x8x128xf32> to vector<128x128xf32>
    %c0_37 = arith.constant 0 : index
    %c0_38 = arith.constant 0 : index
    %c4 = arith.constant 4 : index
    %c0_39 = arith.constant 0 : index
    %31 = vector.load %arg9[%c0_37, %c0_38, %c4, %c0_39] : memref<2x12x16x128xf32, #tpu.memory_space<vmem>>, vector<2x8x8x128xf32>
    %32 = vector.shape_cast %31 : vector<2x8x8x128xf32> to vector<128x128xf32>
    %33 = arith.select %7, %30, %32 : vector<128x128xi1>, vector<128x128xf32>
    %34 = arith.truncf %33 : vector<128x128xf32> to vector<128x128xbf16>
    %c2_40 = arith.constant 2 : index
    %c0_41 = arith.constant 0 : index
    %c0_42 = arith.constant 0 : index
    %35 = vector.load %arg2[%c2_40, %c0_41, %c0_42] : memref<9x128x128xbf16, #tpu.memory_space<vmem>>, vector<1x128x128xbf16>
    %36 = vector.shape_cast %35 : vector<1x128x128xbf16> to vector<128x128xbf16>
    %cst_43 = arith.constant dense<0.000000e+00> : vector<128x128xf32>
    %37 = tpu.matmul %34, %36, %cst_43 {dimension_numbers = #tpu.dot_dimension_numbers<[1], [0], [0], [1], [0, 0, 1, 1], [], []>} : vector<128x128xbf16>, vector<128x128xbf16>, vector<128x128xf32> -> vector<128x128xf32>
    %38 = arith.addf %28, %37 : vector<128x128xf32>
    %c0_44 = arith.constant 0 : index
    %c2_45 = arith.constant 2 : index
    %c1_46 = arith.constant 1 : index
    %c0_47 = arith.constant 0 : index
    %39 = vector.load %arg9[%c0_44, %c2_45, %c1_46, %c0_47] : memref<2x12x16x128xf32, #tpu.memory_space<vmem>>, vector<2x8x8x128xf32>
    %40 = vector.shape_cast %39 : vector<2x8x8x128xf32> to vector<128x128xf32>
    %c0_48 = arith.constant 0 : index
    %c2_49 = arith.constant 2 : index
    %c0_50 = arith.constant 0 : index
    %c0_51 = arith.constant 0 : index
    %41 = vector.load %arg9[%c0_48, %c2_49, %c0_50, %c0_51] : memref<2x12x16x128xf32, #tpu.memory_space<vmem>>, vector<2x8x8x128xf32>
    %42 = vector.shape_cast %41 : vector<2x8x8x128xf32> to vector<128x128xf32>
    %43 = arith.select %7, %40, %42 : vector<128x128xi1>, vector<128x128xf32>
    %44 = arith.truncf %43 : vector<128x128xf32> to vector<128x128xbf16>
    %c3_52 = arith.constant 3 : index
    %c0_53 = arith.constant 0 : index
    %c0_54 = arith.constant 0 : index
    %45 = vector.load %arg2[%c3_52, %c0_53, %c0_54] : memref<9x128x128xbf16, #tpu.memory_space<vmem>>, vector<1x128x128xbf16>
    %46 = vector.shape_cast %45 : vector<1x128x128xbf16> to vector<128x128xbf16>
    %cst_55 = arith.constant dense<0.000000e+00> : vector<128x128xf32>
    %47 = tpu.matmul %44, %46, %cst_55 {dimension_numbers = #tpu.dot_dimension_numbers<[1], [0], [0], [1], [0, 0, 1, 1], [], []>} : vector<128x128xbf16>, vector<128x128xbf16>, vector<128x128xf32> -> vector<128x128xf32>
    %48 = arith.addf %38, %47 : vector<128x128xf32>
    %c0_56 = arith.constant 0 : index
    %c2_57 = arith.constant 2 : index
    %c2_58 = arith.constant 2 : index
    %c0_59 = arith.constant 0 : index
    %49 = vector.load %arg9[%c0_56, %c2_57, %c2_58, %c0_59] : memref<2x12x16x128xf32, #tpu.memory_space<vmem>>, vector<2x8x8x128xf32>
    %50 = vector.shape_cast %49 : vector<2x8x8x128xf32> to vector<128x128xf32>
    %c0_60 = arith.constant 0 : index
    %c2_61 = arith.constant 2 : index
    %c2_62 = arith.constant 2 : index
    %c0_63 = arith.constant 0 : index
    %51 = vector.load %arg9[%c0_60, %c2_61, %c2_62, %c0_63] : memref<2x12x16x128xf32, #tpu.memory_space<vmem>>, vector<2x8x8x128xf32>
    %52 = vector.shape_cast %51 : vector<2x8x8x128xf32> to vector<128x128xf32>
    %53 = arith.select %7, %50, %52 : vector<128x128xi1>, vector<128x128xf32>
    %54 = arith.truncf %53 : vector<128x128xf32> to vector<128x128xbf16>
    %c4_64 = arith.constant 4 : index
    %c0_65 = arith.constant 0 : index
    %c0_66 = arith.constant 0 : index
    %55 = vector.load %arg2[%c4_64, %c0_65, %c0_66] : memref<9x128x128xbf16, #tpu.memory_space<vmem>>, vector<1x128x128xbf16>
    %56 = vector.shape_cast %55 : vector<1x128x128xbf16> to vector<128x128xbf16>
    %cst_67 = arith.constant dense<0.000000e+00> : vector<128x128xf32>
    %57 = tpu.matmul %54, %56, %cst_67 {dimension_numbers = #tpu.dot_dimension_numbers<[1], [0], [0], [1], [0, 0, 1, 1], [], []>} : vector<128x128xbf16>, vector<128x128xbf16>, vector<128x128xf32> -> vector<128x128xf32>
    %58 = arith.addf %48, %57 : vector<128x128xf32>
    %c0_68 = arith.constant 0 : index
    %c2_69 = arith.constant 2 : index
    %c3_70 = arith.constant 3 : index
    %c0_71 = arith.constant 0 : index
    %59 = vector.load %arg9[%c0_68, %c2_69, %c3_70, %c0_71] : memref<2x12x16x128xf32, #tpu.memory_space<vmem>>, vector<2x8x8x128xf32>
    %60 = vector.shape_cast %59 : vector<2x8x8x128xf32> to vector<128x128xf32>
    %c0_72 = arith.constant 0 : index
    %c2_73 = arith.constant 2 : index
    %c4_74 = arith.constant 4 : index
    %c0_75 = arith.constant 0 : index
    %61 = vector.load %arg9[%c0_72, %c2_73, %c4_74, %c0_75] : memref<2x12x16x128xf32, #tpu.memory_space<vmem>>, vector<2x8x8x128xf32>
    %62 = vector.shape_cast %61 : vector<2x8x8x128xf32> to vector<128x128xf32>
    %63 = arith.select %7, %60, %62 : vector<128x128xi1>, vector<128x128xf32>
    %64 = arith.truncf %63 : vector<128x128xf32> to vector<128x128xbf16>
    %c5 = arith.constant 5 : index
    %c0_76 = arith.constant 0 : index
    %c0_77 = arith.constant 0 : index
    %65 = vector.load %arg2[%c5, %c0_76, %c0_77] : memref<9x128x128xbf16, #tpu.memory_space<vmem>>, vector<1x128x128xbf16>
    %66 = vector.shape_cast %65 : vector<1x128x128xbf16> to vector<128x128xbf16>
    %cst_78 = arith.constant dense<0.000000e+00> : vector<128x128xf32>
    %67 = tpu.matmul %64, %66, %cst_78 {dimension_numbers = #tpu.dot_dimension_numbers<[1], [0], [0], [1], [0, 0, 1, 1], [], []>} : vector<128x128xbf16>, vector<128x128xbf16>, vector<128x128xf32> -> vector<128x128xf32>
    %68 = arith.addf %58, %67 : vector<128x128xf32>
    %c0_79 = arith.constant 0 : index
    %c3_80 = arith.constant 3 : index
    %c1_81 = arith.constant 1 : index
    %c0_82 = arith.constant 0 : index
    %69 = vector.load %arg9[%c0_79, %c3_80, %c1_81, %c0_82] : memref<2x12x16x128xf32, #tpu.memory_space<vmem>>, vector<2x8x8x128xf32>
    %70 = vector.shape_cast %69 : vector<2x8x8x128xf32> to vector<128x128xf32>
    %c0_83 = arith.constant 0 : index
    %c4_84 = arith.constant 4 : index
    %c0_85 = arith.constant 0 : index
    %c0_86 = arith.constant 0 : index
    %71 = vector.load %arg9[%c0_83, %c4_84, %c0_85, %c0_86] : memref<2x12x16x128xf32, #tpu.memory_space<vmem>>, vector<2x8x8x128xf32>
    %72 = vector.shape_cast %71 : vector<2x8x8x128xf32> to vector<128x128xf32>
    %73 = arith.select %7, %70, %72 : vector<128x128xi1>, vector<128x128xf32>
    %74 = arith.truncf %73 : vector<128x128xf32> to vector<128x128xbf16>
    %c6 = arith.constant 6 : index
    %c0_87 = arith.constant 0 : index
    %c0_88 = arith.constant 0 : index
    %75 = vector.load %arg2[%c6, %c0_87, %c0_88] : memref<9x128x128xbf16, #tpu.memory_space<vmem>>, vector<1x128x128xbf16>
    %76 = vector.shape_cast %75 : vector<1x128x128xbf16> to vector<128x128xbf16>
    %cst_89 = arith.constant dense<0.000000e+00> : vector<128x128xf32>
    %77 = tpu.matmul %74, %76, %cst_89 {dimension_numbers = #tpu.dot_dimension_numbers<[1], [0], [0], [1], [0, 0, 1, 1], [], []>} : vector<128x128xbf16>, vector<128x128xbf16>, vector<128x128xf32> -> vector<128x128xf32>
    %78 = arith.addf %68, %77 : vector<128x128xf32>
    %c0_90 = arith.constant 0 : index
    %c3_91 = arith.constant 3 : index
    %c2_92 = arith.constant 2 : index
    %c0_93 = arith.constant 0 : index
    %79 = vector.load %arg9[%c0_90, %c3_91, %c2_92, %c0_93] : memref<2x12x16x128xf32, #tpu.memory_space<vmem>>, vector<2x8x8x128xf32>
    %80 = vector.shape_cast %79 : vector<2x8x8x128xf32> to vector<128x128xf32>
    %c0_94 = arith.constant 0 : index
    %c4_95 = arith.constant 4 : index
    %c2_96 = arith.constant 2 : index
    %c0_97 = arith.constant 0 : index
    %81 = vector.load %arg9[%c0_94, %c4_95, %c2_96, %c0_97] : memref<2x12x16x128xf32, #tpu.memory_space<vmem>>, vector<2x8x8x128xf32>
    %82 = vector.shape_cast %81 : vector<2x8x8x128xf32> to vector<128x128xf32>
    %83 = arith.select %7, %80, %82 : vector<128x128xi1>, vector<128x128xf32>
    %84 = arith.truncf %83 : vector<128x128xf32> to vector<128x128xbf16>
    %c7 = arith.constant 7 : index
    %c0_98 = arith.constant 0 : index
    %c0_99 = arith.constant 0 : index
    %85 = vector.load %arg2[%c7, %c0_98, %c0_99] : memref<9x128x128xbf16, #tpu.memory_space<vmem>>, vector<1x128x128xbf16>
    %86 = vector.shape_cast %85 : vector<1x128x128xbf16> to vector<128x128xbf16>
    %cst_100 = arith.constant dense<0.000000e+00> : vector<128x128xf32>
    %87 = tpu.matmul %84, %86, %cst_100 {dimension_numbers = #tpu.dot_dimension_numbers<[1], [0], [0], [1], [0, 0, 1, 1], [], []>} : vector<128x128xbf16>, vector<128x128xbf16>, vector<128x128xf32> -> vector<128x128xf32>
    %88 = arith.addf %78, %87 : vector<128x128xf32>
    %c0_101 = arith.constant 0 : index
    %c3_102 = arith.constant 3 : index
    %c3_103 = arith.constant 3 : index
    %c0_104 = arith.constant 0 : index
    %89 = vector.load %arg9[%c0_101, %c3_102, %c3_103, %c0_104] : memref<2x12x16x128xf32, #tpu.memory_space<vmem>>, vector<2x8x8x128xf32>
    %90 = vector.shape_cast %89 : vector<2x8x8x128xf32> to vector<128x128xf32>
    %c0_105 = arith.constant 0 : index
    %c4_106 = arith.constant 4 : index
    %c4_107 = arith.constant 4 : index
    %c0_108 = arith.constant 0 : index
    %91 = vector.load %arg9[%c0_105, %c4_106, %c4_107, %c0_108] : memref<2x12x16x128xf32, #tpu.memory_space<vmem>>, vector<2x8x8x128xf32>
    %92 = vector.shape_cast %91 : vector<2x8x8x128xf32> to vector<128x128xf32>
    %93 = arith.select %7, %90, %92 : vector<128x128xi1>, vector<128x128xf32>
    %94 = arith.truncf %93 : vector<128x128xf32> to vector<128x128xbf16>
    %c8 = arith.constant 8 : index
    %c0_109 = arith.constant 0 : index
    %c0_110 = arith.constant 0 : index
    %95 = vector.load %arg2[%c8, %c0_109, %c0_110] : memref<9x128x128xbf16, #tpu.memory_space<vmem>>, vector<1x128x128xbf16>
    %96 = vector.shape_cast %95 : vector<1x128x128xbf16> to vector<128x128xbf16>
    %cst_111 = arith.constant dense<0.000000e+00> : vector<128x128xf32>
    %97 = tpu.matmul %94, %96, %cst_111 {dimension_numbers = #tpu.dot_dimension_numbers<[1], [0], [0], [1], [0, 0, 1, 1], [], []>} : vector<128x128xbf16>, vector<128x128xbf16>, vector<128x128xf32> -> vector<128x128xf32>
    %98 = arith.addf %88, %97 : vector<128x128xf32>
    %c0_112 = arith.constant 0 : index
    %c0_113 = arith.constant 0 : index
    %99 = vector.load %arg3[%c0_112, %c0_113] : memref<1x128xf32, #tpu.memory_space<vmem>>, vector<1x128xf32>
    %100 = vector.broadcast %99 : vector<1x128xf32> to vector<128x128xf32>
    %101 = arith.addf %98, %100 : vector<128x128xf32>
    %cst_114 = arith.constant 0.000000e+00 : f32
    %102 = vector.broadcast %cst_114 : f32 to vector<128x128xf32>
    %103 = arith.maximumf %101, %102 : vector<128x128xf32>
    %104 = vector.shape_cast %103 : vector<128x128xf32> to vector<2x64x128xf32>
    %cst_115 = arith.constant dense<0.000000e+00> : vector<2x128xf32>
    %105 = vector.multi_reduction <add>, %104, %cst_115 [1] : vector<2x64x128xf32> to vector<2x128xf32>
    %cst_116 = arith.constant 1.562500e-02 : f32
    %106 = vector.broadcast %cst_116 : f32 to vector<2x128xf32>
    %107 = arith.mulf %105, %106 : vector<2x128xf32>
    %108 = arith.truncf %107 : vector<2x128xf32> to vector<2x128xbf16>
    %c0_117 = arith.constant 0 : index
    %c0_118 = arith.constant 0 : index
    %109 = vector.load %arg4[%c0_117, %c0_118] : memref<128x128xbf16, #tpu.memory_space<vmem>>, vector<128x128xbf16>
    %cst_119 = arith.constant dense<0.000000e+00> : vector<2x128xf32>
    %110 = tpu.matmul %108, %109, %cst_119 {dimension_numbers = #tpu.dot_dimension_numbers<[1], [0], [0], [1], [0, 0, 1, 1], [], []>} : vector<2x128xbf16>, vector<128x128xbf16>, vector<2x128xf32> -> vector<2x128xf32>
    %c0_120 = arith.constant 0 : index
    %c0_121 = arith.constant 0 : index
    %111 = vector.load %arg5[%c0_120, %c0_121] : memref<1x128xf32, #tpu.memory_space<vmem>>, vector<1x128xf32>
    %112 = vector.broadcast %111 : vector<1x128xf32> to vector<2x128xf32>
    %113 = arith.addf %110, %112 : vector<2x128xf32>
    %cst_122 = arith.constant dense<0xFF800000> : vector<2xf32>
    %114 = vector.multi_reduction <maximumf>, %113, %cst_122 [1] : vector<2x128xf32> to vector<2xf32>
    %115 = vector.shape_cast %114 : vector<2xf32> to vector<2x1xf32>
    %116 = vector.broadcast %115 : vector<2x1xf32> to vector<2x128xf32>
    %117 = arith.subf %113, %116 : vector<2x128xf32>
    %118 = math.exp %117 : vector<2x128xf32>
    %cst_123 = arith.constant dense<0.000000e+00> : vector<2xf32>
    %119 = vector.multi_reduction <add>, %118, %cst_123 [1] : vector<2x128xf32> to vector<2xf32>
    %120 = vector.shape_cast %119 : vector<2xf32> to vector<2x1xf32>
    %121 = vector.broadcast %120 : vector<2x1xf32> to vector<2x128xf32>
    %122 = arith.divf %118, %121 : vector<2x128xf32>
    %cst_124 = arith.constant 1.280000e+02 : f32
    %123 = vector.broadcast %cst_124 : f32 to vector<2x128xf32>
    %124 = arith.mulf %122, %123 : vector<2x128xf32>
    %125 = vector.shape_cast %124 : vector<2x128xf32> to vector<2x1x128xf32>
    %126 = vector.broadcast %125 : vector<2x1x128xf32> to vector<2x64x128xf32>
    %127 = arith.mulf %104, %126 : vector<2x64x128xf32>
    %128 = vector.shape_cast %127 : vector<2x64x128xf32> to vector<2x8x8x128xf32>
    %c0_125 = arith.constant 0 : index
    %c2_126 = arith.constant 2 : index
    %c2_127 = arith.constant 2 : index
    %c0_128 = arith.constant 0 : index
    %129 = vector.load %arg9[%c0_125, %c2_126, %c2_127, %c0_128] : memref<2x12x16x128xf32, #tpu.memory_space<vmem>>, vector<2x8x8x128xf32>
    tpu.vector_store %arg9[%c0_125, %c2_126, %c2_127, %c0_128], %128 {strides = array<i32>} : memref<2x12x16x128xf32, #tpu.memory_space<vmem>>, vector<2x8x8x128xf32>,
    %cst_129 = arith.constant 0.000000e+00 : f32
    %130 = vector.broadcast %cst_129 : f32 to vector<128x128xf32>
    %c0_130 = arith.constant 0 : index
    %c1_131 = arith.constant 1 : index
    %c1_132 = arith.constant 1 : index
    %c0_133 = arith.constant 0 : index
    %131 = vector.load %arg9[%c0_130, %c1_131, %c1_132, %c0_133] : memref<2x12x16x128xf32, #tpu.memory_space<vmem>>, vector<2x8x8x128xf32>
    %132 = vector.shape_cast %131 : vector<2x8x8x128xf32> to vector<128x128xf32>
    %133 = arith.truncf %132 : vector<128x128xf32> to vector<128x128xbf16>
    %c0_134 = arith.constant 0 : index
    %c0_135 = arith.constant 0 : index
    %c0_136 = arith.constant 0 : index
    %134 = vector.load %arg6[%c0_134, %c0_135, %c0_136] : memref<9x128x128xbf16, #tpu.memory_space<vmem>>, vector<1x128x128xbf16>
    %135 = vector.shape_cast %134 : vector<1x128x128xbf16> to vector<128x128xbf16>
    %cst_137 = arith.constant dense<0.000000e+00> : vector<128x128xf32>
    %136 = tpu.matmul %133, %135, %cst_137 {dimension_numbers = #tpu.dot_dimension_numbers<[1], [0], [0], [1], [0, 0, 1, 1], [], []>} : vector<128x128xbf16>, vector<128x128xbf16>, vector<128x128xf32> -> vector<128x128xf32>
    %137 = arith.addf %130, %136 : vector<128x128xf32>
    %c0_138 = arith.constant 0 : index
    %c1_139 = arith.constant 1 : index
    %c2_140 = arith.constant 2 : index
    %c0_141 = arith.constant 0 : index
    %138 = vector.load %arg9[%c0_138, %c1_139, %c2_140, %c0_141] : memref<2x12x16x128xf32, #tpu.memory_space<vmem>>, vector<2x8x8x128xf32>
    %139 = vector.shape_cast %138 : vector<2x8x8x128xf32> to vector<128x128xf32>
    %140 = arith.truncf %139 : vector<128x128xf32> to vector<128x128xbf16>
    %c1_142 = arith.constant 1 : index
    %c0_143 = arith.constant 0 : index
    %c0_144 = arith.constant 0 : index
    %141 = vector.load %arg6[%c1_142, %c0_143, %c0_144] : memref<9x128x128xbf16, #tpu.memory_space<vmem>>, vector<1x128x128xbf16>
    %142 = vector.shape_cast %141 : vector<1x128x128xbf16> to vector<128x128xbf16>
    %cst_145 = arith.constant dense<0.000000e+00> : vector<128x128xf32>
    %143 = tpu.matmul %140, %142, %cst_145 {dimension_numbers = #tpu.dot_dimension_numbers<[1], [0], [0], [1], [0, 0, 1, 1], [], []>} : vector<128x128xbf16>, vector<128x128xbf16>, vector<128x128xf32> -> vector<128x128xf32>
    %144 = arith.addf %137, %143 : vector<128x128xf32>
    %c0_146 = arith.constant 0 : index
    %c1_147 = arith.constant 1 : index
    %c3_148 = arith.constant 3 : index
    %c0_149 = arith.constant 0 : index
    %145 = vector.load %arg9[%c0_146, %c1_147, %c3_148, %c0_149] : memref<2x12x16x128xf32, #tpu.memory_space<vmem>>, vector<2x8x8x128xf32>
    %146 = vector.shape_cast %145 : vector<2x8x8x128xf32> to vector<128x128xf32>
    %147 = arith.truncf %146 : vector<128x128xf32> to vector<128x128xbf16>
    %c2_150 = arith.constant 2 : index
    %c0_151 = arith.constant 0 : index
    %c0_152 = arith.constant 0 : index
    %148 = vector.load %arg6[%c2_150, %c0_151, %c0_152] : memref<9x128x128xbf16, #tpu.memory_space<vmem>>, vector<1x128x128xbf16>
    %149 = vector.shape_cast %148 : vector<1x128x128xbf16> to vector<128x128xbf16>
    %cst_153 = arith.constant dense<0.000000e+00> : vector<128x128xf32>
    %150 = tpu.matmul %147, %149, %cst_153 {dimension_numbers = #tpu.dot_dimension_numbers<[1], [0], [0], [1], [0, 0, 1, 1], [], []>} : vector<128x128xbf16>, vector<128x128xbf16>, vector<128x128xf32> -> vector<128x128xf32>
    %151 = arith.addf %144, %150 : vector<128x128xf32>
    %c0_154 = arith.constant 0 : index
    %c2_155 = arith.constant 2 : index
    %c1_156 = arith.constant 1 : index
    %c0_157 = arith.constant 0 : index
    %152 = vector.load %arg9[%c0_154, %c2_155, %c1_156, %c0_157] : memref<2x12x16x128xf32, #tpu.memory_space<vmem>>, vector<2x8x8x128xf32>
    %153 = vector.shape_cast %152 : vector<2x8x8x128xf32> to vector<128x128xf32>
    %154 = arith.truncf %153 : vector<128x128xf32> to vector<128x128xbf16>
    %c3_158 = arith.constant 3 : index
    %c0_159 = arith.constant 0 : index
    %c0_160 = arith.constant 0 : index
    %155 = vector.load %arg6[%c3_158, %c0_159, %c0_160] : memref<9x128x128xbf16, #tpu.memory_space<vmem>>, vector<1x128x128xbf16>
    %156 = vector.shape_cast %155 : vector<1x128x128xbf16> to vector<128x128xbf16>
    %cst_161 = arith.constant dense<0.000000e+00> : vector<128x128xf32>
    %157 = tpu.matmul %154, %156, %cst_161 {dimension_numbers = #tpu.dot_dimension_numbers<[1], [0], [0], [1], [0, 0, 1, 1], [], []>} : vector<128x128xbf16>, vector<128x128xbf16>, vector<128x128xf32> -> vector<128x128xf32>
    %158 = arith.addf %151, %157 : vector<128x128xf32>
    %c0_162 = arith.constant 0 : index
    %c2_163 = arith.constant 2 : index
    %c2_164 = arith.constant 2 : index
    %c0_165 = arith.constant 0 : index
    %159 = vector.load %arg9[%c0_162, %c2_163, %c2_164, %c0_165] : memref<2x12x16x128xf32, #tpu.memory_space<vmem>>, vector<2x8x8x128xf32>
    %160 = vector.shape_cast %159 : vector<2x8x8x128xf32> to vector<128x128xf32>
    %161 = arith.truncf %160 : vector<128x128xf32> to vector<128x128xbf16>
    %c4_166 = arith.constant 4 : index
    %c0_167 = arith.constant 0 : index
    %c0_168 = arith.constant 0 : index
    %162 = vector.load %arg6[%c4_166, %c0_167, %c0_168] : memref<9x128x128xbf16, #tpu.memory_space<vmem>>, vector<1x128x128xbf16>
    %163 = vector.shape_cast %162 : vector<1x128x128xbf16> to vector<128x128xbf16>
    %cst_169 = arith.constant dense<0.000000e+00> : vector<128x128xf32>
    %164 = tpu.matmul %161, %163, %cst_169 {dimension_numbers = #tpu.dot_dimension_numbers<[1], [0], [0], [1], [0, 0, 1, 1], [], []>} : vector<128x128xbf16>, vector<128x128xbf16>, vector<128x128xf32> -> vector<128x128xf32>
    %165 = arith.addf %158, %164 : vector<128x128xf32>
    %c0_170 = arith.constant 0 : index
    %c2_171 = arith.constant 2 : index
    %c3_172 = arith.constant 3 : index
    %c0_173 = arith.constant 0 : index
    %166 = vector.load %arg9[%c0_170, %c2_171, %c3_172, %c0_173] : memref<2x12x16x128xf32, #tpu.memory_space<vmem>>, vector<2x8x8x128xf32>
    %167 = vector.shape_cast %166 : vector<2x8x8x128xf32> to vector<128x128xf32>
    %168 = arith.truncf %167 : vector<128x128xf32> to vector<128x128xbf16>
    %c5_174 = arith.constant 5 : index
    %c0_175 = arith.constant 0 : index
    %c0_176 = arith.constant 0 : index
    %169 = vector.load %arg6[%c5_174, %c0_175, %c0_176] : memref<9x128x128xbf16, #tpu.memory_space<vmem>>, vector<1x128x128xbf16>
    %170 = vector.shape_cast %169 : vector<1x128x128xbf16> to vector<128x128xbf16>
    %cst_177 = arith.constant dense<0.000000e+00> : vector<128x128xf32>
    %171 = tpu.matmul %168, %170, %cst_177 {dimension_numbers = #tpu.dot_dimension_numbers<[1], [0], [0], [1], [0, 0, 1, 1], [], []>} : vector<128x128xbf16>, vector<128x128xbf16>, vector<128x128xf32> -> vector<128x128xf32>
    %172 = arith.addf %165, %171 : vector<128x128xf32>
    %c0_178 = arith.constant 0 : index
    %c3_179 = arith.constant 3 : index
    %c1_180 = arith.constant 1 : index
    %c0_181 = arith.constant 0 : index
    %173 = vector.load %arg9[%c0_178, %c3_179, %c1_180, %c0_181] : memref<2x12x16x128xf32, #tpu.memory_space<vmem>>, vector<2x8x8x128xf32>
    %174 = vector.shape_cast %173 : vector<2x8x8x128xf32> to vector<128x128xf32>
    %175 = arith.truncf %174 : vector<128x128xf32> to vector<128x128xbf16>
    %c6_182 = arith.constant 6 : index
    %c0_183 = arith.constant 0 : index
    %c0_184 = arith.constant 0 : index
    %176 = vector.load %arg6[%c6_182, %c0_183, %c0_184] : memref<9x128x128xbf16, #tpu.memory_space<vmem>>, vector<1x128x128xbf16>
    %177 = vector.shape_cast %176 : vector<1x128x128xbf16> to vector<128x128xbf16>
    %cst_185 = arith.constant dense<0.000000e+00> : vector<128x128xf32>
    %178 = tpu.matmul %175, %177, %cst_185 {dimension_numbers = #tpu.dot_dimension_numbers<[1], [0], [0], [1], [0, 0, 1, 1], [], []>} : vector<128x128xbf16>, vector<128x128xbf16>, vector<128x128xf32> -> vector<128x128xf32>
    %179 = arith.addf %172, %178 : vector<128x128xf32>
    %c0_186 = arith.constant 0 : index
    %c3_187 = arith.constant 3 : index
    %c2_188 = arith.constant 2 : index
    %c0_189 = arith.constant 0 : index
    %180 = vector.load %arg9[%c0_186, %c3_187, %c2_188, %c0_189] : memref<2x12x16x128xf32, #tpu.memory_space<vmem>>, vector<2x8x8x128xf32>
    %181 = vector.shape_cast %180 : vector<2x8x8x128xf32> to vector<128x128xf32>
    %182 = arith.truncf %181 : vector<128x128xf32> to vector<128x128xbf16>
    %c7_190 = arith.constant 7 : index
    %c0_191 = arith.constant 0 : index
    %c0_192 = arith.constant 0 : index
    %183 = vector.load %arg6[%c7_190, %c0_191, %c0_192] : memref<9x128x128xbf16, #tpu.memory_space<vmem>>, vector<1x128x128xbf16>
    %184 = vector.shape_cast %183 : vector<1x128x128xbf16> to vector<128x128xbf16>
    %cst_193 = arith.constant dense<0.000000e+00> : vector<128x128xf32>
    %185 = tpu.matmul %182, %184, %cst_193 {dimension_numbers = #tpu.dot_dimension_numbers<[1], [0], [0], [1], [0, 0, 1, 1], [], []>} : vector<128x128xbf16>, vector<128x128xbf16>, vector<128x128xf32> -> vector<128x128xf32>
    %186 = arith.addf %179, %185 : vector<128x128xf32>
    %c0_194 = arith.constant 0 : index
    %c3_195 = arith.constant 3 : index
    %c3_196 = arith.constant 3 : index
    %c0_197 = arith.constant 0 : index
    %187 = vector.load %arg9[%c0_194, %c3_195, %c3_196, %c0_197] : memref<2x12x16x128xf32, #tpu.memory_space<vmem>>, vector<2x8x8x128xf32>
    %188 = vector.shape_cast %187 : vector<2x8x8x128xf32> to vector<128x128xf32>
    %189 = arith.truncf %188 : vector<128x128xf32> to vector<128x128xbf16>
    %c8_198 = arith.constant 8 : index
    %c0_199 = arith.constant 0 : index
    %c0_200 = arith.constant 0 : index
    %190 = vector.load %arg6[%c8_198, %c0_199, %c0_200] : memref<9x128x128xbf16, #tpu.memory_space<vmem>>, vector<1x128x128xbf16>
    %191 = vector.shape_cast %190 : vector<1x128x128xbf16> to vector<128x128xbf16>
    %cst_201 = arith.constant dense<0.000000e+00> : vector<128x128xf32>
    %192 = tpu.matmul %189, %191, %cst_201 {dimension_numbers = #tpu.dot_dimension_numbers<[1], [0], [0], [1], [0, 0, 1, 1], [], []>} : vector<128x128xbf16>, vector<128x128xbf16>, vector<128x128xf32> -> vector<128x128xf32>
    %193 = arith.addf %186, %192 : vector<128x128xf32>
    %c0_202 = arith.constant 0 : index
    %c0_203 = arith.constant 0 : index
    %194 = vector.load %arg7[%c0_202, %c0_203] : memref<1x128xf32, #tpu.memory_space<vmem>>, vector<1x128xf32>
    %195 = vector.broadcast %194 : vector<1x128xf32> to vector<128x128xf32>
    %196 = arith.addf %193, %195 : vector<128x128xf32>
    %cst_204 = arith.constant 0.000000e+00 : f32
    %197 = vector.broadcast %cst_204 : f32 to vector<128x128xf32>
    %198 = arith.maximumf %196, %197 : vector<128x128xf32>
    %199 = arith.select %7, %198, %103 : vector<128x128xi1>, vector<128x128xf32>
    %200 = vector.shape_cast %199 : vector<128x128xf32> to vector<2x8x8x128xf32>
    %c0_205 = arith.constant 0 : index
    %c0_206 = arith.constant 0 : index
    %c0_207 = arith.constant 0 : index
    %c0_208 = arith.constant 0 : index
    %201 = vector.load %arg8[%c0_205, %c0_206, %c0_207, %c0_208] : memref<2x8x8x128xf32, #tpu.memory_space<vmem>>, vector<2x8x8x128xf32>
    tpu.vector_store %arg8[%c0_205, %c0_206, %c0_207, %c0_208], %200 {strides = array<i32>} : memref<2x8x8x128xf32, #tpu.memory_space<vmem>>, vector<2x8x8x128xf32>,
    return
  }
  func.func @transform_0(%arg0: i32) -> (i32, i32, i32, i32) {
    %c0_i32 = arith.constant 0 : i32
    %c0_i32_0 = arith.constant 0 : i32
    %c0_i32_1 = arith.constant 0 : i32
    %c0_i32_2 = arith.constant 0 : i32
    %c0_i32_3 = arith.constant 0 : i32
    return %c0_i32, %c0_i32_0, %c0_i32_1, %c0_i32_2 : i32, i32, i32, i32
  }
  func.func @transform_1(%arg0: i32) -> (i32, i32, i32) {
    %c0_i32 = arith.constant 0 : i32
    %c0_i32_0 = arith.constant 0 : i32
    %c0_i32_1 = arith.constant 0 : i32
    %c0_i32_2 = arith.constant 0 : i32
    return %c0_i32, %c0_i32_0, %c0_i32_1 : i32, i32, i32
  }
  func.func @transform_2(%arg0: i32) -> (i32, i32) {
    %c0_i32 = arith.constant 0 : i32
    %c0_i32_0 = arith.constant 0 : i32
    %c0_i32_1 = arith.constant 0 : i32
    return %c0_i32, %c0_i32_0 : i32, i32
  }
  func.func @transform_3(%arg0: i32) -> (i32, i32) {
    %c0_i32 = arith.constant 0 : i32
    %c0_i32_0 = arith.constant 0 : i32
    %c0_i32_1 = arith.constant 0 : i32
    return %c0_i32, %c0_i32_0 : i32, i32
  }
  func.func @transform_4(%arg0: i32) -> (i32, i32) {
    %c0_i32 = arith.constant 0 : i32
    %c0_i32_0 = arith.constant 0 : i32
    %c0_i32_1 = arith.constant 0 : i32
    return %c0_i32, %c0_i32_0 : i32, i32
  }
  func.func @transform_5(%arg0: i32) -> (i32, i32, i32) {
    %c0_i32 = arith.constant 0 : i32
    %c0_i32_0 = arith.constant 0 : i32
    %c0_i32_1 = arith.constant 0 : i32
    %c0_i32_2 = arith.constant 0 : i32
    return %c0_i32, %c0_i32_0, %c0_i32_1 : i32, i32, i32
  }
  func.func @transform_6(%arg0: i32) -> (i32, i32) {
    %c0_i32 = arith.constant 0 : i32
    %c0_i32_0 = arith.constant 0 : i32
    %c0_i32_1 = arith.constant 0 : i32
    return %c0_i32, %c0_i32_0 : i32, i32
  }
  func.func @transform_7(%arg0: i32) -> (i32, i32, i32, i32) {
    %c0_i32 = arith.constant 0 : i32
    %c0_i32_0 = arith.constant 0 : i32
    %c0_i32_1 = arith.constant 0 : i32
    %c0_i32_2 = arith.constant 0 : i32
    %c0_i32_3 = arith.constant 0 : i32
    return %c0_i32, %c0_i32_0, %c0_i32_1, %c0_i32_2 : i32, i32, i32, i32
  }
}

</mosaic_0001>

<bundles_post_ra>
// kernel: tpu_custom_call.1
= control target key start
LH: loop header
LB: loop body
LE: loop exit
PB: predicated region body
PF: predicated region fallthrough
CT: control target
= control target key end

     0   :  { %12 = vsyncpa [#allocation4], 0  ;;  %s7159_s0 = inlined_call_operand.hbm [shape: bf16[2,8,8,128], index: 0, kind: input, shape index: {}]   ;;  %s7160_s1 = inlined_call_operand.hbm [shape: bf16[9,128,128], index: 1, kind: input, shape index: {}]   ;;  %s7161_s2 = inlined_call_operand.vmem [shape: f32[1,128], index: 2, kind: input, shape index: {}]   ;;  %s7162_s3 = inlined_call_operand.hbm [shape: bf16[128,128], index: 3, kind: input, shape index: {}]   ;;  %s7163_s4 = inlined_call_operand.vmem [shape: f32[1,128], index: 4, kind: input, shape index: {}]   ;;  %s7164_s5 = inlined_call_operand.hbm [shape: bf16[9,128,128], index: 5, kind: input, shape index: {}]   ;;  %s7165_s6 = inlined_call_operand.vmem [shape: f32[1,128], index: 6, kind: input, shape index: {}]   ;;  %s7166_s7 = inlined_call_operand.hbm [shape: f32[2,8,8,128], index: 7, kind: output, shape index: {}]  }
   0x1   :  { %13 = vsyncpa [#allocation7], 0 }
   0x2   :  { %14 = vsyncpa [#allocation10], 0 }
   0x3   :  { %15 = vsyncpa [#allocation5], 0  ;;  %s6032_s24 = smov [#allocation6]   ;;  %s6033_s26 = smov [#allocation3]  }
   0x4   :  { %s33_s25 = sshll.u32 %s6032_s24, 4  ;;  %s21_s27 = sshll.u32 %s6033_s26, 4  ;;  %s34_s25 = int_to_ptr.vmem [resolvable:$true] %s33_s25  ;;  %s6084_s27 = int_to_ptr.vmem [resolvable:$true] %s21_s27 }
   0x5   :  { %s5914_s30 = scalar_lea.hbm %s7160_s1, 9216 }
   0x6   :  { %p5915_p0 = scmp.ne.s32.totalorder %s7160_s1, %s5914_s30  ;;  %p5918_p1 = scmp.lt.u32.totalorder %s5914_s30, %s7160_s1 }
   0x8   :  { %p5920_p2 = pnand %p5918_p1, %p5915_p0 }
   0xa   :  { %5923 = shalt.err (!%p5920_p2)
}
   0xb   :  { %s5924_s12 = scalar_lea.vmem %s34_s25, 9216  ;;  %p5929_p4 = scmp.lt.s32.totalorder %s34_s25, %s34_s25 }
   0xc   :  { %p5925_p3 = scmp.ne.s32.totalorder %s34_s25, %s5924_s12  ;;  %p5930_p5 = scmp.lt.s32.totalorder %s5924_s12, %s5924_s12 }
   0xe   :  { %p5931_p6 = por %p5930_p5, %p5929_p4 }
  0x10   :  { %p5932_p7 = pnand %p5931_p6, %p5925_p3 }
  0x12   :  { %5935 = shalt.err (!%p5932_p7)
}
  0x13   :  { %s6034_s13 = smov 64   ;;  %s6035_s14 = smov 4  }
  0x14   :  { %39 = dma.hbm_to_vmem [thread:$0]  %s7160_s1, 9216, %s34_s25, [#allocation7], %s6034_s13, %s6034_s13, %s6035_s14  }
  0x15   :  { %s5936_s19 = scalar_lea.hbm %s7159_s0, 1024 }
  0x16   :  { %p5937_p8 = scmp.ne.s32.totalorder %s7159_s0, %s5936_s19  ;;  %p5940_p9 = scmp.lt.u32.totalorder %s5936_s19, %s7159_s0 }
  0x18   :  { %p5942_p10 = pnand %p5940_p9, %p5937_p8 }
  0x1a   :  { %5945 = shalt.err (!%p5942_p10)
}
  0x1b   :  { %s5946_s24 = scalar_lea.vmem %s6084_s27, 1024  ;;  %p5951_p12 = scmp.lt.s32.totalorder %s6084_s27, %s6084_s27 }
  0x1c   :  { %p5947_p11 = scmp.ne.s32.totalorder %s6084_s27, %s5946_s24  ;;  %p5952_p13 = scmp.lt.s32.totalorder %s5946_s24, %s5946_s24 }
  0x1e   :  { %p5953_p0 = por %p5952_p13, %p5951_p12 }
  0x20   :  { %p5954_p1 = pnand %p5953_p0, %p5947_p11 }
  0x22   :  { %5957 = shalt.err (!%p5954_p1)
}
  0x23   :  { %27 = dma.hbm_to_vmem [thread:$0]  %s7159_s0, 1024, %s6084_s27, [#allocation4], %s6034_s13, %s6034_s13, %s6035_s14  }
  0x24   :  { %s6036_s26 = smov [#allocation8]   ;;  %s6037_s29 = smov [#allocation9]  }
  0x25   :  { %s47_s28 = sshll.u32 %s6036_s26, 4  ;;  %s61_s30 = sshll.u32 %s6037_s29, 4  ;;  %s48_s28 = int_to_ptr.vmem [resolvable:$true] %s47_s28  ;;  %s6121_s30 = int_to_ptr.vmem [resolvable:$true] %s61_s30 }
  0x26   :  { %s5958_s10 = scalar_lea.hbm %s7162_s3, 1024 }
  0x27   :  { %p5959_p2 = scmp.ne.s32.totalorder %s7162_s3, %s5958_s10  ;;  %p5962_p3 = scmp.lt.u32.totalorder %s5958_s10, %s7162_s3 }
  0x29   :  { %p5964_p4 = pnand %p5962_p3, %p5959_p2 }
  0x2b   :  { %5967 = shalt.err (!%p5964_p4)
}
  0x2c   :  { %s5968_s0 = scalar_lea.vmem %s48_s28, 1024  ;;  %p5973_p6 = scmp.lt.s32.totalorder %s48_s28, %s48_s28 }
  0x2d   :  { %p5969_p5 = scmp.ne.s32.totalorder %s48_s28, %s5968_s0  ;;  %p5974_p7 = scmp.lt.s32.totalorder %s5968_s0, %s5968_s0 }
  0x2f   :  { %p5975_p8 = por %p5974_p7, %p5973_p6 }
  0x31   :  { %p5976_p9 = pnand %p5975_p8, %p5969_p5 }
  0x33   :  { %5979 = shalt.err (!%p5976_p9)
}
  0x34   :  { %53 = dma.hbm_to_vmem [thread:$0]  %s7162_s3, 1024, %s48_s28, [#allocation7], %s6034_s13, %s6034_s13, %s6035_s14  }
  0x35   :  { %s5980_s20 = scalar_lea.hbm %s7164_s5, 9216 }
  0x36   :  { %p5981_p10 = scmp.ne.s32.totalorder %s7164_s5, %s5980_s20  ;;  %p5984_p11 = scmp.lt.u32.totalorder %s5980_s20, %s7164_s5 }
  0x38   :  { %p5986_p12 = pnand %p5984_p11, %p5981_p10 }
  0x3a   :  { %5989 = shalt.err (!%p5986_p12)
}
  0x3b   :  { %s5990_s1 = scalar_lea.vmem %s6121_s30, 9216  ;;  %p5995_p0 = scmp.lt.s32.totalorder %s6121_s30, %s6121_s30 }
  0x3c   :  { %p5991_p13 = scmp.ne.s32.totalorder %s6121_s30, %s5990_s1  ;;  %p5996_p1 = scmp.lt.s32.totalorder %s5990_s1, %s5990_s1 }
  0x3e   :  { %p5997_p2 = por %p5996_p1, %p5995_p0 }
  0x40   :  { %p5998_p3 = pnand %p5997_p2, %p5991_p13 }
  0x42   :  { %6001 = shalt.err (!%p5998_p3)
}
  0x43   :  { %67 = dma.hbm_to_vmem [thread:$0]  %s7164_s5, 9216, %s6121_s30, [#allocation10], %s6034_s13, %s6034_s13, %s6035_s14  }
  0x44   :  { %6024 = dma.done.wait [#allocation4], 1024  }
  0x45   :  { %6025 = vsyncadd [#allocation4], 4294966272 }
  0x46   :  { %6026 = dma.done.wait [#allocation7], 10240  }
  0x47   :  { %6027 = vsyncadd [#allocation7], 4294957056 }
  0x48   :  { %6028 = dma.done.wait [#allocation10], 9216  }
  0x49   :  { %6029 = vsyncadd [#allocation10], 4294958080  ;;  %v6038_v0 = vmov 0.0   ;;  %v180_v1 = vlaneseq  ;;  %v5723_v2 = vld [vmem:[#allocation6 + $0x40] sm:$0xff]   ;;  %v5724_v3 = vld [vmem:[#allocation6 + $0x48] sm:$0xff]   ;;  %vm6039_vm2 = vmmov 0  }
  0x4a   :  { %83 = vst [vmem:[#allocation2] sm:$0xff] %v6038_v0  ;;  %84 = vst [vmem:[#allocation2 + $0x8] sm:$0xff] %v6038_v0  ;;  %4859 = vmatprep.subr.bf16.mxu0 %v5723_v2  ;;  %v5725_v5 = vld [vmem:[#allocation6 + $0x50] sm:$0xff]   ;;  %v5726_v6 = vld [vmem:[#allocation6 + $0x58] sm:$0xff]   ;;  %vm2323_vm3 = vcmask 1041409   ;;  %vm2415_vm4 = vcmask 1041408  }
  0x4b   :  { %85 = vst [vmem:[#allocation2 + $0x10] sm:$0xff] %v6038_v0  ;;  %86 = vst [vmem:[#allocation2 + $0x18] sm:$0xff] %v6038_v0  ;;  %v6159_v4 = vand.u32 127, %v180_v1  ;;  %4860 = vmatpush3.bf16.msra.mxu0 %v5723_v2  ;;  %v4524_v7 = vld [vmem:[#allocation3] sm:$0xff]   ;;  %v4555_v13 = vld [vmem:[#allocation3 + $0x8] sm:$0xff]  }
  0x4c   :  { %87 = vst [vmem:[#allocation2 + $0x20] sm:$0xff] %v6038_v0  ;;  %88 = vst [vmem:[#allocation2 + $0x28] sm:$0xff] %v6038_v0  ;;  %4861 = vmatprep.subr.bf16.mxu0 %v5724_v3  ;;  %v4525_v10 = vunpack.c.l.bf16 %v4524_v7  ;;  %v4526_v11 = vunpack.c.h.bf16 %v4524_v7  ;;  %v4529_v14 = vunpack.c.l.bf16 %v4555_v13  ;;  %v4530_v15 = vunpack.c.h.bf16 %v4555_v13  ;;  %v4556_v17 = vld [vmem:[#allocation3 + $0x10] sm:$0xff]   ;;  %v6166_v18 = vld [vmem:[#allocation3 + $0x18] sm:$0xff]  }
  0x4d   :  { %89 = vst [vmem:[#allocation2 + $0x30] sm:$0xff] %v6038_v0  ;;  %90 = vst [vmem:[#allocation2 + $0x38] sm:$0xff] %v6038_v0  ;;  %vm182_vm0 = vcmp.lt.s32.totalorder %v6159_v4, 64  ;;  %v5727_v19 = vld [vmem:[#allocation6 + $0x60] sm:$0xff]   ;;  %v4533_v21 = vunpack.c.l.bf16 %v4556_v17  ;;  %v4534_v22 = vunpack.c.h.bf16 %v4556_v17  ;;  %v4537_v23 = vunpack.c.l.bf16 %v6166_v18  ;;  %v4559_v27 = vld [vmem:[#allocation3 + $0x28] sm:$0xff]  }
  0x4e   :  { %91 = vst [vmem:[#allocation2 + $0x40] sm:$0xff] %v6038_v0  ;;  %92 = vst [vmem:[#allocation2 + $0x48] sm:$0xff] %v6038_v0  ;;  %v4538_v24 = vunpack.c.h.bf16 %v6166_v18  ;;  %v4558_v25 = vld [vmem:[#allocation3 + $0x20] sm:$0xff]   ;;  %v5728_v28 = vld [vmem:[#allocation6 + $0x68] sm:$0xff]   ;;  %v4545_v30 = vunpack.c.l.bf16 %v4559_v27  ;;  %v4546_v31 = vunpack.c.h.bf16 %v4559_v27  ;;  %v290_v40 = vsel %vm182_vm0, %v4526_v11, %v4525_v10 }
  0x4f   :  { %93 = vst [vmem:[#allocation2 + $0x50] sm:$0xff] %v6038_v0  ;;  %94 = vst [vmem:[#allocation2 + $0x58] sm:$0xff] %v6038_v0  ;;  %4862 = vmatpush3.bf16.msra.mxu0 %v5724_v3  ;;  %v4541_v26 = vunpack.c.l.bf16 %v4558_v25  ;;  %v4542_v29 = vunpack.c.h.bf16 %v4558_v25  ;;  %v4560_v32 = vld [vmem:[#allocation3 + $0x30] sm:$0xff]   ;;  %v6170_v33 = vld [vmem:[#allocation3 + $0x38] sm:$0xff]   ;;  %v291_v41 = vsel %vm182_vm0, %v4529_v14, %v4526_v11  ;;  %v292_v43 = vsel %vm182_vm0, %v4530_v15, %v4529_v14 }
  0x50   :  { %95 = vst [vmem:[#allocation2 + $0x60] sm:$0xff] %v6038_v0  ;;  %96 = vst [vmem:[#allocation2 + $0x68] sm:$0xff] %v6038_v0  ;;  %4863 = vmatprep.subr.bf16.mxu0 %v5725_v5  ;;  %v6172_v34 = vunpack.c.l.bf16 %v4560_v32  ;;  %v4550_v35 = vunpack.c.h.bf16 %v4560_v32  ;;  %v4553_v36 = vunpack.c.l.bf16 %v6170_v33  ;;  %v5729_v37 = vld [vmem:[#allocation6 + $0x70] sm:$0xff]   ;;  %v4554_v38 = vunpack.c.h.bf16 %v6170_v33  ;;  %v5730_v39 = vld [vmem:[#allocation6 + $0x78] sm:$0xff]  }
  0x51   :  { %97 = vst [vmem:[#allocation2 + $0x70] sm:$0xff] %v6038_v0  ;;  %98 = vst [vmem:[#allocation2 + $0x78] sm:$0xff] %v6038_v0  ;;  %v272_v9 = vld [vmem:[#allocation2 + $0x2] sm:$0xff]  ;;  %v293_v44 = vsel %vm182_vm0, %v4533_v21, %v4530_v15  ;;  %v305_v45 = vpack.c.bf16 %v291_v41, %v290_v40  ;;  %v294_v50 = vsel %vm182_vm0, %v4534_v22, %v4533_v21  ;;  %v5733_v52 = vld [vmem:[#allocation6 + $0x10] sm:$0xff]  }
  0x52   :  { %99 = vst [vmem:[#allocation2 + $0x80] sm:$0xff] %v6038_v0  ;;  %100 = vst [vmem:[#allocation2 + $0x88] sm:$0xff] %v6038_v0  ;;  %v256_v8 = vld [vmem:[#allocation2 + $0x12] sm:$0xff]  ;;  %v5731_v42 = vld [vmem:[#allocation6] sm:$0xff]   ;;  %v306_v46 = vpack.c.bf16 %v293_v44, %v292_v43  ;;  %v295_v51 = vsel %vm182_vm0, %v4537_v23, %v4534_v22  ;;  %v298_v58 = vsel %vm182_vm0, %v4542_v29, %v4541_v26 }
  0x53   :  { %101 = vst [vmem:[#allocation2 + $0x90] sm:$0xff] %v6038_v0  ;;  %102 = vst [vmem:[#allocation2 + $0x98] sm:$0xff] %v6038_v0  ;;  %v288_v12 = vsel %vm182_vm0, %v256_v8, %v272_v9  ;;  %4864 = vmatpush3.bf16.msra.mxu0 %v5725_v5  ;;  %v289_v16 = vsel %vm182_vm0, %v4525_v10, %v256_v8  ;;  %v5732_v47 = vld [vmem:[#allocation6 + $0x8] sm:$0xff]   ;;  %v307_v55 = vpack.c.bf16 %v295_v51, %v294_v50  ;;  %v5734_v57 = vld [vmem:[#allocation6 + $0x18] sm:$0xff]  }
  0x54   :  { %103 = vst [vmem:[#allocation2 + $0xa0] sm:$0xff] %v6038_v0  ;;  %104 = vst [vmem:[#allocation2 + $0xa8] sm:$0xff] %v6038_v0  ;;  %4865 = vmatprep.subr.bf16.mxu0 %v5726_v6  ;;  %v304_v20 = vpack.c.bf16 %v289_v16, %v288_v12  ;;  %v299_v59 = vsel %vm182_vm0, %v4545_v30, %v4542_v29  ;;  %v5735_v60 = vld [vmem:[#allocation6 + $0x20] sm:$0xff]   ;;  %v300_v61 = vsel %vm182_vm0, %v4546_v31, %v4545_v30  ;;  %v5736_v2 = vld [vmem:[#allocation6 + $0x28] sm:$0xff]  }
  0x55   :  { %105 = vst [vmem:[#allocation2 + $0xb0] sm:$0xff] %v6038_v0  ;;  %106 = vst [vmem:[#allocation2 + $0xb8] sm:$0xff] %v6038_v0  ;;  %v301_v62 = vsel %vm182_vm0, %v6172_v34, %v4546_v31  ;;  %v309_v63 = vpack.c.bf16 %v299_v59, %v298_v58  ;;  %v184_v3 = vld [vmem:[#allocation2 + $0x11] sm:$0xff]  ;;  %v303_v7 = vsel %vm182_vm0, %v4553_v36, %v4550_v35  ;;  %v5740_v27 = vld [vmem:[#allocation6 + $0x88] sm:$0xff]  }
  0x56   :  { %107 = vst [vmem:[#allocation2 + $0xc0] sm:$0xff] %v6038_v0  ;;  %108 = vst [vmem:[#allocation2 + $0xc8] sm:$0xff] %v6038_v0  ;;  %4875 = vmatprep.mubr.bf16.mxu0 %v304_v20  ;;  %v5737_v8 = vld [vmem:[#allocation6 + $0x30] sm:$0xff]   ;;  %v5743_v51 = vld [vmem:[#allocation6 + $0xa0] sm:$0xff]  }
  0x57   :  { %109 = vst [vmem:[#allocation2 + $0xd0] sm:$0xff] %v6038_v0  ;;  %110 = vst [vmem:[#allocation2 + $0xd8] sm:$0xff] %v6038_v0  ;;  %4866 = vmatpush3.bf16.msra.mxu0 %v5726_v6  ;;  %v302_v6 = vsel %vm182_vm0, %v4550_v35, %v6172_v34 }
  0x58   :  { %111 = vst [vmem:[#allocation2 + $0xe0] sm:$0xff] %v6038_v0  ;;  %112 = vst [vmem:[#allocation2 + $0xe8] sm:$0xff] %v6038_v0  ;;  %4867 = vmatprep.subr.bf16.mxu0 %v5727_v19  ;;  %v311_v9 = vpack.c.bf16 %v303_v7, %v302_v6  ;;  %v5745_v6 = vld [vmem:[#allocation6 + $0xb0] sm:$0xff]  }
  0x59   :  { %113 = vst [vmem:[#allocation2 + $0xf0] sm:$0xff] %v6038_v0  ;;  %114 = vst [vmem:[#allocation2 + $0xf8] sm:$0xff] %v6038_v0 }
  0x5a   :  { %115 = vst [vmem:[#allocation2 + $0x100] sm:$0xff] %v6038_v0  ;;  %116 = vst [vmem:[#allocation2 + $0x108] sm:$0xff] %v6038_v0 }
  0x5b   :  { %117 = vst [vmem:[#allocation2 + $0x110] sm:$0xff] %v6038_v0  ;;  %118 = vst [vmem:[#allocation2 + $0x118] sm:$0xff] %v6038_v0  ;;  %4868 = vmatpush3.bf16.msra.mxu0 %v5727_v19 }
  0x5c   :  { %119 = vst [vmem:[#allocation2 + $0x120] sm:$0xff] %v6038_v0  ;;  %120 = vst [vmem:[#allocation2 + $0x128] sm:$0xff] %v6038_v0  ;;  %4869 = vmatprep.subr.bf16.mxu0 %v5728_v28 }
  0x5d   :  { %121 = vst [vmem:[#allocation2 + $0x130] sm:$0xff] %v6038_v0  ;;  %122 = vst [vmem:[#allocation2 + $0x138] sm:$0xff] %v6038_v0  ;;  %v280_v49 = vld [vmem:[#allocation2 + $0xc2] sm:$0xff] }
  0x5e   :  { %123 = vst [vmem:[#allocation2 + $0x140] sm:$0xff] %v6038_v0  ;;  %124 = vst [vmem:[#allocation2 + $0x148] sm:$0xff] %v6038_v0  ;;  %v264_v48 = vld [vmem:[#allocation2 + $0xd2] sm:$0xff] }
  0x5f   :  { %125 = vst [vmem:[#allocation2 + $0x150] sm:$0xff] %v6038_v0  ;;  %126 = vst [vmem:[#allocation2 + $0x158] sm:$0xff] %v6038_v0  ;;  %4870 = vmatpush3.bf16.msra.mxu0 %v5728_v28  ;;  %v296_v53 = vsel %vm182_vm0, %v264_v48, %v280_v49  ;;  %v297_v54 = vsel %vm182_vm0, %v4541_v26, %v264_v48  ;;  %v192_v33 = vld [vmem:[#allocation2 + $0xd1] sm:$0xff] }
  0x60   :  { %127 = vst [vmem:[#allocation2 + $0x160] sm:$0xff] %v6038_v0  ;;  %128 = vst [vmem:[#allocation2 + $0x168] sm:$0xff] %v6038_v0  ;;  %4871 = vmatprep.subr.bf16.mxu0 %v5729_v37  ;;  %v308_v56 = vpack.c.bf16 %v297_v54, %v296_v53 }
  0x61   :  { %129 = vst [vmem:[#allocation2 + $0x170] sm:$0xff] %v6038_v0  ;;  %130 = vst [vmem:[#allocation2 + $0x178] sm:$0xff] %v6038_v0  ;;  %v310_v0 = vpack.c.bf16 %v301_v62, %v300_v61  ;;  %v619_v61 = vld [vmem:[#allocation2 + $0x13] sm:$0xff] }
  0x62   :  { %7184 = vst [vmem:[#allocation16_spill] sm:$0xff] %v6159_v4  ;;  %164 = vst [vmem:[#allocation2 + $0x22] sm:$0xff] %v4525_v10  ;;  %v5738_v10 = vld [vmem:[#allocation6 + $0x38] sm:$0xff]  }
  0x63   :  { %165 = vst [vmem:[#allocation2 + $0x32] sm:$0xff] %v4526_v11  ;;  %166 = vst [vmem:[#allocation2 + $0x42] sm:$0xff] %v4529_v14  ;;  %4872 = vmatpush3.bf16.msra.mxu0 %v5729_v37  ;;  %v5741_v37 = vld [vmem:[#allocation6 + $0x90] sm:$0xff]  }
  0x64   :  { %167 = vst [vmem:[#allocation2 + $0x52] sm:$0xff] %v4530_v15  ;;  %168 = vst [vmem:[#allocation2 + $0x62] sm:$0xff] %v4533_v21  ;;  %4873 = vmatprep.subr.bf16.mxu0 %v5730_v39 }
  0x65   :  { %169 = vst [vmem:[#allocation2 + $0x72] sm:$0xff] %v4534_v22  ;;  %170 = vst [vmem:[#allocation2 + $0x82] sm:$0xff] %v4537_v23  ;;  %v5739_v23 = vld [vmem:[#allocation6 + $0x80] sm:$0xff]  }
  0x66   :  { %171 = vst [vmem:[#allocation2 + $0x92] sm:$0xff] %v4538_v24  ;;  %172 = vst [vmem:[#allocation2 + $0xe2] sm:$0xff] %v4541_v26 }
  0x67   :  { %173 = vst [vmem:[#allocation2 + $0xf2] sm:$0xff] %v4542_v29  ;;  %174 = vst [vmem:[#allocation2 + $0x102] sm:$0xff] %v4545_v30  ;;  %4874 = vmatpush3.bf16.msra.mxu0 %v5730_v39  ;;  %v5742_v39 = vld [vmem:[#allocation6 + $0x98] sm:$0xff]  }
  0x68   :  { %175 = vst [vmem:[#allocation2 + $0x112] sm:$0xff] %v4546_v31  ;;  %176 = vst [vmem:[#allocation2 + $0x122] sm:$0xff] %v6172_v34  ;;  %4891 = vmatprep.subr.bf16.mxu0 %v5731_v42 }
  0x69   :  { %177 = vst [vmem:[#allocation2 + $0x132] sm:$0xff] %v4550_v35  ;;  %178 = vst [vmem:[#allocation2 + $0x142] sm:$0xff] %v4553_v36  ;;  %v6202_v5 = vld [vmem:[#allocation2 + $0x21] sm:$0xff] }
  0x6a   :  { %179 = vst [vmem:[#allocation2 + $0x152] sm:$0xff] %v4554_v38  ;;  %4876 = vmatmul.mubr.bf16.vlgmr.msra.gmra.mrb[0].mxu0 %v305_v45  ;;  %v6209_v11 = vld [vmem:[#allocation2 + $0x31] sm:$0xff]  ;;  %v6211_v12 = vld [vmem:[#allocation2 + $0x41] sm:$0xff]  ;;  %vm6228_vm1 = vmpackc.low %vm182_vm0, %vm182_vm0  ;;  %v5909_v20 = vpack.c.bf16 %v6202_v5, %v184_v3 }
  0x6b   :  { %4892 = vmatpush3.bf16.msra.mxu0 %v5731_v42  ;;  %4879 = vmatprep.mubr.bf16.mxu0 %v306_v46  ;;  %v6213_v13 = vld [vmem:[#allocation2 + $0x20] sm:$0xff]  ;;  %v6215_v14 = vld [vmem:[#allocation2 + $0x30] sm:$0xff] }
  0x6c   :  { %4893 = vmatprep.subr.bf16.mxu0 %v5732_v47  ;;  %v6217_v15 = vld [vmem:[#allocation2 + $0x51] sm:$0xff]  ;;  %v6219_v16 = vld [vmem:[#allocation2 + $0x61] sm:$0xff]  ;;  %v218_v21 = vsel %vm182_vm0, %v6209_v11, %v6213_v13  ;;  %v219_v22 = vsel %vm182_vm0, %v6211_v12, %v6215_v14 }
  0x6d   :  { %v6221_v17 = vld [vmem:[#allocation2 + $0x40] sm:$0xff]  ;;  %v6223_v18 = vld [vmem:[#allocation2 + $0x50] sm:$0xff]  ;;  %v233_v26 = vpack.c.bf16 %v219_v22, %v218_v21 }
  0x6e   :  { %v220_v24 = vsel %vm182_vm0, %v6217_v15, %v6221_v17  ;;  %v221_v25 = vsel %vm182_vm0, %v6219_v16, %v6223_v18  ;;  %v6251_v28 = vld [vmem:[#allocation2 + $0x71] sm:$0xff]  ;;  %v6253_v30 = vld [vmem:[#allocation2 + $0x81] sm:$0xff] }
  0x6f   :  { %4894 = vmatpush3.bf16.msra.mxu0 %v5732_v47  ;;  %v234_v29 = vpack.c.bf16 %v221_v25, %v220_v24  ;;  %v6255_v31 = vld [vmem:[#allocation2 + $0x60] sm:$0xff]  ;;  %v6257_v32 = vld [vmem:[#allocation2 + $0x70] sm:$0xff] }
  0x70   :  { %4895 = vmatprep.subr.bf16.mxu0 %v5733_v52  ;;  %v6259_v34 = vld [vmem:[#allocation2 + $0xe1] sm:$0xff]  ;;  %v222_v35 = vsel %vm182_vm0, %v6251_v28, %v6255_v31  ;;  %v223_v36 = vsel %vm182_vm0, %v6253_v30, %v6257_v32  ;;  %v6269_v40 = vld [vmem:[#allocation2 + $0xf1] sm:$0xff] }
  0x71   :  { %v235_v38 = vpack.c.bf16 %v223_v36, %v222_v35  ;;  %v6271_v41 = vld [vmem:[#allocation2 + $0x101] sm:$0xff]  ;;  %v6275_v43 = vld [vmem:[#allocation2 + $0xf0] sm:$0xff]  ;;  %v5912_v48 = vpack.c.bf16 %v6259_v34, %v192_v33 }
  0x72   :  { %4880 = vmatmul.mubr.bf16.gmra.mrb[4].mxu0 %v307_v55  ;;  %v6273_v42 = vld [vmem:[#allocation2 + $0xe0] sm:$0xff]  ;;  %v6277_v44 = vld [vmem:[#allocation2 + $0x111] sm:$0xff]  ;;  %v227_v50 = vsel %vm182_vm0, %v6271_v41, %v6275_v43  ;;  %v5744_v55 = vld [vmem:[#allocation6 + $0xa8] sm:$0xff]  }
  0x73   :  { %4896 = vmatpush3.bf16.msra.mxu0 %v5733_v52  ;;  %4883 = vmatprep.mubr.bf16.mxu0 %v308_v56  ;;  %v6279_v45 = vld [vmem:[#allocation2 + $0x121] sm:$0xff]  ;;  %v6283_v47 = vld [vmem:[#allocation2 + $0x110] sm:$0xff]  ;;  %v226_v49 = vsel %vm182_vm0, %v6269_v40, %v6273_v42 }
  0x74   :  { %4897 = vmatprep.subr.bf16.mxu0 %v5734_v57  ;;  %v6281_v46 = vld [vmem:[#allocation2 + $0x100] sm:$0xff]  ;;  %v229_v53 = vsel %vm182_vm0, %v6279_v45, %v6283_v47  ;;  %v237_v54 = vpack.c.bf16 %v227_v50, %v226_v49  ;;  %v6304_v56 = vld [vmem:[#allocation2 + $0x131] sm:$0xff] }
  0x75   :  { %v228_v52 = vsel %vm182_vm0, %v6277_v44, %v6281_v46  ;;  %v6308_v58 = vld [vmem:[#allocation2 + $0x120] sm:$0xff]  ;;  %v6310_v59 = vld [vmem:[#allocation2 + $0x130] sm:$0xff] }
  0x76   :  { %v6312_v62 = vld [vmem:[#allocation2 + $0x23] sm:$0xff]  ;;  %v6327_v19 = vld [vmem:[#allocation2 + $0x33] sm:$0xff] }
  0x77   :  { %4898 = vmatpush3.bf16.msra.mxu0 %v5734_v57  ;;  %v6306_v57 = vld [vmem:[#allocation2 + $0x141] sm:$0xff]  ;;  %v6333_v22 = vld [vmem:[#allocation2 + $0x34] sm:$0xff] }
  0x78   :  { %4899 = vmatprep.subr.bf16.mxu0 %v5735_v60  ;;  %v231_v3 = vsel %vm182_vm0, %v6306_v57, %v6310_v59  ;;  %v6331_v21 = vld [vmem:[#allocation2 + $0x24] sm:$0xff]  ;;  %v6335_v24 = vld [vmem:[#allocation2 + $0x53] sm:$0xff] }
  0x79   :  { %v6337_v25 = vld [vmem:[#allocation2 + $0x63] sm:$0xff] }
  0x7a   :  { %4884 = vmatmul.mubr.bf16.gmra.mrb[8].mxu0 %v309_v63  ;;  %v635_v63 = vld [vmem:[#allocation2 + $0x4] sm:$0xff] }
  0x7b   :  { %4900 = vmatpush3.bf16.msra.mxu0 %v5735_v60  ;;  %4887 = vmatprep.mubr.bf16.mxu0 %v310_v0  ;;  %v238_v60 = vpack.c.bf16 %v229_v53, %v228_v52  ;;  %v636_v0 = vld [vmem:[#allocation2 + $0x14] sm:$0xff]  ;;  %v651_v7 = vsel %vm182_vm0, %v619_v61, %v635_v63  ;;  %v5747_v35 = vld [vmem:[#allocation6 + $0xc0] sm:$0xff]  }
  0x7c   :  { %4901 = vmatprep.subr.bf16.mxu0 %v5736_v2  ;;  %v6361_v49 = vld [vmem:[#allocation2 + $0x83] sm:$0xff]  ;;  %v627_v53 = vld [vmem:[#allocation2 + $0xd3] sm:$0xff] }
  0x7d   :  { %v6363_v50 = vld [vmem:[#allocation2 + $0x64] sm:$0xff] }
  0x7f   :  { %4902 = vmatpush3.bf16.msra.mxu0 %v5736_v2  ;;  %v230_v2 = vsel %vm182_vm0, %v6304_v56, %v6308_v58 }
  0x80   :  { %4903 = vmatprep.subr.bf16.mxu0 %v5737_v8 }
  0x82   :  { %4888 = vmatmul.mubr.bf16.gmra.mrb[12].mxu0 %v311_v9  ;;  %v239_v9 = vpack.c.bf16 %v231_v3, %v230_v2 }
  0x83   :  { %4904 = vmatpush3.bf16.msra.mxu0 %v5737_v8  ;;  %5910 = vmatprep.mubr.msk.bf16.mxu0 %vm6228_vm1, %v5909_v20  ;;  %v652_v8 = vsel %vm182_vm0, %v6312_v62, %v636_v0  ;;  %v6329_v20 = vld [vmem:[#allocation2 + $0x43] sm:$0xff]  ;;  %v5749_v0 = vld [vmem:[#allocation6 + $0xd0] sm:$0xff]  }
  0x84   :  { %4905 = vmatprep.subr.bf16.mxu0 %v5738_v10  ;;  %v654_v33 = vsel %vm182_vm0, %v6329_v20, %v6333_v22 }
  0x87   :  { %4906 = vmatpush3.bf16.msra.mxu0 %v5738_v10  ;;  %v5746_v10 = vld [vmem:[#allocation6 + $0xb8] sm:$0xff]  }
  0x88   :  { %4923 = vmatprep.subr.bf16.mxu0 %v5739_v23 }
  0x8a   :  { %4908 = vmatmul.mubr.bf16.vlgmr.msra.gmra.mrb[0].mxu0 %v233_v26  ;;  %v6339_v26 = vld [vmem:[#allocation2 + $0x44] sm:$0xff] }
  0x8b   :  { %4924 = vmatpush3.bf16.msra.mxu0 %v5739_v23  ;;  %4911 = vmatprep.mubr.bf16.mxu0 %v234_v29  ;;  %v667_v23 = vpack.c.bf16 %v652_v8, %v651_v7  ;;  %v653_v29 = vsel %vm182_vm0, %v6327_v19, %v6331_v21  ;;  %v655_v36 = vsel %vm182_vm0, %v6335_v24, %v6339_v26  ;;  %v5750_v7 = vld [vmem:[#allocation6 + $0xd8] sm:$0xff]  }
  0x8c   :  { %4925 = vmatprep.subr.bf16.mxu0 %v5740_v27  ;;  %v6382_v8 = vld [vmem:[#allocation2 + $0xf3] sm:$0xff] }
  0x8f   :  { %4926 = vmatpush3.bf16.msra.mxu0 %v5740_v27  ;;  %v6341_v27 = vld [vmem:[#allocation2 + $0x54] sm:$0xff] }
  0x90   :  { %4927 = vmatprep.subr.bf16.mxu0 %v5741_v37 }
  0x92   :  { %4912 = vmatmul.mubr.bf16.gmra.mrb[4].mxu0 %v235_v38  ;;  %v668_v38 = vpack.c.bf16 %v654_v33, %v653_v29  ;;  %v6390_v33 = vld [vmem:[#allocation2 + $0x113] sm:$0xff] }
  0x93   :  { %4928 = vmatpush3.bf16.msra.mxu0 %v5741_v37  ;;  %5913 = vmatprep.mubr.msk.bf16.mxu0 %vm6228_vm1, %v5912_v48  ;;  %v656_v37 = vsel %vm182_vm0, %v6337_v25, %v6341_v27  ;;  %v6359_v48 = vld [vmem:[#allocation2 + $0x73] sm:$0xff] }
  0x94   :  { %4929 = vmatprep.subr.bf16.mxu0 %v5742_v39  ;;  %v669_v52 = vpack.c.bf16 %v656_v37, %v655_v36  ;;  %v657_v61 = vsel %vm182_vm0, %v6359_v48, %v6363_v50  ;;  %v6394_v36 = vld [vmem:[#allocation2 + $0x104] sm:$0xff]  ;;  %v6396_v37 = vld [vmem:[#allocation2 + $0x114] sm:$0xff] }
  0x97   :  { %4930 = vmatpush3.bf16.msra.mxu0 %v5742_v39  ;;  %v5748_v39 = vld [vmem:[#allocation6 + $0xc8] sm:$0xff]  }
  0x98   :  { %4931 = vmatprep.subr.bf16.mxu0 %v5743_v51 }
  0x9a   :  { %4916 = vmatmul.mubr.bf16.gmra.mrb[8].mxu0 %v237_v54  ;;  %v6367_v54 = vld [vmem:[#allocation2 + $0xe3] sm:$0xff] }
  0x9b   :  { %4932 = vmatpush3.bf16.msra.mxu0 %v5743_v51  ;;  %4919 = vmatprep.mubr.bf16.mxu0 %v238_v60  ;;  %v6365_v51 = vld [vmem:[#allocation2 + $0x74] sm:$0xff] }
  0x9c   :  { %4933 = vmatprep.subr.bf16.mxu0 %v5744_v55  ;;  %v644_v60 = vld [vmem:[#allocation2 + $0xd4] sm:$0xff]  ;;  %v658_v63 = vsel %vm182_vm0, %v6361_v49, %v6365_v51 }
  0x9d   :  { %v660_v3 = vsel %vm182_vm0, %v6367_v54, %v644_v60 }
  0x9f   :  { %4934 = vmatpush3.bf16.msra.mxu0 %v5744_v55  ;;  %v643_v55 = vld [vmem:[#allocation2 + $0xc4] sm:$0xff] }
  0xa0   :  { %4935 = vmatprep.subr.bf16.mxu0 %v5745_v6  ;;  %v659_v2 = vsel %vm182_vm0, %v627_v53, %v643_v55  ;;  %v663_v53 = vsel %vm182_vm0, %v6390_v33, %v6394_v36 }
  0xa1   :  { %v671_v29 = vpack.c.bf16 %v660_v3, %v659_v2  ;;  %v6418_v2 = vld [vmem:[#allocation2 + $0x124] sm:$0xff] }
  0xa2   :  { %4920 = vmatmul.mubr.bf16.gmra.mrb[12].mxu0 %v239_v9  ;;  %v6384_v9 = vld [vmem:[#allocation2 + $0x103] sm:$0xff] }
  0xa3   :  { %4936 = vmatpush3.bf16.msra.mxu0 %v5745_v6  ;;  %4939 = vmatprep.mubr.bf16.mxu0 %v667_v23  ;;  %v670_v6 = vpack.c.bf16 %v658_v63, %v657_v61  ;;  %v6388_v23 = vld [vmem:[#allocation2 + $0xf4] sm:$0xff]  ;;  %v5752_v61 = vld [vmem:[#allocation6 + $0xe8] sm:$0xff]  }
  0xa4   :  { %4937 = vmatprep.subr.bf16.mxu0 %v5746_v10  ;;  %v6414_v63 = vld [vmem:[#allocation2 + $0x133] sm:$0xff] }
  0xa7   :  { %4938 = vmatpush3.bf16.msra.mxu0 %v5746_v10  ;;  %v6386_v10 = vld [vmem:[#allocation2 + $0xe4] sm:$0xff] }
  0xa8   :  { %4955 = vmatprep.subr.bf16.mxu0 %v5747_v35 }
  0xaa   :  { %4940 = vmatmul.mubr.bf16.vlgmr.msra.gmra.mrb[0].mxu0 %v668_v38  ;;  %v661_v38 = vsel %vm182_vm0, %v6382_v8, %v6386_v10 }
  0xab   :  { %4956 = vmatpush3.bf16.msra.mxu0 %v5747_v35  ;;  %4943 = vmatprep.mubr.bf16.mxu0 %v669_v52  ;;  %v6392_v35 = vld [vmem:[#allocation2 + $0x123] sm:$0xff] }
  0xac   :  { %4957 = vmatprep.subr.bf16.mxu0 %v5748_v39  ;;  %v5751_v52 = vld [vmem:[#allocation6 + $0xe0] sm:$0xff]   ;;  %v664_v55 = vsel %vm182_vm0, %v6392_v35, %v6396_v37 }
  0xad   :  { %v673_v3 = vpack.c.bf16 %v664_v55, %v663_v53 }
  0xaf   :  { %4958 = vmatpush3.bf16.msra.mxu0 %v5748_v39  ;;  %v662_v39 = vsel %vm182_vm0, %v6384_v9, %v6388_v23 }
  0xb0   :  { %4959 = vmatprep.subr.bf16.mxu0 %v5749_v0  ;;  %v672_v60 = vpack.c.bf16 %v662_v39, %v661_v38  ;;  %v5753_v39 = vld [vmem:[#allocation6 + $0xf0] sm:$0xff]  }
  0xb2   :  { %4944 = vmatmul.mubr.bf16.gmra.mrb[4].mxu0 %v670_v6  ;;  %v6420_v6 = vld [vmem:[#allocation2 + $0x134] sm:$0xff] }
  0xb3   :  { %4960 = vmatpush3.bf16.msra.mxu0 %v5749_v0  ;;  %4947 = vmatprep.mubr.bf16.mxu0 %v671_v29  ;;  %v6416_v0 = vld [vmem:[#allocation2 + $0x143] sm:$0xff]  ;;  %v665_v29 = vsel %vm182_vm0, %v6414_v63, %v6418_v2 }
  0xb4   :  { %4961 = vmatprep.subr.bf16.mxu0 %v5750_v7  ;;  %v666_v38 = vsel %vm182_vm0, %v6416_v0, %v6420_v6 }
  0xb5   :  { %v674_v53 = vpack.c.bf16 %v666_v38, %v665_v29  ;;  %v5756_v29 = vld [vmem:[#allocation6 + $0x108] sm:$0xff]   ;;  %v894_v38 = vsel %vm182_vm0, %v6269_v40, %v6275_v43  ;;  %v897_v40 = vsel %vm182_vm0, %v6279_v45, %v6308_v58  ;;  %v898_v43 = vsel %vm182_vm0, %v6304_v56, %v6310_v59 }
  0xb7   :  { %4962 = vmatpush3.bf16.msra.mxu0 %v5750_v7  ;;  %v885_v7 = vsel %vm182_vm0, %v6202_v5, %v6213_v13  ;;  %v888_v5 = vsel %vm182_vm0, %v6217_v15, %v6223_v18  ;;  %v5755_v13 = vld [vmem:[#allocation6 + $0x100] sm:$0xff]   ;;  %v6458_v18 = vld [vmem:[#allocation2 + $0x90] sm:$0xff] }
  0xb8   :  { %4963 = vmatprep.subr.bf16.mxu0 %v5751_v52 }
  0xba   :  { %4948 = vmatmul.mubr.bf16.gmra.mrb[8].mxu0 %v672_v60  ;;  %v5754_v60 = vld [vmem:[#allocation6 + $0xf8] sm:$0xff]  }
  0xbb   :  { %4964 = vmatpush3.bf16.msra.mxu0 %v5751_v52  ;;  %4951 = vmatprep.mubr.bf16.mxu0 %v673_v3  ;;  %v886_v52 = vsel %vm182_vm0, %v6209_v11, %v6215_v14  ;;  %v887_v3 = vsel %vm182_vm0, %v6211_v12, %v6221_v17  ;;  %v889_v11 = vsel %vm182_vm0, %v6219_v16, %v6255_v31  ;;  %v6454_v12 = vld [vmem:[#allocation2 + $0x91] sm:$0xff]  ;;  %v6456_v17 = vld [vmem:[#allocation2 + $0x80] sm:$0xff] }
  0xbc   :  { %4965 = vmatprep.subr.bf16.mxu0 %v5752_v61  ;;  %v901_v55 = vpack.c.bf16 %v886_v52, %v885_v7  ;;  %v890_v14 = vsel %vm182_vm0, %v6251_v28, %v6257_v32  ;;  %v891_v16 = vsel %vm182_vm0, %v6253_v30, %v6456_v17  ;;  %v892_v28 = vsel %vm182_vm0, %v6454_v12, %v6458_v18  ;;  %v5757_v31 = vld [vmem:[#allocation6 + $0x110] sm:$0xff]   ;;  %v5758_v7 = vld [vmem:[#allocation6 + $0x118] sm:$0xff]  }
  0xbd   :  { %v903_v15 = vpack.c.bf16 %v890_v14, %v889_v11  ;;  %v893_v32 = vsel %vm182_vm0, %v6259_v34, %v6273_v42  ;;  %v895_v52 = vsel %vm182_vm0, %v6271_v41, %v6281_v46  ;;  %v896_v34 = vsel %vm182_vm0, %v6277_v44, %v6283_v47  ;;  %v5759_v42 = vld [vmem:[#allocation6 + $0x120] sm:$0xff]   ;;  %v6492_v41 = vld [vmem:[#allocation2 + $0x151] sm:$0xff]  ;;  %v5764_v14 = vld [vmem:[#allocation3 + $0x8] sm:$0xff] }
  0xbe   :  { %v905_v30 = vpack.c.bf16 %v894_v38, %v893_v32  ;;  %v6494_v46 = vld [vmem:[#allocation2 + $0x140] sm:$0xff]  ;;  %v907_v44 = vpack.c.bf16 %v898_v43, %v897_v40  ;;  %v6496_v47 = vld [vmem:[#allocation2 + $0x150] sm:$0xff]  ;;  %v5772_v32 = vld [vmem:[#allocation3 + $0x28] sm:$0xff]  ;;  %v1323_v43 = vsel %vm182_vm0, %v6329_v20, %v6339_v26 }
  0xbf   :  { %4966 = vmatpush3.bf16.msra.mxu0 %v5752_v61  ;;  %v902_v61 = vpack.c.bf16 %v888_v5, %v887_v3  ;;  %v899_v45 = vsel %vm182_vm0, %v6306_v57, %v6494_v46  ;;  %v900_v56 = vsel %vm182_vm0, %v6492_v41, %v6496_v47  ;;  %v5763_v5 = vld [vmem:[#allocation3] sm:$0xff]  ;;  %v5766_v57 = vld [vmem:[#allocation6 + $0x148] sm:$0xff]   ;;  %v5775_v38 = vld [vmem:[#allocation3 + $0x30] sm:$0xff] }
  0xc0   :  { %4967 = vmatprep.subr.bf16.mxu0 %v5753_v39  ;;  %v908_v3 = vpack.c.bf16 %v900_v56, %v899_v45  ;;  %v5765_v11 = vld [vmem:[#allocation6 + $0x140] sm:$0xff]   ;;  %v5778_v40 = vld [vmem:[#allocation6 + $0x178] sm:$0xff]   ;;  %v5780_v20 = vld [vmem:[#allocation6 + $0x188] sm:$0xff]  }
  0xc1   :  { %v5782_v56 = vld [vmem:[#allocation6 + $0x198] sm:$0xff]  }
  0xc2   :  { %4952 = vmatmul.mubr.bf16.gmra.mrb[12].mxu0 %v674_v53  ;;  %v906_v53 = vpack.c.bf16 %v896_v34, %v895_v52  ;;  %v1322_v52 = vsel %vm182_vm0, %v6327_v19, %v6333_v22  ;;  %v5776_v34 = vld [vmem:[#allocation3 + $0x38] sm:$0xff]  ;;  %v5779_v19 = vld [vmem:[#allocation6 + $0x180] sm:$0xff]   ;;  %v1326_v22 = vsel %vm182_vm0, %v6359_v48, %v6365_v51  ;;  %v1329_v51 = vsel %vm182_vm0, %v6367_v54, %v6386_v10 }
  0xc3   :  { %4968 = vmatpush3.bf16.msra.mxu0 %v5753_v39  ;;  %4971 = vmatprep.mubr.bf16.mxu0 %v901_v55  ;;  %v904_v39 = vpack.c.bf16 %v892_v28, %v891_v16  ;;  %v5760_v55 = vld [vmem:[#allocation6 + $0x128] sm:$0xff]   ;;  %v5771_v16 = vld [vmem:[#allocation3 + $0x20] sm:$0xff]  ;;  %v5770_v28 = vld [vmem:[#allocation6 + $0x158] sm:$0xff]   ;;  %v1332_v54 = vsel %vm182_vm0, %v6390_v33, %v6396_v37  ;;  %v1333_v10 = vsel %vm182_vm0, %v6392_v35, %v6418_v2 }
  0xc4   :  { %4969 = vmatprep.subr.bf16.mxu0 %v5754_v60  ;;  %v6570_v33 = vld [vmem:[#allocation2 + $0x144] sm:$0xff]  ;;  %v6572_v37 = vld [vmem:[#allocation2 + $0x154] sm:$0xff] }
  0xc5   :  { %v1335_v35 = vsel %vm182_vm0, %v6416_v0, %v6570_v33  ;;  %v5785_v2 = vld [vmem:[#allocation6 + $0x1b0] sm:$0xff]  }
  0xc7   :  { %4970 = vmatpush3.bf16.msra.mxu0 %v5754_v60  ;;  %v5761_v60 = vld [vmem:[#allocation6 + $0x130] sm:$0xff]  }
  0xc8   :  { %4987 = vmatprep.subr.bf16.mxu0 %v5755_v13 }
  0xca   :  { %4972 = vmatmul.mubr.bf16.vlgmr.msra.gmra.mrb[0].mxu0 %v902_v61  ;;  %v5767_v61 = vld [vmem:[#allocation3 + $0x10] sm:$0xff] }
  0xcb   :  { %4988 = vmatpush3.bf16.msra.mxu0 %v5755_v13  ;;  %4975 = vmatprep.mubr.bf16.mxu0 %v903_v15  ;;  %v5762_v13 = vld [vmem:[#allocation6 + $0x138] sm:$0xff]  }
  0xcc   :  { %4989 = vmatprep.subr.bf16.mxu0 %v5756_v29  ;;  %v5768_v15 = vld [vmem:[#allocation3 + $0x18] sm:$0xff] }
  0xcf   :  { %4990 = vmatpush3.bf16.msra.mxu0 %v5756_v29  ;;  %v5769_v29 = vld [vmem:[#allocation6 + $0x150] sm:$0xff]  }
  0xd0   :  { %4991 = vmatprep.subr.bf16.mxu0 %v5757_v31 }
  0xd2   :  { %4976 = vmatmul.mubr.bf16.gmra.mrb[4].mxu0 %v904_v39  ;;  %v5774_v39 = vld [vmem:[#allocation6 + $0x168] sm:$0xff]  }
  0xd3   :  { %4992 = vmatpush3.bf16.msra.mxu0 %v5757_v31  ;;  %4979 = vmatprep.mubr.bf16.mxu0 %v905_v30  ;;  %v5773_v31 = vld [vmem:[#allocation6 + $0x160] sm:$0xff]   ;;  %v5777_v30 = vld [vmem:[#allocation6 + $0x170] sm:$0xff]  }
  0xd4   :  { %4993 = vmatprep.subr.bf16.mxu0 %v5758_v7 }
  0xd7   :  { %4994 = vmatpush3.bf16.msra.mxu0 %v5758_v7  ;;  %v1321_v7 = vsel %vm182_vm0, %v6312_v62, %v6331_v21  ;;  %v1324_v62 = vsel %vm182_vm0, %v6335_v24, %v6341_v27  ;;  %v1325_v21 = vsel %vm182_vm0, %v6337_v25, %v6363_v50  ;;  %v6532_v24 = vld [vmem:[#allocation2 + $0x84] sm:$0xff]  ;;  %v6534_v27 = vld [vmem:[#allocation2 + $0x94] sm:$0xff] }
  0xd8   :  { %4995 = vmatprep.subr.bf16.mxu0 %v5759_v42  ;;  %v1339_v26 = vpack.c.bf16 %v1326_v22, %v1325_v21  ;;  %v1327_v25 = vsel %vm182_vm0, %v6361_v49, %v6532_v24  ;;  %v5781_v50 = vld [vmem:[#allocation6 + $0x190] sm:$0xff]   ;;  %v6596_v21 = vld [vmem:[#allocation2] sm:$0xff] }
  0xd9   :  { %v5789_v22 = vld [vmem:[#allocation6 + $0x1d0] sm:$0xff]  }
  0xda   :  { %4980 = vmatmul.mubr.bf16.gmra.mrb[8].mxu0 %v906_v53  ;;  %v1338_v53 = vpack.c.bf16 %v1324_v62, %v1323_v43  ;;  %v5788_v62 = vld [vmem:[#allocation6 + $0x1c8] sm:$0xff]  }
  0xdb   :  { %4996 = vmatpush3.bf16.msra.mxu0 %v5759_v42  ;;  %4983 = vmatprep.mubr.bf16.mxu0 %v907_v44  ;;  %v1337_v42 = vpack.c.bf16 %v1322_v52, %v1321_v7  ;;  %v1330_v44 = vsel %vm182_vm0, %v6382_v8, %v6388_v23  ;;  %v5783_v8 = vld [vmem:[#allocation6 + $0x1a0] sm:$0xff]   ;;  %v1334_v23 = vsel %vm182_vm0, %v6414_v63, %v6420_v6  ;;  %v5887_v6 = vld [vmem:[#allocation2 + $0x31] sm:$0xff] }
  0xdc   :  { %4997 = vmatprep.subr.bf16.mxu0 %v5760_v55  ;;  %v1341_v49 = vpack.c.bf16 %v1330_v44, %v1329_v51  ;;  %v5895_v7 = vld [vmem:[#allocation2 + $0x71] sm:$0xff] }
  0xdd   :  { %v1561_v52 = vsel %vm182_vm0, %v5895_v7, %v6456_v17  ;;  %v1563_v17 = vsel %vm182_vm0, %v6454_v12, %v6596_v21  ;;  %v5790_v12 = vld [vmem:[#allocation6 + $0x1d8] sm:$0xff]   ;;  %v5796_v7 = vld [vmem:[#allocation6 + $0x208] sm:$0xff]  }
  0xdf   :  { %4998 = vmatpush3.bf16.msra.mxu0 %v5760_v55  ;;  %v6530_v55 = vld [vmem:[#allocation2 + $0x93] sm:$0xff] }
  0xe0   :  { %4999 = vmatprep.subr.bf16.mxu0 %v5761_v60  ;;  %v1328_v48 = vsel %vm182_vm0, %v6530_v55, %v6534_v27 }
  0xe1   :  { %v1340_v45 = vpack.c.bf16 %v1328_v48, %v1327_v25  ;;  %v5900_v25 = vld [vmem:[#allocation2 + $0x101] sm:$0xff]  ;;  %v5901_v48 = vld [vmem:[#allocation2 + $0x110] sm:$0xff] }
  0xe2   :  { %4984 = vmatmul.mubr.bf16.gmra.mrb[12].mxu0 %v908_v3 }
  0xe3   :  { %5000 = vmatpush3.bf16.msra.mxu0 %v5761_v60  ;;  %5003 = vmatprep.mubr.bf16.mxu0 %v5763_v5  ;;  %v1331_v60 = vsel %vm182_vm0, %v6384_v9, %v6394_v36  ;;  %v5784_v9 = vld [vmem:[#allocation6 + $0x1a8] sm:$0xff]   ;;  %v1343_v36 = vpack.c.bf16 %v1334_v23, %v1333_v10  ;;  %v6568_v5 = vld [vmem:[#allocation2 + $0x153] sm:$0xff] }
  0xe4   :  { %5001 = vmatprep.subr.bf16.mxu0 %v5762_v13  ;;  %v1342_v3 = vpack.c.bf16 %v1332_v54, %v1331_v60  ;;  %v1336_v63 = vsel %vm182_vm0, %v6568_v5, %v6572_v37  ;;  %v5791_v54 = vld [vmem:[#allocation6 + $0x1e0] sm:$0xff]  }
  0xe5   :  { %v5905_v23 = vld [vmem:[#allocation2 + $0x141] sm:$0xff] }
  0xe7   :  { %5002 = vmatpush3.bf16.msra.mxu0 %v5762_v13  ;;  %v5888_v13 = vld [vmem:[#allocation2 + $0x40] sm:$0xff] }
  0xe8   :  { %5019 = vmatprep.subr.bf16.mxu0 %v5765_v11 }
  0xea   :  { %5004 = vmatmul.mubr.bf16.vlgmr.msra.gmra.mrb[0].mxu0 %v5764_v14  ;;  %v5889_v14 = vld [vmem:[#allocation2 + $0x41] sm:$0xff] }
  0xeb   :  { %5020 = vmatpush3.bf16.msra.mxu0 %v5765_v11  ;;  %5007 = vmatprep.mubr.bf16.mxu0 %v5767_v61  ;;  %v1557_v11 = vsel %vm182_vm0, %v5887_v6, %v5888_v13  ;;  %v5793_v6 = vld [vmem:[#allocation6 + $0x1f0] sm:$0xff]  }
  0xec   :  { %5021 = vmatprep.subr.bf16.mxu0 %v5766_v57 }
  0xef   :  { %5022 = vmatpush3.bf16.msra.mxu0 %v5766_v57  ;;  %v5890_v57 = vld [vmem:[#allocation2 + $0x50] sm:$0xff] }
  0xf0   :  { %5023 = vmatprep.subr.bf16.mxu0 %v5769_v29  ;;  %v1558_v61 = vsel %vm182_vm0, %v5889_v14, %v5890_v57 }
  0xf1   :  { %v1573_v0 = vpack.c.bf16 %v1558_v61, %v1557_v11  ;;  %v5794_v61 = vld [vmem:[#allocation6 + $0x1f8] sm:$0xff]  }
  0xf2   :  { %5008 = vmatmul.mubr.bf16.gmra.mrb[4].mxu0 %v5768_v15  ;;  %v5786_v15 = vld [vmem:[#allocation6 + $0x1b8] sm:$0xff]  }
  0xf3   :  { %5024 = vmatpush3.bf16.msra.mxu0 %v5769_v29  ;;  %5011 = vmatprep.mubr.bf16.mxu0 %v5771_v16  ;;  %v1344_v29 = vpack.c.bf16 %v1336_v63, %v1335_v35  ;;  %v5891_v16 = vld [vmem:[#allocation2 + $0x51] sm:$0xff]  ;;  %v1539_v35 = vld [vmem:[#allocation2 + $0x161] sm:$0xff] }
  0xf4   :  { %5025 = vmatprep.subr.bf16.mxu0 %v5770_v28  ;;  %v1759_v63 = vld [vmem:[#allocation2 + $0x32] sm:$0xff] }
  0xf7   :  { %5026 = vmatpush3.bf16.msra.mxu0 %v5770_v28  ;;  %v5892_v28 = vld [vmem:[#allocation2 + $0x60] sm:$0xff] }
  0xf8   :  { %5027 = vmatprep.subr.bf16.mxu0 %v5773_v31 }
  0xfa   :  { %5012 = vmatmul.mubr.bf16.gmra.mrb[8].mxu0 %v5772_v32  ;;  %v5893_v32 = vld [vmem:[#allocation2 + $0x61] sm:$0xff] }
  0xfb   :  { %5028 = vmatpush3.bf16.msra.mxu0 %v5773_v31  ;;  %5015 = vmatprep.mubr.bf16.mxu0 %v5775_v38  ;;  %v1559_v31 = vsel %vm182_vm0, %v5891_v16, %v5892_v28  ;;  %v5894_v38 = vld [vmem:[#allocation2 + $0x70] sm:$0xff]  ;;  %v5795_v28 = vld [vmem:[#allocation6 + $0x200] sm:$0xff]  }
  0xfc   :  { %5029 = vmatprep.subr.bf16.mxu0 %v5774_v39 }
  0xff   :  { %5030 = vmatpush3.bf16.msra.mxu0 %v5774_v39  ;;  %v1560_v39 = vsel %vm182_vm0, %v5893_v32, %v5894_v38  ;;  %v5906_v32 = vld [vmem:[#allocation2 + $0x92] sm:$0xff] }
 0x100   :  { %5031 = vmatprep.subr.bf16.mxu0 %v5777_v30 }
 0x102   :  { %5016 = vmatmul.mubr.bf16.gmra.mrb[12].mxu0 %v5776_v34  ;;  %v5896_v34 = vld [vmem:[#allocation2 + $0x81] sm:$0xff] }
 0x103   :  { %5032 = vmatpush3.bf16.msra.mxu0 %v5777_v30  ;;  %5035 = vmatprep.mubr.bf16.mxu0 %v1337_v42  ;;  %v5787_v30 = vld [vmem:[#allocation6 + $0x1c0] sm:$0xff]   ;;  %v1562_v42 = vsel %vm182_vm0, %v5896_v34, %v6458_v18  ;;  %v1782_v34 = vld [vmem:[#allocation2 + $0xb2] sm:$0xff] }
 0x104   :  { %5033 = vmatprep.subr.bf16.mxu0 %v5778_v40  ;;  %v1575_v43 = vpack.c.bf16 %v1562_v42, %v1561_v52  ;;  %v1766_v52 = vld [vmem:[#allocation2 + $0xa2] sm:$0xff]  ;;  %v1767_v42 = vld [vmem:[#allocation2 + $0xf2] sm:$0xff] }
 0x107   :  { %5034 = vmatpush3.bf16.msra.mxu0 %v5778_v40  ;;  %v1574_v40 = vpack.c.bf16 %v1560_v39, %v1559_v31 }
 0x108   :  { %5051 = vmatprep.subr.bf16.mxu0 %v5779_v19 }
 0x10a   :  { %5036 = vmatmul.mubr.bf16.vlgmr.msra.gmra.mrb[0].mxu0 %v1338_v53  ;;  %v5898_v53 = vld [vmem:[#allocation2 + $0xf1] sm:$0xff] }
 0x10b   :  { %5052 = vmatpush3.bf16.msra.mxu0 %v5779_v19  ;;  %5039 = vmatprep.mubr.bf16.mxu0 %v1339_v26  ;;  %v1531_v19 = vld [vmem:[#allocation2 + $0xa1] sm:$0xff] }
 0x10c   :  { %5053 = vmatprep.subr.bf16.mxu0 %v5780_v20  ;;  %v1564_v18 = vsel %vm182_vm0, %v1531_v19, %v6596_v21  ;;  %v1798_v19 = vsel %vm182_vm0, %v1766_v52, %v1782_v34  ;;  %v2017_v34 = vld [vmem:[#allocation2 + $0x104] sm:$0xff] }
 0x10d   :  { %v1576_v51 = vpack.c.bf16 %v1564_v18, %v1563_v17  ;;  %v5797_v17 = vld [vmem:[#allocation6 + $0x210] sm:$0xff]  }
 0x10f   :  { %5054 = vmatpush3.bf16.msra.mxu0 %v5780_v20  ;;  %v5899_v20 = vld [vmem:[#allocation2 + $0x100] sm:$0xff] }
 0x110   :  { %5055 = vmatprep.subr.bf16.mxu0 %v5781_v50  ;;  %v1565_v26 = vsel %vm182_vm0, %v5898_v53, %v5899_v20 }
 0x112   :  { %5040 = vmatmul.mubr.bf16.gmra.mrb[4].mxu0 %v1340_v45  ;;  %v5902_v45 = vld [vmem:[#allocation2 + $0x111] sm:$0xff] }
 0x113   :  { %5056 = vmatpush3.bf16.msra.mxu0 %v5781_v50  ;;  %5043 = vmatprep.mubr.bf16.mxu0 %v1341_v49  ;;  %v1566_v50 = vsel %vm182_vm0, %v5900_v25, %v5901_v48  ;;  %v1567_v49 = vsel %vm182_vm0, %v5902_v45, %v6308_v58  ;;  %v1770_v25 = vld [vmem:[#allocation2 + $0x122] sm:$0xff]  ;;  %v1786_v48 = vld [vmem:[#allocation2 + $0x132] sm:$0xff] }
 0x114   :  { %5057 = vmatprep.subr.bf16.mxu0 %v5782_v56  ;;  %v1577_v44 = vpack.c.bf16 %v1566_v50, %v1565_v26  ;;  %v5798_v26 = vld [vmem:[#allocation6 + $0x218] sm:$0xff]   ;;  %v1772_v50 = vld [vmem:[#allocation2 + $0x142] sm:$0xff] }
 0x115   :  { %v1803_v45 = vsel %vm182_vm0, %v1786_v48, %v1772_v50 }
 0x117   :  { %5058 = vmatpush3.bf16.msra.mxu0 %v5782_v56  ;;  %v5903_v56 = vld [vmem:[#allocation2 + $0x121] sm:$0xff] }
 0x118   :  { %5059 = vmatprep.subr.bf16.mxu0 %v5783_v8  ;;  %v1568_v60 = vsel %vm182_vm0, %v5903_v56, %v6310_v59  ;;  %v1760_v59 = vld [vmem:[#allocation2 + $0x42] sm:$0xff] }
 0x119   :  { %v1791_v13 = vsel %vm182_vm0, %v1759_v63, %v1760_v59 }
 0x11a   :  { %5044 = vmatmul.mubr.bf16.gmra.mrb[8].mxu0 %v1342_v3  ;;  %v1570_v3 = vsel %vm182_vm0, %v5905_v23, %v6496_v47  ;;  %v1572_v47 = vsel %vm182_vm0, %v1539_v35, %v6596_v21  ;;  %v1790_v23 = vld [vmem:[#allocation2 + $0x172] sm:$0xff] }
 0x11b   :  { %5060 = vmatpush3.bf16.msra.mxu0 %v5783_v8  ;;  %5047 = vmatprep.mubr.bf16.mxu0 %v1343_v36  ;;  %v5904_v8 = vld [vmem:[#allocation2 + $0x131] sm:$0xff]  ;;  %v5792_v36 = vld [vmem:[#allocation6 + $0x1e8] sm:$0xff]  }
 0x11c   :  { %5061 = vmatprep.subr.bf16.mxu0 %v5784_v9  ;;  %v1569_v10 = vsel %vm182_vm0, %v5904_v8, %v6494_v46  ;;  %v1571_v46 = vsel %vm182_vm0, %v6492_v41, %v6596_v21  ;;  %v1764_v41 = vld [vmem:[#allocation2 + $0x82] sm:$0xff] }
 0x11d   :  { %v1579_v58 = vpack.c.bf16 %v1570_v3, %v1569_v10  ;;  %v1580_v14 = vpack.c.bf16 %v1572_v47, %v1571_v46  ;;  %v1796_v38 = vsel %vm182_vm0, %v1764_v41, %v5906_v32  ;;  %v1774_v10 = vld [vmem:[#allocation2 + $0x162] sm:$0xff]  ;;  %v1993_v3 = vld [vmem:[#allocation2 + $0x33] sm:$0xff] }
 0x11e   :  { %v1806_v63 = vsel %vm182_vm0, %v1774_v10, %v1790_v23  ;;  %v5808_v23 = vld [vmem:[#allocation8 + $0x28] sm:$0xff]  }
 0x11f   :  { %5062 = vmatpush3.bf16.msra.mxu0 %v5784_v9  ;;  %v1578_v9 = vpack.c.bf16 %v1568_v60, %v1567_v49  ;;  %v5907_v49 = vld [vmem:[#allocation2 + $0x152] sm:$0xff] }
 0x120   :  { %5063 = vmatprep.subr.bf16.mxu0 %v5785_v2  ;;  %v1804_v56 = vsel %vm182_vm0, %v1772_v50, %v5907_v49  ;;  %v1805_v35 = vsel %vm182_vm0, %v5907_v49, %v1774_v10  ;;  %v2024_v49 = vld [vmem:[#allocation2 + $0x174] sm:$0xff] }
 0x121   :  { %v1813_v8 = vpack.c.bf16 %v1804_v56, %v1803_v45  ;;  %v1814_v47 = vpack.c.bf16 %v1806_v63, %v1805_v35  ;;  %v2023_v45 = vld [vmem:[#allocation2 + $0x164] sm:$0xff]  ;;  %v5806_v10 = vld [vmem:[#allocation8 + $0x18] sm:$0xff]  }
 0x122   :  { %5048 = vmatmul.mubr.bf16.gmra.mrb[12].mxu0 %v1344_v29  ;;  %v1762_v29 = vld [vmem:[#allocation2 + $0x62] sm:$0xff]  ;;  %v2039_v56 = vsel %vm182_vm0, %v6568_v5, %v2023_v45 }
 0x123   :  { %5064 = vmatpush3.bf16.msra.mxu0 %v5785_v2  ;;  %5067 = vmatprep.mubr.bf16.mxu0 %v1573_v0  ;;  %v1776_v2 = vld [vmem:[#allocation2 + $0x52] sm:$0xff]  ;;  %v5807_v5 = vld [vmem:[#allocation8 + $0x20] sm:$0xff]  }
 0x124   :  { %5065 = vmatprep.subr.bf16.mxu0 %v5786_v15  ;;  %v1792_v11 = vsel %vm182_vm0, %v1760_v59, %v1776_v2  ;;  %v1778_v0 = vld [vmem:[#allocation2 + $0x72] sm:$0xff] }
 0x125   :  { %v1807_v57 = vpack.c.bf16 %v1792_v11, %v1791_v13  ;;  %v1794_v16 = vsel %vm182_vm0, %v1762_v29, %v1778_v0  ;;  %v1795_v31 = vsel %vm182_vm0, %v1778_v0, %v1764_v41  ;;  %v5801_v59 = vld [vmem:[#allocation6 + $0x230] sm:$0xff]   ;;  %v1998_v0 = vld [vmem:[#allocation2 + $0x83] sm:$0xff] }
 0x126   :  { %v1995_v11 = vld [vmem:[#allocation2 + $0x53] sm:$0xff] }
 0x127   :  { %5066 = vmatpush3.bf16.msra.mxu0 %v5786_v15  ;;  %v1793_v15 = vsel %vm182_vm0, %v1776_v2, %v1762_v29  ;;  %v1997_v29 = vld [vmem:[#allocation2 + $0x73] sm:$0xff] }
 0x128   :  { %5083 = vmatprep.subr.bf16.mxu0 %v5787_v30  ;;  %v1808_v39 = vpack.c.bf16 %v1794_v16, %v1793_v15  ;;  %v2029_v16 = vsel %vm182_vm0, %v1997_v29, %v6532_v24 }
 0x12a   :  { %5068 = vmatmul.mubr.bf16.vlgmr.msra.gmra.mrb[0].mxu0 %v1574_v40  ;;  %v1768_v40 = vld [vmem:[#allocation2 + $0x102] sm:$0xff] }
 0x12b   :  { %5084 = vmatpush3.bf16.msra.mxu0 %v5787_v30  ;;  %5071 = vmatprep.mubr.bf16.mxu0 %v1575_v43  ;;  %v1809_v30 = vpack.c.bf16 %v1796_v38, %v1795_v31  ;;  %v1784_v43 = vld [vmem:[#allocation2 + $0x112] sm:$0xff]  ;;  %v1799_v18 = vsel %vm182_vm0, %v1767_v42, %v1768_v40  ;;  %v2000_v38 = vld [vmem:[#allocation2 + $0xa3] sm:$0xff] }
 0x12c   :  { %5085 = vmatprep.subr.bf16.mxu0 %v5788_v62  ;;  %v2018_v42 = vld [vmem:[#allocation2 + $0x114] sm:$0xff] }
 0x12f   :  { %5086 = vmatpush3.bf16.msra.mxu0 %v5788_v62  ;;  %v1797_v62 = vsel %vm182_vm0, %v5906_v32, %v1766_v52  ;;  %v2002_v52 = vld [vmem:[#allocation2 + $0x103] sm:$0xff] }
 0x130   :  { %5087 = vmatprep.subr.bf16.mxu0 %v5789_v22  ;;  %v1810_v53 = vpack.c.bf16 %v1798_v19, %v1797_v62 }
 0x132   :  { %5072 = vmatmul.mubr.bf16.gmra.mrb[4].mxu0 %v1576_v51  ;;  %v1801_v51 = vsel %vm182_vm0, %v1784_v43, %v1770_v25 }
 0x133   :  { %5088 = vmatpush3.bf16.msra.mxu0 %v5789_v22  ;;  %5075 = vmatprep.mubr.bf16.mxu0 %v1577_v44  ;;  %v1800_v22 = vsel %vm182_vm0, %v1768_v40, %v1784_v43  ;;  %v1802_v44 = vsel %vm182_vm0, %v1770_v25, %v1786_v48  ;;  %v2034_v43 = vsel %vm182_vm0, %v2002_v52, %v2018_v42 }
 0x134   :  { %5089 = vmatprep.subr.bf16.mxu0 %v5790_v12  ;;  %v1811_v20 = vpack.c.bf16 %v1800_v22, %v1799_v18  ;;  %v1812_v60 = vpack.c.bf16 %v1802_v44, %v1801_v51  ;;  %v2004_v18 = vld [vmem:[#allocation2 + $0x123] sm:$0xff] }
 0x135   :  { %v2019_v22 = vld [vmem:[#allocation2 + $0x124] sm:$0xff] }
 0x137   :  { %5090 = vmatpush3.bf16.msra.mxu0 %v5790_v12  ;;  %v5799_v12 = vld [vmem:[#allocation6 + $0x220] sm:$0xff]  }
 0x138   :  { %5091 = vmatprep.subr.bf16.mxu0 %v5791_v54 }
 0x13a   :  { %5076 = vmatmul.mubr.bf16.gmra.mrb[8].mxu0 %v1578_v9  ;;  %v1994_v9 = vld [vmem:[#allocation2 + $0x43] sm:$0xff] }
 0x13b   :  { %5092 = vmatpush3.bf16.msra.mxu0 %v5791_v54  ;;  %5079 = vmatprep.mubr.bf16.mxu0 %v1579_v58  ;;  %v5800_v54 = vld [vmem:[#allocation6 + $0x228] sm:$0xff]  }
 0x13c   :  { %5093 = vmatprep.subr.bf16.mxu0 %v5792_v36  ;;  %v2009_v58 = vld [vmem:[#allocation2 + $0x44] sm:$0xff] }
 0x13d   :  { %v2025_v2 = vsel %vm182_vm0, %v1993_v3, %v2009_v58  ;;  %v5809_v3 = vld [vmem:[#allocation8 + $0x30] sm:$0xff]   ;;  %v4440_v58 = vld [vmem:[%s7161_s2] ss:$0 sm:$0xff] }
 0x13f   :  { %5094 = vmatpush3.bf16.msra.mxu0 %v5792_v36  ;;  %v2010_v36 = vld [vmem:[#allocation2 + $0x54] sm:$0xff] }
 0x140   :  { %5095 = vmatprep.subr.bf16.mxu0 %v5793_v6  ;;  %v2026_v46 = vsel %vm182_vm0, %v1994_v9, %v2010_v36  ;;  %v5810_v9 = vld [vmem:[#allocation8 + $0x38] sm:$0xff]  }
 0x141   :  { %v2041_v13 = vpack.c.bf16 %v2026_v46, %v2025_v2 }
 0x142   :  { %5080 = vmatmul.mubr.bf16.gmra.mrb[12].mxu0 %v1580_v14  ;;  %v1996_v14 = vld [vmem:[#allocation2 + $0x63] sm:$0xff] }
 0x143   :  { %5096 = vmatpush3.bf16.msra.mxu0 %v5793_v6  ;;  %5099 = vmatprep.mubr.bf16.mxu0 %v1807_v57  ;;  %v5802_v6 = vld [vmem:[#allocation6 + $0x238] sm:$0xff]   ;;  %v2011_v57 = vld [vmem:[#allocation2 + $0x64] sm:$0xff] }
 0x144   :  { %5097 = vmatprep.subr.bf16.mxu0 %v5794_v61  ;;  %v2027_v41 = vsel %vm182_vm0, %v1995_v11, %v2011_v57 }
 0x147   :  { %5098 = vmatpush3.bf16.msra.mxu0 %v5794_v61  ;;  %v2012_v61 = vld [vmem:[#allocation2 + $0x74] sm:$0xff] }
 0x148   :  { %5115 = vmatprep.subr.bf16.mxu0 %v5795_v28  ;;  %v2028_v15 = vsel %vm182_vm0, %v1996_v14, %v2012_v61 }
 0x149   :  { %v2042_v31 = vpack.c.bf16 %v2028_v15, %v2027_v41 }
 0x14a   :  { %5100 = vmatmul.mubr.bf16.vlgmr.msra.gmra.mrb[0].mxu0 %v1808_v39  ;;  %v2015_v39 = vld [vmem:[#allocation2 + $0xa4] sm:$0xff] }
 0x14b   :  { %5116 = vmatpush3.bf16.msra.mxu0 %v5795_v28  ;;  %5103 = vmatprep.mubr.bf16.mxu0 %v1809_v30  ;;  %v2030_v28 = vsel %vm182_vm0, %v1998_v0, %v6534_v27  ;;  %v2016_v30 = vld [vmem:[#allocation2 + $0xb4] sm:$0xff]  ;;  %v2031_v24 = vsel %vm182_vm0, %v6530_v55, %v2015_v39 }
 0x14c   :  { %5117 = vmatprep.subr.bf16.mxu0 %v5796_v7  ;;  %v2043_v32 = vpack.c.bf16 %v2030_v28, %v2029_v16  ;;  %v2032_v27 = vsel %vm182_vm0, %v2000_v38, %v2016_v30 }
 0x14d   :  { %v2044_v62 = vpack.c.bf16 %v2032_v27, %v2031_v24 }
 0x14f   :  { %5118 = vmatpush3.bf16.msra.mxu0 %v5796_v7  ;;  %v2001_v7 = vld [vmem:[#allocation2 + $0xf3] sm:$0xff] }
 0x150   :  { %5119 = vmatprep.subr.bf16.mxu0 %v5797_v17  ;;  %v2033_v40 = vsel %vm182_vm0, %v2001_v7, %v2017_v34 }
 0x151   :  { %v2045_v19 = vpack.c.bf16 %v2034_v43, %v2033_v40 }
 0x152   :  { %5104 = vmatmul.mubr.bf16.gmra.mrb[4].mxu0 %v1810_v53  ;;  %v2020_v53 = vld [vmem:[#allocation2 + $0x134] sm:$0xff] }
 0x153   :  { %5120 = vmatpush3.bf16.msra.mxu0 %v5797_v17  ;;  %5107 = vmatprep.mubr.bf16.mxu0 %v1811_v20  ;;  %v2003_v17 = vld [vmem:[#allocation2 + $0x113] sm:$0xff]  ;;  %v2036_v25 = vsel %vm182_vm0, %v2004_v18, %v2020_v53 }
 0x154   :  { %5121 = vmatprep.subr.bf16.mxu0 %v5798_v26  ;;  %v2005_v20 = vld [vmem:[#allocation2 + $0x133] sm:$0xff]  ;;  %v2035_v55 = vsel %vm182_vm0, %v2003_v17, %v2019_v22 }
 0x155   :  { %v2037_v48 = vsel %vm182_vm0, %v2005_v20, %v6570_v33  ;;  %v2046_v51 = vpack.c.bf16 %v2036_v25, %v2035_v55  ;;  %v5803_v33 = vld [vmem:[#allocation8] sm:$0xff]  }
 0x157   :  { %5122 = vmatpush3.bf16.msra.mxu0 %v5798_v26  ;;  %v2006_v26 = vld [vmem:[#allocation2 + $0x143] sm:$0xff] }
 0x158   :  { %5123 = vmatprep.subr.bf16.mxu0 %v5799_v12  ;;  %v2038_v50 = vsel %vm182_vm0, %v2006_v26, %v6572_v37  ;;  %v5804_v37 = vld [vmem:[#allocation8 + $0x8] sm:$0xff]  }
 0x159   :  { %v2047_v44 = vpack.c.bf16 %v2038_v50, %v2037_v48 }
 0x15a   :  { %5108 = vmatmul.mubr.bf16.gmra.mrb[8].mxu0 %v1812_v60 }
 0x15b   :  { %5124 = vmatpush3.bf16.msra.mxu0 %v5799_v12  ;;  %5111 = vmatprep.mubr.bf16.mxu0 %v1813_v8  ;;  %v2008_v12 = vld [vmem:[#allocation2 + $0x163] sm:$0xff]  ;;  %v5805_v8 = vld [vmem:[#allocation8 + $0x10] sm:$0xff]  }
 0x15c   :  { %5125 = vmatprep.subr.bf16.mxu0 %v5800_v54  ;;  %v2040_v60 = vsel %vm182_vm0, %v2008_v12, %v2024_v49 }
 0x15f   :  { %5126 = vmatpush3.bf16.msra.mxu0 %v5800_v54  ;;  %v2048_v54 = vpack.c.bf16 %v2040_v60, %v2039_v56 }
 0x160   :  { %5127 = vmatprep.subr.bf16.mxu0 %v5801_v59 }
 0x162   :  { %5112 = vmatmul.mubr.bf16.gmra.mrb[12].mxu0 %v1814_v47 }
 0x163   :  { %5128 = vmatpush3.bf16.msra.mxu0 %v5801_v59  ;;  %5131 = vmatprep.mubr.bf16.mxu0 %v2041_v13 }
 0x164   :  { %5129 = vmatprep.subr.bf16.mxu0 %v5802_v6 }
 0x167   :  { %5130 = vmatpush3.bf16.msra.mxu0 %v5802_v6 }
 0x168   :  { %5147 = vmatprep.subr.bf16.mxu0 %v6596_v21 }
 0x16a   :  { %5132 = vmatmul.mubr.bf16.vlgmr.msra.gmra.mrb[0].mxu0 %v2042_v31 }
 0x16b   :  { %5135 = vmatprep.mubr.bf16.mxu0 %v2043_v32  ;;  %5148 = vmatpush3.bf16.msra.mxu0 %v5803_v33 }
 0x16c   :  { %5149 = vmatprep.subr.bf16.mxu0 %v6596_v21 }
 0x16f   :  { %5150 = vmatpush3.bf16.msra.mxu0 %v5804_v37 }
 0x170   :  { %5151 = vmatprep.subr.bf16.mxu0 %v6596_v21 }
 0x172   :  { %5136 = vmatmul.mubr.bf16.gmra.mrb[4].mxu0 %v2044_v62 }
 0x173   :  { %5139 = vmatprep.mubr.bf16.mxu0 %v2045_v19  ;;  %5152 = vmatpush3.bf16.msra.mxu0 %v5805_v8 }
 0x174   :  { %5153 = vmatprep.subr.bf16.mxu0 %v6596_v21 }
 0x177   :  { %5154 = vmatpush3.bf16.msra.mxu0 %v5806_v10 }
 0x178   :  { %5155 = vmatprep.subr.bf16.mxu0 %v6596_v21 }
 0x17a   :  { %5140 = vmatmul.mubr.bf16.gmra.mrb[8].mxu0 %v2046_v51 }
 0x17b   :  { %5143 = vmatprep.mubr.bf16.mxu0 %v2047_v44  ;;  %5156 = vmatpush3.bf16.msra.mxu0 %v5807_v5 }
 0x17c   :  { %5157 = vmatprep.subr.bf16.mxu0 %v6596_v21 }
 0x17f   :  { %5158 = vmatpush3.bf16.msra.mxu0 %v5808_v23 }
 0x180   :  { %5159 = vmatprep.subr.bf16.mxu0 %v6596_v21 }
 0x182   :  { %5144 = vmatmul.mubr.bf16.gmra.mrb[12].mxu0 %v2048_v54 }
 0x183   :  { %5160 = vmatpush3.bf16.msra.mxu0 %v5809_v3  ;;  %5163 = vmatprep.mubr.msk.bf16.mxu0 %vm6039_vm2, %v6596_v21 }
 0x184   :  { %5161 = vmatprep.subr.bf16.mxu0 %v6596_v21 }
 0x187   :  { %5162 = vmatpush3.bf16.msra.mxu0 %v5810_v9 }
 0x23d   :  { %v5133_v36 = vpop.f32.mrb[0].mxu0 }
 0x23e   :  { %v2148_v35 = vpop.f32.mrb[1].mxu0  ;;  %v2236_v46 = vadd.f32 %v5133_v36, %v4440_v58 }
 0x23f   :  { %v2234_v63 = vadd.f32 %v4440_v58, %v2148_v35  ;;  %v5134_v59 = vpop.f32.mrb[2].mxu0 }
 0x240   :  { %v2151_v2 = vpop.f32.mrb[3].mxu0  ;;  %v2237_v13 = vadd.f32 %v5134_v59, %v4440_v58  ;;  %v6714_v14 = vmax.f32 %v2236_v46, 0.0 }
 0x241   :  { %v2235_v47 = vadd.f32 %v4440_v58, %v2151_v2  ;;  %v6710_v6 = vmax.f32 %v2234_v63, 0.0 }
 0x242   :  { %v6718_v29 = vmax.f32 %v2237_v13, 0.0 }
 0x243   :  { %7187 = vst [vmem:[#allocation17_spill] sm:$0xff] %v6710_v6  ;;  %v6712_v11 = vmax.f32 %v2235_v47, 0.0 }
 0x244   :  { %7189 = vst [vmem:[#allocation19_spill] sm:$0xff] %v6718_v29 }
 0x245   :  { %7188 = vst [vmem:[#allocation18_spill] sm:$0xff] %v6712_v11  ;;  %v2266_v21 = vadd.f32 %v6712_v11, %v6710_v6  ;;  %v5137_v57 = vpop.f32.mrb[4].mxu0 }
 0x246   :  { %v2164_v61 = vpop.f32.mrb[5].mxu0  ;;  %v2240_v28 = vadd.f32 %v5137_v57, %v4440_v58 }
 0x247   :  { %v2267_v0 = vadd.f32 %v2266_v21, %v6714_v14  ;;  %v2238_v41 = vadd.f32 %v4440_v58, %v2164_v61  ;;  %v5138_v15 = vpop.f32.mrb[6].mxu0 }
 0x248   :  { %v2167_v16 = vpop.f32.mrb[7].mxu0  ;;  %v2241_v30 = vadd.f32 %v5138_v15, %v4440_v58  ;;  %v6727_v52 = vmax.f32 %v2240_v28, 0.0 }
 0x249   :  { %v6721_v31 = vmax.f32 %v2238_v41, 0.0  ;;  %v2268_v32 = vadd.f32 %v2267_v0, %v6718_v29  ;;  %v2239_v38 = vadd.f32 %v4440_v58, %v2167_v16 }
 0x24a   :  { %7192 = vst [vmem:[#allocation22_spill] sm:$0xff] %v6727_v52  ;;  %v6730_v27 = vmax.f32 %v2241_v30, 0.0 }
 0x24b   :  { %7190 = vst [vmem:[#allocation20_spill] sm:$0xff] %v6721_v31  ;;  %v2269_v39 = vadd.f32 %v2268_v32, %v6721_v31  ;;  %v6725_v7 = vmax.f32 %v2239_v38, 0.0 }
 0x24c   :  { %7193 = vst [vmem:[#allocation23_spill] sm:$0xff] %v6730_v27 }
 0x24d   :  { %7191 = vst [vmem:[#allocation21_spill] sm:$0xff] %v6725_v7  ;;  %v2270_v34 = vadd.f32 %v2269_v39, %v6725_v7  ;;  %v5141_v42 = vpop.f32.mrb[8].mxu0 }
 0x24e   :  { %v2180_v24 = vpop.f32.mrb[9].mxu0  ;;  %v2244_v18 = vadd.f32 %v5141_v42, %v4440_v58 }
 0x24f   :  { %v2271_v40 = vadd.f32 %v2270_v34, %v6727_v52  ;;  %v2242_v43 = vadd.f32 %v4440_v58, %v2180_v24  ;;  %v5142_v62 = vpop.f32.mrb[10].mxu0  ;;  %v4441_v34 = vld [vmem:[%s7163_s4] ss:$0 sm:$0xff] }
 0x250   :  { %v2183_v19 = vpop.f32.mrb[11].mxu0  ;;  %v2245_v26 = vadd.f32 %v5142_v62, %v4440_v58  ;;  %v6738_v25 = vmax.f32 %v2244_v18, 0.0 }
 0x251   :  { %v2272_v17 = vadd.f32 %v2271_v40, %v6730_v27  ;;  %v2243_v22 = vadd.f32 %v4440_v58, %v2183_v19  ;;  %v6734_v20 = vmax.f32 %v2242_v43, 0.0 }
 0x252   :  { %7196 = vst [vmem:[#allocation26_spill] sm:$0xff] %v6738_v25  ;;  %v6742_v12 = vmax.f32 %v2245_v26, 0.0 }
 0x253   :  { %v2273_v53 = vrot.slane %v2272_v17, 4  ;;  %7194 = vst [vmem:[#allocation24_spill] sm:$0xff] %v6734_v20  ;;  %v6736_v55 = vmax.f32 %v2243_v22, 0.0 }
 0x254   :  { %7197 = vst [vmem:[#allocation27_spill] sm:$0xff] %v6742_v12 }
 0x255   :  { %7195 = vst [vmem:[#allocation25_spill] sm:$0xff] %v6736_v55  ;;  %v2279_v48 = vadd.f32 %v6736_v55, %v6734_v20  ;;  %v5145_v50 = vpop.f32.mrb[12].mxu0  ;;  %v2274_v44 = vadd.f32 %v2273_v53, %v2272_v17 }
 0x256   :  { %v2196_v51 = vpop.f32.mrb[13].mxu0  ;;  %v2248_v54 = vadd.f32 %v5145_v50, %v4440_v58  ;;  %v5812_v50 = vld [vmem:[#allocation9 + $0x48] sm:$0xff]  }
 0x257   :  { %v2280_v45 = vadd.f32 %v2279_v48, %v6738_v25  ;;  %v2246_v49 = vadd.f32 %v4440_v58, %v2196_v51  ;;  %v5146_v56 = vpop.f32.mrb[14].mxu0  ;;  %v2275_v10 = vrot.slane %v2274_v44, 2  ;;  %v5811_v48 = vld [vmem:[#allocation9 + $0x40] sm:$0xff]   ;;  %v5813_v51 = vld [vmem:[#allocation9 + $0x50] sm:$0xff]  }
 0x258   :  { %v2199_v60 = vpop.f32.mrb[15].mxu0  ;;  %v2249_v23 = vadd.f32 %v5146_v56, %v4440_v58  ;;  %v6751_v9 = vmax.f32 %v2248_v54, 0.0  ;;  %5167 = vmatprep.subr.bf16.mxu1 %v5811_v48  ;;  %v5817_v56 = vld [vmem:[#allocation9 + $0x70] sm:$0xff]   ;;  %v6761_v54 = vld [vmem:[#allocation9] sm:$0xff]  }
 0x259   :  { %v6745_v33 = vmax.f32 %v2246_v49, 0.0  ;;  %v2281_v37 = vadd.f32 %v2280_v45, %v6742_v12  ;;  %v2247_v8 = vadd.f32 %v4440_v58, %v2199_v60  ;;  %v2276_v35 = vadd.f32 %v2275_v10, %v2274_v44  ;;  %5168 = vmatpush3.bf16.msra.mxu1 %v5811_v48  ;;  %v5814_v44 = vld [vmem:[#allocation9 + $0x58] sm:$0xff]   ;;  %v5815_v45 = vld [vmem:[#allocation9 + $0x60] sm:$0xff]   ;;  %v5816_v49 = vld [vmem:[#allocation9 + $0x68] sm:$0xff]  }
 0x25a   :  { %7200 = vst [vmem:[#allocation30_spill] sm:$0xff] %v6751_v9  ;;  %v6754_v63 = vmax.f32 %v2249_v23, 0.0  ;;  %5169 = vmatprep.subr.bf16.mxu1 %v5812_v50  ;;  %v5818_v60 = vld [vmem:[#allocation9 + $0x78] sm:$0xff]   ;;  %v2433_v23 = vshrl.u32 %v180_v1, 7 }
 0x25b   :  { %7198 = vst [vmem:[#allocation28_spill] sm:$0xff] %v6745_v33  ;;  %v2282_v5 = vadd.f32 %v2281_v37, %v6745_v33  ;;  %v6749_v3 = vmax.f32 %v2247_v8, 0.0  ;;  %v2277_v46 = vrot.slane %v2276_v35, 1  ;;  %v6040_v8 = vmov 1966171168  }
 0x25c   :  { %7201 = vst [vmem:[#allocation31_spill] sm:$0xff] %v6754_v63  ;;  %v2430_v10 = vunpack.c.l.s4 %v6040_v8 }
 0x25d   :  { %7199 = vst [vmem:[#allocation29_spill] sm:$0xff] %v6749_v3  ;;  %v2283_v36 = vadd.f32 %v2282_v5, %v6749_v3  ;;  %v2278_v21 = vadd.f32 %v2277_v46, %v2276_v35  ;;  %5170 = vmatpush3.bf16.msra.mxu1 %v5812_v50  ;;  %v2453_v46 = vsub.s32 0, %v2433_v23 }
 0x25e   :  { %5171 = vmatprep.subr.bf16.mxu1 %v5813_v51  ;;  %v2431_v5 = vunpack.c.0.s8 %v2430_v10  ;;  %v5822_v10 = vld [vmem:[#allocation9 + $0x18] sm:$0xff]  }
 0x25f   :  { %v2284_v59 = vadd.f32 %v2283_v36, %v6751_v9  ;;  %v2292_v58 = vmul.f32 0.015625, %v2278_v21 }
 0x260   :  { %v2434_v35 = vsub.s32 %v2431_v5, %v2433_v23 }
 0x261   :  { %v2285_v2 = vadd.f32 %v2284_v59, %v6754_v63  ;;  %v2294_v15 = vpack.c.bf16 %v2292_v58, %v2292_v58  ;;  %5172 = vmatpush3.bf16.msra.mxu1 %v5813_v51  ;;  %v5830_v51 = vld [vmem:[#allocation9 + $0x98] sm:$0xff]  }
 0x262   :  { %5173 = vmatprep.subr.bf16.mxu1 %v5814_v44 }
 0x263   :  { %v2286_v47 = vrot.slane %v2285_v2, 4  ;;  %v2321_v32 = vunpack.c.l.b16 %v2294_v15 }
 0x265   :  { %v2287_v13 = vadd.f32 %v2286_v47, %v2285_v2  ;;  %5174 = vmatpush3.bf16.msra.mxu1 %v5814_v44 }
 0x266   :  { %5175 = vmatprep.subr.bf16.mxu1 %v5815_v45 }
 0x267   :  { %v2288_v57 = vrot.slane %v2287_v13, 2 }
 0x269   :  { %v2289_v61 = vadd.f32 %v2288_v57, %v2287_v13  ;;  %5176 = vmatpush3.bf16.msra.mxu1 %v5815_v45 }
 0x26a   :  { %5177 = vmatprep.subr.bf16.mxu1 %v5816_v49 }
 0x26b   :  { %v2290_v0 = vrot.slane %v2289_v61, 1 }
 0x26d   :  { %v2291_v41 = vadd.f32 %v2290_v0, %v2289_v61  ;;  %5178 = vmatpush3.bf16.msra.mxu1 %v5816_v49  ;;  %v2501_v49 = vld [vmem:[#allocation2 + $0xd1] sm:$0xff] }
 0x26e   :  { %5179 = vmatprep.subr.bf16.mxu1 %v5817_v56 }
 0x26f   :  { %v2293_v16 = vmul.f32 0.015625, %v2291_v41 }
 0x271   :  { %v2295_v28 = vpack.c.bf16 %v2293_v16, %v2293_v16  ;;  %5180 = vmatpush3.bf16.msra.mxu1 %v5817_v56 }
 0x272   :  { %5181 = vmatprep.subr.bf16.mxu1 %v5818_v60 }
 0x273   :  { %v2322_v38 = vunpack.c.l.b16 %v2295_v28 }
 0x275   :  { %v2324_v39 = vsel %vm2323_vm3, %v2322_v38, %v2321_v32  ;;  %5182 = vmatpush3.bf16.msra.mxu1 %v5818_v60  ;;  %v2533_v38 = vld [vmem:[#allocation2 + $0x12] sm:$0xff] }
 0x276   :  { %v2325_v30 = vpack.c.b16 %v2324_v39, %v2324_v39  ;;  %5199 = vmatprep.subr.bf16.mxu1 %v6761_v54  ;;  %v5821_v60 = vld [vmem:[#allocation9 + $0x10] sm:$0xff]  }
 0x278   :  { %5164 = vmatmul.mubr.bf16.vlgmr.msra.gmra.mrb[16].mxu0 %v2325_v30 }
 0x34b   :  { %v2409_v42 = vpop.f32.mrb[16].mxu0 }
 0x34c   :  { %v2410_v24 = vadd.f32 %v4441_v34, %v2409_v42  ;;  %v5165_v40 = vpop.f32.mrb[17].mxu0 }
 0x34d   :  { %v2412_v43 = vpop.f32.mrb[18].mxu0 }
 0x34e   :  { %v5166_v62 = vpop.f32.mrb[19].mxu0  ;;  %v2416_v19 = vsel %vm2415_vm4, %v2410_v24, -inf }
 0x34f   :  { %2417 = vmax.xlane.f32.xlu0 %v2416_v19 }
 0x3dc   :  { %v2418_v17 = vpop.xlane.xlu0 %2417 }
 0x3dd   :  { %v2419_v18 = vsub.f32 %v2410_v24, %v2418_v17 }
 0x3df   :  { %v2420_v22 = vmul.f32 1.442695, %v2419_v18 }
 0x3e1   :  { %5883 = vpow2.f32 %v2420_v22  ;;  %v5820_v22 = vld [vmem:[#allocation9 + $0x8] sm:$0xff]  }
 0x3eb   :  { %v5884_v53 = vpop.eup %5883 }
 0x3ec   :  { %v2422_v26 = vsel %vm2415_vm4, %v5884_v53, 0.0 }
 0x3ed   :  { %2423 = vadd.xlane.f32.xlu0 %v2422_v26 }
 0x47a   :  { %v2424_v37 = vpop.xlane.xlu0 %2423 }
 0x47b   :  { %5885 = vrcp.f32 %v2424_v37  ;;  %v2541_v37 = vld [vmem:[#allocation2 + $0xd2] sm:$0xff] }
 0x485   :  { %v5886_v36 = vpop.eup %5885 }
 0x486   :  { %v2426_v59 = vmul.f32 %v5886_v36, %v5884_v53 }
 0x488   :  { %v2427_v2 = vmul.f32 128.0, %v2426_v59  ;;  %v5823_v59 = vld [vmem:[#allocation9 + $0x20] sm:$0xff]  }
 0x48a   :  { %v2435_v47 = vrot.slane %v2427_v2, %v2434_v35 }
 0x48c   :  { %v2436_v13 = vcombine.high %v2435_v47, %v2435_v47  ;;  %v2443_v21 = vrot.slane %v2435_v47, %v2434_v35 }
 0x48e   :  { %v2450_v57 = vrot.slane %v2436_v13, %v2434_v35  ;;  %v2454_v61 = vrot.slane %v2443_v21, %v2453_v46 }
 0x490   :  { %v2458_v58 = vrot.slane %v2450_v57, %v2453_v46  ;;  %v6766_v0 = vmul.f32 %v2454_v61, %v6710_v6  ;;  %v6769_v41 = vmul.f32 %v2454_v61, %v6712_v11  ;;  %v6772_v15 = vmul.f32 %v2454_v61, %v6714_v14 }
 0x491   :  { %v6775_v1 = vmul.f32 %v2454_v61, %v6718_v29  ;;  %v6778_v16 = vmul.f32 %v2454_v61, %v6721_v31  ;;  %v6781_v28 = vmul.f32 %v2454_v61, %v6725_v7  ;;  %v6784_v32 = vmul.f32 %v2454_v61, %v6727_v52 }
 0x492   :  { %v6787_v39 = vmul.f32 %v2454_v61, %v6730_v27  ;;  %v6790_v30 = vmul.f32 %v2458_v58, %v6734_v20  ;;  %v6793_v34 = vmul.f32 %v2458_v58, %v6736_v55  ;;  %v6796_v42 = vmul.f32 %v2458_v58, %v6738_v25  ;;  %2477 = vst [vmem:[#allocation2 + $0x22] sm:$0xff] %v6766_v0  ;;  %v5838_v27 = vld [vmem:[#allocation9 + $0xd8] sm:$0xff]  }
 0x493   :  { %2478 = vst [vmem:[#allocation2 + $0x32] sm:$0xff] %v6769_v41  ;;  %2479 = vst [vmem:[#allocation2 + $0x42] sm:$0xff] %v6772_v15  ;;  %v6802_v24 = vmul.f32 %v2458_v58, %v6742_v12  ;;  %v6805_v40 = vmul.f32 %v2458_v58, %v6745_v33  ;;  %v6808_v43 = vmul.f32 %v2458_v58, %v6749_v3  ;;  %v5834_v12 = vld [vmem:[#allocation9 + $0xb8] sm:$0xff]  }
 0x494   :  { %v6811_v62 = vmul.f32 %v2458_v58, %v6751_v9  ;;  %2480 = vst [vmem:[#allocation2 + $0x52] sm:$0xff] %v6775_v1  ;;  %2481 = vst [vmem:[#allocation2 + $0x62] sm:$0xff] %v6778_v16  ;;  %v6818_v19 = vmul.f32 %v2458_v58, %v6754_v63  ;;  %v2549_v17 = vpack.c.bf16 %v6766_v0, %v2533_v38  ;;  %v2493_v58 = vld [vmem:[#allocation2 + $0x11] sm:$0xff] }
 0x495   :  { %2482 = vst [vmem:[#allocation2 + $0x72] sm:$0xff] %v6781_v28  ;;  %2483 = vst [vmem:[#allocation2 + $0x82] sm:$0xff] %v6784_v32  ;;  %v2550_v18 = vpack.c.bf16 %v6772_v15, %v6769_v41  ;;  %v2551_v53 = vpack.c.bf16 %v6778_v16, %v6775_v1  ;;  %v2552_v8 = vpack.c.bf16 %v6784_v32, %v6781_v28  ;;  %v2864_v9 = vld [vmem:[#allocation2 + $0x13] sm:$0xff] }
 0x496   :  { %2484 = vst [vmem:[#allocation2 + $0x92] sm:$0xff] %v6787_v39  ;;  %2485 = vst [vmem:[#allocation2 + $0xe2] sm:$0xff] %v6790_v30  ;;  %5183 = vmatprep.mubr.bf16.mxu1 %v2549_v17  ;;  %v2553_v23 = vpack.c.bf16 %v6790_v30, %v2541_v37  ;;  %v2554_v37 = vpack.c.bf16 %v6796_v42, %v6793_v34 }
 0x497   :  { %2486 = vst [vmem:[#allocation2 + $0xf2] sm:$0xff] %v6793_v34  ;;  %2487 = vst [vmem:[#allocation2 + $0x102] sm:$0xff] %v6796_v42  ;;  %5184 = vmatmul.mubr.bf16.vlgmr.msra.gmra.mrb[0].mxu1 %v2550_v18 }
 0x498   :  { %2488 = vst [vmem:[#allocation2 + $0x112] sm:$0xff] %v6802_v24  ;;  %2489 = vst [vmem:[#allocation2 + $0x122] sm:$0xff] %v6805_v40  ;;  %5187 = vmatprep.mubr.bf16.mxu1 %v2551_v53  ;;  %5200 = vmatpush3.bf16.msra.mxu1 %v6761_v54 }
 0x499   :  { %2490 = vst [vmem:[#allocation2 + $0x132] sm:$0xff] %v6808_v43  ;;  %2491 = vst [vmem:[#allocation2 + $0x142] sm:$0xff] %v6811_v62  ;;  %5201 = vmatprep.subr.bf16.mxu1 %v5820_v22  ;;  %v6853_v5 = vld [vmem:[#allocation2 + $0x23] sm:$0xff] }
 0x49a   :  { %2492 = vst [vmem:[#allocation2 + $0x152] sm:$0xff] %v6818_v19  ;;  %v6856_v36 = vld [vmem:[#allocation2 + $0x33] sm:$0xff]  ;;  %v6858_v35 = vld [vmem:[#allocation2 + $0x43] sm:$0xff]  ;;  %v2880_v20 = vpack.c.bf16 %v6853_v5, %v2864_v9 }
 0x49b   :  { %v6860_v54 = vld [vmem:[#allocation2 + $0x53] sm:$0xff]  ;;  %v6862_v2 = vld [vmem:[#allocation2 + $0x63] sm:$0xff]  ;;  %v6959_v25 = vpack.c.bf16 %v6858_v35, %v6856_v36 }
 0x49c   :  { %5202 = vmatpush3.bf16.msra.mxu1 %v5820_v22  ;;  %v6864_v46 = vld [vmem:[#allocation2 + $0x73] sm:$0xff]  ;;  %v6894_v13 = vld [vmem:[#allocation2 + $0x21] sm:$0xff]  ;;  %v6963_v7 = vpack.c.bf16 %v6862_v2, %v6860_v54 }
 0x49d   :  { %5203 = vmatprep.subr.bf16.mxu1 %v5821_v60  ;;  %v6870_v21 = vld [vmem:[#allocation2 + $0xe3] sm:$0xff]  ;;  %v5825_v22 = vld [vmem:[#allocation9 + $0x30] sm:$0xff]   ;;  %v2509_v53 = vpack.c.bf16 %v6894_v13, %v2493_v58 }
 0x49e   :  { %v6872_v57 = vld [vmem:[#allocation2 + $0xf3] sm:$0xff]  ;;  %v6874_v61 = vld [vmem:[#allocation2 + $0x103] sm:$0xff] }
 0x49f   :  { %5188 = vmatmul.mubr.bf16.gmra.mrb[4].mxu1 %v2552_v8  ;;  %v6878_v38 = vld [vmem:[#allocation2 + $0x113] sm:$0xff]  ;;  %v6880_v17 = vld [vmem:[#allocation2 + $0x123] sm:$0xff]  ;;  %v6977_v52 = vpack.c.bf16 %v6874_v61, %v6872_v57 }
 0x4a0   :  { %5191 = vmatprep.mubr.bf16.mxu1 %v2553_v23  ;;  %5204 = vmatpush3.bf16.msra.mxu1 %v5821_v60  ;;  %v6882_v18 = vld [vmem:[#allocation2 + $0x133] sm:$0xff]  ;;  %v5824_v8 = vld [vmem:[#allocation9 + $0x28] sm:$0xff]   ;;  %v2555_v23 = vpack.c.bf16 %v6805_v40, %v6802_v24  ;;  %v6981_v11 = vpack.c.bf16 %v6880_v17, %v6878_v38 }
 0x4a1   :  { %5205 = vmatprep.subr.bf16.mxu1 %v5822_v10  ;;  %v5826_v60 = vld [vmem:[#allocation9 + $0x38] sm:$0xff]   ;;  %v6905_v56 = vld [vmem:[#allocation2 + $0x61] sm:$0xff] }
 0x4a2   :  { %v6903_v47 = vld [vmem:[#allocation2 + $0x51] sm:$0xff]  ;;  %v5828_v58 = vld [vmem:[#allocation9 + $0x88] sm:$0xff]  }
 0x4a3   :  { %v6921_v45 = vld [vmem:[#allocation2 + $0xe1] sm:$0xff]  ;;  %v6929_v48 = vld [vmem:[#allocation2 + $0xf1] sm:$0xff] }
 0x4a4   :  { %5206 = vmatpush3.bf16.msra.mxu1 %v5822_v10  ;;  %v2556_v10 = vpack.c.bf16 %v6811_v62, %v6808_v43  ;;  %v2513_v50 = vpack.c.bf16 %v6921_v45, %v2501_v49  ;;  %v6931_v26 = vld [vmem:[#allocation2 + $0x101] sm:$0xff]  ;;  %v6933_v3 = vld [vmem:[#allocation2 + $0x111] sm:$0xff] }
 0x4a5   :  { %5207 = vmatprep.subr.bf16.mxu1 %v5823_v59  ;;  %v6939_v63 = vpack.c.bf16 %v6931_v26, %v6929_v48  ;;  %v5832_v49 = vld [vmem:[#allocation9 + $0xa8] sm:$0xff]   ;;  %v6947_v33 = vld [vmem:[#allocation2 + $0x131] sm:$0xff] }
 0x4a6   :  { %v6967_v9 = vld [vmem:[#allocation2 + $0x83] sm:$0xff] }
 0x4a7   :  { %5192 = vmatmul.mubr.bf16.gmra.mrb[8].mxu1 %v2554_v37  ;;  %v5827_v37 = vld [vmem:[#allocation9 + $0x80] sm:$0xff]  }
 0x4a8   :  { %5195 = vmatprep.mubr.bf16.mxu1 %v2555_v23  ;;  %5208 = vmatpush3.bf16.msra.mxu1 %v5823_v59  ;;  %v6899_v23 = vld [vmem:[#allocation2 + $0x31] sm:$0xff]  ;;  %v6901_v59 = vld [vmem:[#allocation2 + $0x41] sm:$0xff] }
 0x4a9   :  { %5209 = vmatprep.subr.bf16.mxu1 %v5824_v8  ;;  %v3082_v29 = vpack.c.bf16 %v6899_v23, %v6894_v13  ;;  %v3083_v6 = vpack.c.bf16 %v6903_v47, %v6901_v59  ;;  %v5845_v13 = vld [vmem:[#allocation9 + $0x110] sm:$0xff]  }
 0x4ac   :  { %5210 = vmatpush3.bf16.msra.mxu1 %v5824_v8  ;;  %v6909_v8 = vpack.c.bf16 %v6901_v59, %v6899_v23  ;;  %v6998_v23 = vld [vmem:[#allocation2 + $0x91] sm:$0xff] }
 0x4ad   :  { %5211 = vmatprep.subr.bf16.mxu1 %v5825_v22 }
 0x4af   :  { %5196 = vmatmul.mubr.bf16.gmra.mrb[12].mxu1 %v2556_v10  ;;  %v6917_v10 = vld [vmem:[#allocation2 + $0x71] sm:$0xff] }
 0x4b0   :  { %5212 = vmatpush3.bf16.msra.mxu1 %v5825_v22  ;;  %5215 = vmatprep.mubr.bf16.mxu1 %v2509_v53  ;;  %v6913_v22 = vpack.c.bf16 %v6905_v56, %v6903_v47  ;;  %v5829_v53 = vld [vmem:[#allocation9 + $0x90] sm:$0xff]   ;;  %v3084_v4 = vpack.c.bf16 %v6917_v10, %v6905_v56  ;;  %v3086_v47 = vpack.c.bf16 %v6929_v48, %v6921_v45  ;;  %v5848_v56 = vld [vmem:[#allocation9 + $0x128] sm:$0xff]  }
 0x4b1   :  { %5213 = vmatprep.subr.bf16.mxu1 %v5826_v60  ;;  %v7008_v48 = vld [vmem:[#allocation2 + $0x151] sm:$0xff] }
 0x4b4   :  { %5214 = vmatpush3.bf16.msra.mxu1 %v5826_v60  ;;  %v6919_v60 = vld [vmem:[#allocation2 + $0x81] sm:$0xff] }
 0x4b5   :  { %5231 = vmatprep.subr.bf16.mxu1 %v5827_v37  ;;  %v6925_v44 = vpack.c.bf16 %v6919_v60, %v6917_v10  ;;  %v5849_v10 = vld [vmem:[#allocation9 + $0x130] sm:$0xff]  }
 0x4b7   :  { %5216 = vmatmul.mubr.bf16.vlgmr.msra.gmra.mrb[0].mxu1 %v6909_v8 }
 0x4b8   :  { %5219 = vmatprep.mubr.bf16.mxu1 %v6913_v22  ;;  %5232 = vmatpush3.bf16.msra.mxu1 %v5827_v37  ;;  %v5831_v37 = vld [vmem:[#allocation9 + $0xa0] sm:$0xff]  }
 0x4b9   :  { %5233 = vmatprep.subr.bf16.mxu1 %v5828_v58 }
 0x4bc   :  { %5234 = vmatpush3.bf16.msra.mxu1 %v5828_v58  ;;  %v6935_v58 = vld [vmem:[#allocation2 + $0x121] sm:$0xff] }
 0x4bd   :  { %5235 = vmatprep.subr.bf16.mxu1 %v5829_v53  ;;  %v3088_v59 = vpack.c.bf16 %v6947_v33, %v6935_v58 }
 0x4bf   :  { %5220 = vmatmul.mubr.bf16.gmra.mrb[4].mxu1 %v6925_v44 }
 0x4c0   :  { %5223 = vmatprep.mubr.bf16.mxu1 %v2513_v50  ;;  %5236 = vmatpush3.bf16.msra.mxu1 %v5829_v53  ;;  %v6943_v50 = vpack.c.bf16 %v6935_v58, %v6933_v3  ;;  %v5833_v53 = vld [vmem:[#allocation9 + $0xb0] sm:$0xff]   ;;  %v7203_v58 = vpack.c.bf16 %v6775_v1, %v6772_v15  ;;  %v5855_v15 = vld [vmem:[#allocation9 + $0x160] sm:$0xff]   ;;  %v5856_v1 = vld [vmem:[#allocation9 + $0x168] sm:$0xff]  }
 0x4c1   :  { %5237 = vmatprep.subr.bf16.mxu1 %v5830_v51 }
 0x4c4   :  { %5238 = vmatpush3.bf16.msra.mxu1 %v5830_v51  ;;  %v6949_v51 = vld [vmem:[#allocation2 + $0x141] sm:$0xff] }
 0x4c5   :  { %5239 = vmatprep.subr.bf16.mxu1 %v5831_v37  ;;  %v6953_v55 = vpack.c.bf16 %v6949_v51, %v6947_v33  ;;  %v3089_v45 = vpack.c.bf16 %v7008_v48, %v6949_v51  ;;  %v5851_v33 = vld [vmem:[#allocation9 + $0x140] sm:$0xff]   ;;  %v7204_v51 = vpack.c.bf16 %v6781_v28, %v6778_v16  ;;  %v7207_v16 = vpack.c.bf16 %v6802_v24, %v6796_v42  ;;  %v5860_v24 = vld [vmem:[#allocation9 + $0x188] sm:$0xff]  }
 0x4c6   :  { %v7208_v28 = vpack.c.bf16 %v6808_v43, %v6805_v40  ;;  %v5859_v42 = vld [vmem:[#allocation9 + $0x180] sm:$0xff]   ;;  %v7211_v40 = vpack.c.bf16 %v6860_v54, %v6858_v35  ;;  %v7212_v43 = vpack.c.bf16 %v6864_v46, %v6862_v2  ;;  %v7213_v35 = vpack.c.bf16 %v6872_v57, %v6870_v21  ;;  %v5864_v2 = vld [vmem:[#allocation9 + $0x1a8] sm:$0xff]   ;;  %v5866_v57 = vld [vmem:[#allocation9 + $0x1b8] sm:$0xff]  }
 0x4c7   :  { %5224 = vmatmul.mubr.bf16.gmra.mrb[8].mxu1 %v6939_v63  ;;  %v5863_v54 = vld [vmem:[#allocation9 + $0x1a0] sm:$0xff]  }
 0x4c8   :  { %5227 = vmatprep.mubr.bf16.mxu1 %v6943_v50  ;;  %5240 = vmatpush3.bf16.msra.mxu1 %v5831_v37  ;;  %v5835_v37 = vld [vmem:[#allocation9 + $0xc0] sm:$0xff]  }
 0x4c9   :  { %5241 = vmatprep.subr.bf16.mxu1 %v5832_v49 }
 0x4cc   :  { %5242 = vmatpush3.bf16.msra.mxu1 %v5832_v49  ;;  %v5836_v49 = vld [vmem:[#allocation9 + $0xc8] sm:$0xff]  }
 0x4cd   :  { %5243 = vmatprep.subr.bf16.mxu1 %v5833_v53 }
 0x4cf   :  { %5228 = vmatmul.mubr.bf16.gmra.mrb[12].mxu1 %v6953_v55 }
 0x4d0   :  { %5244 = vmatpush3.bf16.msra.mxu1 %v5833_v53  ;;  %5247 = vmatprep.mubr.bf16.mxu1 %v2880_v20  ;;  %v5837_v20 = vld [vmem:[#allocation9 + $0xd0] sm:$0xff]   ;;  %v6971_v53 = vpack.c.bf16 %v6967_v9, %v6864_v46  ;;  %v7214_v46 = vpack.c.bf16 %v6878_v38, %v6874_v61  ;;  %v5867_v61 = vld [vmem:[#allocation9 + $0x1c0] sm:$0xff]   ;;  %v5868_v38 = vld [vmem:[#allocation9 + $0x1c8] sm:$0xff]  }
 0x4d1   :  { %5245 = vmatprep.subr.bf16.mxu1 %v5834_v12 }
 0x4d4   :  { %5246 = vmatpush3.bf16.msra.mxu1 %v5834_v12  ;;  %v2872_v12 = vld [vmem:[#allocation2 + $0xd3] sm:$0xff] }
 0x4d5   :  { %5263 = vmatprep.subr.bf16.mxu1 %v5835_v37  ;;  %v2884_v31 = vpack.c.bf16 %v6870_v21, %v2872_v12  ;;  %v5842_v12 = vld [vmem:[#allocation9 + $0xf8] sm:$0xff]  }
 0x4d7   :  { %5248 = vmatmul.mubr.bf16.vlgmr.msra.gmra.mrb[0].mxu1 %v6959_v25 }
 0x4d8   :  { %5251 = vmatprep.mubr.bf16.mxu1 %v6963_v7  ;;  %5264 = vmatpush3.bf16.msra.mxu1 %v5835_v37  ;;  %v5839_v37 = vld [vmem:[#allocation9 + $0xe0] sm:$0xff]  }
 0x4d9   :  { %5265 = vmatprep.subr.bf16.mxu1 %v5836_v49 }
 0x4dc   :  { %5266 = vmatpush3.bf16.msra.mxu1 %v5836_v49  ;;  %v5840_v49 = vld [vmem:[#allocation9 + $0xe8] sm:$0xff]  }
 0x4dd   :  { %5267 = vmatprep.subr.bf16.mxu1 %v5837_v20 }
 0x4df   :  { %5252 = vmatmul.mubr.bf16.gmra.mrb[4].mxu1 %v6971_v53 }
 0x4e0   :  { %5255 = vmatprep.mubr.bf16.mxu1 %v2884_v31  ;;  %5268 = vmatpush3.bf16.msra.mxu1 %v5837_v20  ;;  %v5841_v31 = vld [vmem:[#allocation9 + $0xf0] sm:$0xff]   ;;  %v6985_v20 = vld [vmem:[#allocation2 + $0x143] sm:$0xff] }
 0x4e1   :  { %5269 = vmatprep.subr.bf16.mxu1 %v5838_v27 }
 0x4e4   :  { %5270 = vmatpush3.bf16.msra.mxu1 %v5838_v27  ;;  %v6989_v27 = vpack.c.bf16 %v6985_v20, %v6882_v18 }
 0x4e5   :  { %5271 = vmatprep.subr.bf16.mxu1 %v5839_v37 }
 0x4e7   :  { %5256 = vmatmul.mubr.bf16.gmra.mrb[8].mxu1 %v6977_v52 }
 0x4e8   :  { %5259 = vmatprep.mubr.bf16.mxu1 %v6981_v11  ;;  %5272 = vmatpush3.bf16.msra.mxu1 %v5839_v37  ;;  %v5843_v37 = vld [vmem:[#allocation9 + $0x100] sm:$0xff]  }
 0x4e9   :  { %5273 = vmatprep.subr.bf16.mxu1 %v5840_v49 }
 0x4ec   :  { %5274 = vmatpush3.bf16.msra.mxu1 %v5840_v49  ;;  %v5844_v49 = vld [vmem:[#allocation9 + $0x108] sm:$0xff]  }
 0x4ed   :  { %5275 = vmatprep.subr.bf16.mxu1 %v5841_v31 }
 0x4ef   :  { %5260 = vmatmul.mubr.bf16.gmra.mrb[12].mxu1 %v6989_v27 }
 0x4f0   :  { %5276 = vmatpush3.bf16.msra.mxu1 %v5841_v31  ;;  %5279 = vmatprep.mubr.bf16.mxu1 %v3082_v29  ;;  %v3085_v29 = vpack.c.bf16 %v6998_v23, %v6919_v60  ;;  %v5846_v31 = vld [vmem:[#allocation9 + $0x118] sm:$0xff]  }
 0x4f1   :  { %5277 = vmatprep.subr.bf16.mxu1 %v5842_v12  ;;  %v5850_v60 = vld [vmem:[#allocation9 + $0x138] sm:$0xff]  }
 0x4f4   :  { %5278 = vmatpush3.bf16.msra.mxu1 %v5842_v12  ;;  %v5853_v12 = vld [vmem:[#allocation9 + $0x150] sm:$0xff]  }
 0x4f5   :  { %5295 = vmatprep.subr.bf16.mxu1 %v5843_v37 }
 0x4f7   :  { %5280 = vmatmul.mubr.bf16.vlgmr.msra.gmra.mrb[0].mxu1 %v3083_v6  ;;  %v5847_v6 = vld [vmem:[#allocation9 + $0x120] sm:$0xff]  }
 0x4f8   :  { %5283 = vmatprep.mubr.bf16.mxu1 %v3084_v4  ;;  %5296 = vmatpush3.bf16.msra.mxu1 %v5843_v37  ;;  %v3087_v4 = vpack.c.bf16 %v6933_v3, %v6931_v26  ;;  %v7202_v3 = vpack.c.bf16 %v6769_v41, %v6766_v0  ;;  %v5852_v26 = vld [vmem:[#allocation9 + $0x148] sm:$0xff]   ;;  %v5854_v0 = vld [vmem:[#allocation9 + $0x158] sm:$0xff]   ;;  %v7205_v41 = vpack.c.bf16 %v6787_v39, %v6784_v32  ;;  %v5857_v32 = vld [vmem:[#allocation9 + $0x170] sm:$0xff]  }
 0x4f9   :  { %5297 = vmatprep.subr.bf16.mxu1 %v5844_v49  ;;  %v7206_v37 = vpack.c.bf16 %v6793_v34, %v6790_v30  ;;  %v5858_v39 = vld [vmem:[#allocation9 + $0x178] sm:$0xff]   ;;  %v7209_v30 = vpack.c.bf16 %v6818_v19, %v6811_v62  ;;  %v7210_v34 = vpack.c.bf16 %v6856_v36, %v6853_v5  ;;  %v5861_v62 = vld [vmem:[#allocation9 + $0x190] sm:$0xff]  }
 0x4fa   :  { %v7045_v19 = vld [vmem:[#allocation2 + $0x93] sm:$0xff] }
 0x4fb   :  { %v3489_v5 = vpack.c.bf16 %v7045_v19, %v6967_v9  ;;  %v5862_v36 = vld [vmem:[#allocation9 + $0x198] sm:$0xff]   ;;  %v7215_v9 = vpack.c.bf16 %v6882_v18, %v6880_v17  ;;  %v5869_v17 = vld [vmem:[#allocation9 + $0x1d0] sm:$0xff]   ;;  %v3679_v18 = vld [vmem:[#allocation2 + $0xa1] sm:$0xff] }
 0x4fc   :  { %5298 = vmatpush3.bf16.msra.mxu1 %v5844_v49  ;;  %v5865_v49 = vld [vmem:[#allocation9 + $0x1b0] sm:$0xff]  }
 0x4fd   :  { %5299 = vmatprep.subr.bf16.mxu1 %v5845_v13 }
 0x4ff   :  { %5284 = vmatmul.mubr.bf16.gmra.mrb[4].mxu1 %v3085_v29  ;;  %v5870_v29 = vld [vmem:[#allocation9 + $0x1d8] sm:$0xff]  }
 0x500   :  { %5287 = vmatprep.mubr.bf16.mxu1 %v3086_v47  ;;  %5300 = vmatpush3.bf16.msra.mxu1 %v5845_v13  ;;  %v7058_v13 = vld [vmem:[#allocation2 + $0x153] sm:$0xff]  ;;  %v3875_v47 = vld [vmem:[#allocation2 + $0x42] sm:$0xff] }
 0x501   :  { %5301 = vmatprep.subr.bf16.mxu1 %v5846_v31  ;;  %v3493_v21 = vpack.c.bf16 %v7058_v13, %v6985_v20  ;;  %v3691_v20 = vpack.c.bf16 %v3679_v18, %v6998_v23  ;;  %v3874_v23 = vld [vmem:[#allocation2 + $0x32] sm:$0xff] }
 0x504   :  { %5302 = vmatpush3.bf16.msra.mxu1 %v5846_v31  ;;  %v3687_v31 = vld [vmem:[#allocation2 + $0x161] sm:$0xff] }
 0x505   :  { %5303 = vmatprep.subr.bf16.mxu1 %v5847_v6 }
 0x507   :  { %5288 = vmatmul.mubr.bf16.gmra.mrb[8].mxu1 %v3087_v4  ;;  %v3890_v4 = vpack.c.bf16 %v3875_v47, %v3874_v23 }
 0x508   :  { %5291 = vmatprep.mubr.bf16.mxu1 %v3088_v59  ;;  %5304 = vmatpush3.bf16.msra.mxu1 %v5847_v6  ;;  %v3695_v6 = vpack.c.bf16 %v3687_v31, %v7008_v48  ;;  %v3877_v59 = vld [vmem:[#allocation2 + $0x62] sm:$0xff]  ;;  %v5877_v48 = vld [vmem:[#allocation9 + $0x210] sm:$0xff]  }
 0x509   :  { %5305 = vmatprep.subr.bf16.mxu1 %v5848_v56 }
 0x50c   :  { %5306 = vmatpush3.bf16.msra.mxu1 %v5848_v56  ;;  %v5875_v56 = vld [vmem:[#allocation9 + $0x200] sm:$0xff]  }
 0x50d   :  { %5307 = vmatprep.subr.bf16.mxu1 %v5849_v10 }
 0x50f   :  { %5292 = vmatmul.mubr.bf16.gmra.mrb[12].mxu1 %v3089_v45 }
 0x510   :  { %5308 = vmatpush3.bf16.msra.mxu1 %v5849_v10  ;;  %5311 = vmatprep.mubr.bf16.mxu1 %v7202_v3  ;;  %v3879_v10 = vld [vmem:[#allocation2 + $0x82] sm:$0xff] }
 0x511   :  { %5309 = vmatprep.subr.bf16.mxu1 %v5850_v60 }
 0x514   :  { %5310 = vmatpush3.bf16.msra.mxu1 %v5850_v60  ;;  %v5876_v60 = vld [vmem:[#allocation9 + $0x208] sm:$0xff]  }
 0x515   :  { %5327 = vmatprep.subr.bf16.mxu1 %v5851_v33 }
 0x517   :  { %5312 = vmatmul.mubr.bf16.vlgmr.msra.gmra.mrb[0].mxu1 %v7203_v58  ;;  %v3882_v58 = vld [vmem:[#allocation2 + $0xf2] sm:$0xff] }
 0x518   :  { %5315 = vmatprep.mubr.bf16.mxu1 %v7204_v51  ;;  %5328 = vmatpush3.bf16.msra.mxu1 %v5851_v33  ;;  %v3880_v33 = vld [vmem:[#allocation2 + $0x92] sm:$0xff]  ;;  %v3883_v51 = vld [vmem:[#allocation2 + $0x102] sm:$0xff] }
 0x519   :  { %5329 = vmatprep.subr.bf16.mxu1 %v5852_v26 }
 0x51c   :  { %5330 = vmatpush3.bf16.msra.mxu1 %v5852_v26  ;;  %v3881_v26 = vld [vmem:[#allocation2 + $0xa2] sm:$0xff] }
 0x51d   :  { %5331 = vmatprep.subr.bf16.mxu1 %v5853_v12 }
 0x51f   :  { %5316 = vmatmul.mubr.bf16.gmra.mrb[4].mxu1 %v7205_v41  ;;  %v3894_v41 = vpack.c.bf16 %v3883_v51, %v3882_v58 }
 0x520   :  { %5319 = vmatprep.mubr.bf16.mxu1 %v7206_v37  ;;  %5332 = vmatpush3.bf16.msra.mxu1 %v5853_v12  ;;  %v3893_v12 = vpack.c.bf16 %v3881_v26, %v3880_v33  ;;  %v5879_v37 = vld [vmem:[#allocation9 + $0x220] sm:$0xff]  }
 0x521   :  { %5333 = vmatprep.subr.bf16.mxu1 %v5854_v0 }
 0x524   :  { %5334 = vmatpush3.bf16.msra.mxu1 %v5854_v0  ;;  %v5878_v0 = vld [vmem:[#allocation9 + $0x218] sm:$0xff]  }
 0x525   :  { %5335 = vmatprep.subr.bf16.mxu1 %v5855_v15 }
 0x527   :  { %5320 = vmatmul.mubr.bf16.gmra.mrb[8].mxu1 %v7207_v16  ;;  %v3886_v16 = vld [vmem:[#allocation2 + $0x132] sm:$0xff] }
 0x528   :  { %5323 = vmatprep.mubr.bf16.mxu1 %v7208_v28  ;;  %5336 = vmatpush3.bf16.msra.mxu1 %v5855_v15  ;;  %v3884_v15 = vld [vmem:[#allocation2 + $0x112] sm:$0xff]  ;;  %v3887_v28 = vld [vmem:[#allocation2 + $0x142] sm:$0xff] }
 0x529   :  { %5337 = vmatprep.subr.bf16.mxu1 %v5856_v1 }
 0x52c   :  { %5338 = vmatpush3.bf16.msra.mxu1 %v5856_v1  ;;  %v3885_v1 = vld [vmem:[#allocation2 + $0x122] sm:$0xff] }
 0x52d   :  { %5339 = vmatprep.subr.bf16.mxu1 %v5857_v32 }
 0x52f   :  { %5324 = vmatmul.mubr.bf16.gmra.mrb[12].mxu1 %v7209_v30  ;;  %v3896_v30 = vpack.c.bf16 %v3887_v28, %v3886_v16  ;;  %v7224_v28 = vld [vmem:[#allocation26_spill] sm:$0xff] }
 0x530   :  { %5340 = vmatpush3.bf16.msra.mxu1 %v5857_v32  ;;  %5343 = vmatprep.mubr.bf16.mxu1 %v7210_v34  ;;  %v3895_v32 = vpack.c.bf16 %v3885_v1, %v3884_v15  ;;  %v5881_v34 = vld [vmem:[#allocation9 + $0x230] sm:$0xff]  }
 0x531   :  { %5341 = vmatprep.subr.bf16.mxu1 %v5858_v39 }
 0x534   :  { %5342 = vmatpush3.bf16.msra.mxu1 %v5858_v39  ;;  %v5880_v39 = vld [vmem:[#allocation9 + $0x228] sm:$0xff]  }
 0x535   :  { %5359 = vmatprep.subr.bf16.mxu1 %v5859_v42 }
 0x537   :  { %5344 = vmatmul.mubr.bf16.vlgmr.msra.gmra.mrb[0].mxu1 %v7211_v40 }
 0x538   :  { %5347 = vmatprep.mubr.bf16.mxu1 %v7212_v43  ;;  %5360 = vmatpush3.bf16.msra.mxu1 %v5859_v42  ;;  %v3888_v42 = vld [vmem:[#allocation2 + $0x152] sm:$0xff] }
 0x539   :  { %5361 = vmatprep.subr.bf16.mxu1 %v5860_v24  ;;  %v5882_v43 = vld [vmem:[#allocation9 + $0x238] sm:$0xff]  }
 0x53c   :  { %5362 = vmatpush3.bf16.msra.mxu1 %v5860_v24  ;;  %v3889_v24 = vld [vmem:[#allocation2 + $0x162] sm:$0xff] }
 0x53d   :  { %5363 = vmatprep.subr.bf16.mxu1 %v5861_v62  ;;  %v3897_v40 = vpack.c.bf16 %v3889_v24, %v3888_v42  ;;  %v7226_v24 = vld [vmem:[#allocation27_spill] sm:$0xff] }
 0x53f   :  { %5348 = vmatmul.mubr.bf16.gmra.mrb[4].mxu1 %v3489_v5 }
 0x540   :  { %5351 = vmatprep.mubr.bf16.mxu1 %v7213_v35  ;;  %5364 = vmatpush3.bf16.msra.mxu1 %v5861_v62  ;;  %v4083_v62 = vld [vmem:[#allocation2 + $0xa3] sm:$0xff] }
 0x541   :  { %5365 = vmatprep.subr.bf16.mxu1 %v5862_v36  ;;  %v4095_v5 = vpack.c.bf16 %v4083_v62, %v7045_v19 }
 0x544   :  { %5366 = vmatpush3.bf16.msra.mxu1 %v5862_v36  ;;  %v4091_v36 = vld [vmem:[#allocation2 + $0x163] sm:$0xff] }
 0x545   :  { %5367 = vmatprep.subr.bf16.mxu1 %v5863_v54  ;;  %v4099_v35 = vpack.c.bf16 %v4091_v36, %v7058_v13 }
 0x547   :  { %5352 = vmatmul.mubr.bf16.gmra.mrb[8].mxu1 %v7214_v46 }
 0x548   :  { %5355 = vmatprep.mubr.bf16.mxu1 %v7215_v9  ;;  %5368 = vmatpush3.bf16.msra.mxu1 %v5863_v54 }
 0x549   :  { %5369 = vmatprep.subr.bf16.mxu1 %v5864_v2 }
 0x54c   :  { %5370 = vmatpush3.bf16.msra.mxu1 %v5864_v2 }
 0x54d   :  { %5371 = vmatprep.subr.bf16.mxu1 %v5865_v49 }
 0x54f   :  { %5356 = vmatmul.mubr.bf16.gmra.mrb[12].mxu1 %v3493_v21 }
 0x550   :  { %5372 = vmatpush3.bf16.msra.mxu1 %v5865_v49  ;;  %5375 = vmatprep.mubr.bf16.mxu1 %v6909_v8  ;;  %v5871_v8 = vld [vmem:[#allocation9 + $0x1e0] sm:$0xff]  }
 0x551   :  { %5373 = vmatprep.subr.bf16.mxu1 %v5866_v57 }
 0x554   :  { %5374 = vmatpush3.bf16.msra.mxu1 %v5866_v57  ;;  %v7217_v57 = vld [vmem:[#allocation17_spill] sm:$0xff] }
 0x555   :  { %5391 = vmatprep.subr.bf16.mxu1 %v5867_v61 }
 0x557   :  { %5376 = vmatmul.mubr.bf16.vlgmr.msra.gmra.mrb[0].mxu1 %v6913_v22  ;;  %v5872_v22 = vld [vmem:[#allocation9 + $0x1e8] sm:$0xff]  }
 0x558   :  { %5379 = vmatprep.mubr.bf16.mxu1 %v6925_v44  ;;  %5392 = vmatpush3.bf16.msra.mxu1 %v5867_v61  ;;  %v5873_v44 = vld [vmem:[#allocation9 + $0x1f0] sm:$0xff]  }
 0x559   :  { %5393 = vmatprep.subr.bf16.mxu1 %v5868_v38 }
 0x55c   :  { %5394 = vmatpush3.bf16.msra.mxu1 %v5868_v38 }
 0x55d   :  { %5395 = vmatprep.subr.bf16.mxu1 %v5869_v17 }
 0x55f   :  { %5380 = vmatmul.mubr.bf16.gmra.mrb[4].mxu1 %v3691_v20  ;;  %v7219_v20 = vld [vmem:[#allocation18_spill] sm:$0xff] }
 0x560   :  { %5383 = vmatprep.mubr.bf16.mxu1 %v6939_v63  ;;  %5396 = vmatpush3.bf16.msra.mxu1 %v5869_v17  ;;  %v5874_v63 = vld [vmem:[#allocation9 + $0x1f8] sm:$0xff]  }
 0x561   :  { %5397 = vmatprep.subr.bf16.mxu1 %v5870_v29  ;;  %v7218_v17 = vld [vmem:[#allocation19_spill] sm:$0xff] }
 0x564   :  { %5398 = vmatpush3.bf16.msra.mxu1 %v5870_v29 }
 0x565   :  { %5399 = vmatprep.subr.bf16.mxu1 %v5871_v8 }
 0x567   :  { %5384 = vmatmul.mubr.bf16.gmra.mrb[8].mxu1 %v6943_v50  ;;  %v3876_v50 = vld [vmem:[#allocation2 + $0x52] sm:$0xff] }
 0x568   :  { %5387 = vmatprep.mubr.bf16.mxu1 %v6953_v55  ;;  %5400 = vmatpush3.bf16.msra.mxu1 %v5871_v8  ;;  %v3878_v55 = vld [vmem:[#allocation2 + $0x72] sm:$0xff]  ;;  %v3891_v45 = vpack.c.bf16 %v3877_v59, %v3876_v50 }
 0x569   :  { %5401 = vmatprep.subr.bf16.mxu1 %v5872_v22  ;;  %v3892_v3 = vpack.c.bf16 %v3879_v10, %v3878_v55  ;;  %v7221_v55 = vld [vmem:[#allocation20_spill] sm:$0xff] }
 0x56c   :  { %5402 = vmatpush3.bf16.msra.mxu1 %v5872_v22 }
 0x56d   :  { %5403 = vmatprep.subr.bf16.mxu1 %v5873_v44 }
 0x56f   :  { %5388 = vmatmul.mubr.bf16.gmra.mrb[12].mxu1 %v3695_v6 }
 0x570   :  { %5404 = vmatpush3.bf16.msra.mxu1 %v5873_v44  ;;  %5407 = vmatprep.mubr.bf16.mxu1 %v3890_v4 }
 0x571   :  { %5405 = vmatprep.subr.bf16.mxu1 %v5874_v63 }
 0x574   :  { %5406 = vmatpush3.bf16.msra.mxu1 %v5874_v63 }
 0x575   :  { %5423 = vmatprep.subr.bf16.mxu1 %v5875_v56 }
 0x577   :  { %5408 = vmatmul.mubr.bf16.vlgmr.msra.gmra.mrb[0].mxu1 %v3891_v45 }
 0x578   :  { %5411 = vmatprep.mubr.bf16.mxu1 %v3892_v3  ;;  %5424 = vmatpush3.bf16.msra.mxu1 %v5875_v56  ;;  %v7220_v56 = vld [vmem:[#allocation22_spill] sm:$0xff] }
 0x579   :  { %5425 = vmatprep.subr.bf16.mxu1 %v5876_v60 }
 0x57c   :  { %5426 = vmatpush3.bf16.msra.mxu1 %v5876_v60  ;;  %v7222_v60 = vld [vmem:[#allocation23_spill] sm:$0xff] }
 0x57d   :  { %5427 = vmatprep.subr.bf16.mxu1 %v5877_v48 }
 0x57f   :  { %5412 = vmatmul.mubr.bf16.gmra.mrb[4].mxu1 %v3893_v12 }
 0x580   :  { %5415 = vmatprep.mubr.bf16.mxu1 %v3894_v41  ;;  %5428 = vmatpush3.bf16.msra.mxu1 %v5877_v48  ;;  %v7223_v48 = vld [vmem:[#allocation21_spill] sm:$0xff] }
 0x581   :  { %5429 = vmatprep.subr.bf16.mxu1 %v5878_v0 }
 0x584   :  { %5430 = vmatpush3.bf16.msra.mxu1 %v5878_v0 }
 0x585   :  { %5431 = vmatprep.subr.bf16.mxu1 %v5879_v37 }
 0x587   :  { %5416 = vmatmul.mubr.bf16.gmra.mrb[8].mxu1 %v3895_v32 }
 0x588   :  { %5419 = vmatprep.mubr.bf16.mxu1 %v3896_v30  ;;  %5432 = vmatpush3.bf16.msra.mxu1 %v5879_v37  ;;  %v7225_v30 = vld [vmem:[#allocation24_spill] sm:$0xff] }
 0x589   :  { %5433 = vmatprep.subr.bf16.mxu1 %v5880_v39 }
 0x58c   :  { %5434 = vmatpush3.bf16.msra.mxu1 %v5880_v39 }
 0x58d   :  { %5435 = vmatprep.subr.bf16.mxu1 %v5881_v34 }
 0x58f   :  { %5420 = vmatmul.mubr.bf16.gmra.mrb[12].mxu1 %v3897_v40 }
 0x590   :  { %5436 = vmatpush3.bf16.msra.mxu1 %v5881_v34  ;;  %5439 = vmatprep.mubr.bf16.mxu1 %v6959_v25 }
 0x591   :  { %5437 = vmatprep.subr.bf16.mxu1 %v5882_v43 }
 0x594   :  { %5438 = vmatpush3.bf16.msra.mxu1 %v5882_v43  ;;  %v7227_v43 = vld [vmem:[#allocation25_spill] sm:$0xff] }
 0x597   :  { %5440 = vmatmul.mubr.bf16.vlgmr.msra.gmra.mrb[0].mxu1 %v6963_v7  ;;  %v7081_v7 = vld [vmem:[%s7165_s6] ss:$0 sm:$0xff]  ;;  %s6041_s6 = smov [#allocation11]  }
 0x598   :  { %5443 = vmatprep.mubr.bf16.mxu1 %v6971_v53  ;;  %s4354_s28 = sshll.u32 %s6041_s6, 4  ;;  %s4355_s28 = int_to_ptr.vmem [resolvable:$true] %s4354_s28 }
 0x599   :  { %s6002_s29 = scalar_lea.vmem %s4355_s28, 2048  ;;  %p6007_p5 = scmp.lt.s32.totalorder %s4355_s28, %s4355_s28 }
 0x59a   :  { %p6003_p4 = scmp.ne.s32.totalorder %s4355_s28, %s6002_s29  ;;  %p6008_p6 = scmp.lt.s32.totalorder %s6002_s29, %s6002_s29 }
 0x59c   :  { %p6009_p7 = por %p6008_p6, %p6007_p5 }
 0x59e   :  { %p6010_p8 = pnand %p6009_p7, %p6003_p4 }
 0x59f   :  { %5444 = vmatmul.mubr.bf16.gmra.mrb[4].mxu1 %v4095_v5 }
 0x5a0   :  { %5447 = vmatprep.mubr.bf16.mxu1 %v6977_v52 }
 0x5a7   :  { %5448 = vmatmul.mubr.bf16.gmra.mrb[8].mxu1 %v6981_v11 }
 0x5a8   :  { %5451 = vmatprep.mubr.bf16.mxu1 %v6989_v27 }
 0x5af   :  { %5452 = vmatmul.mubr.bf16.gmra.mrb[12].mxu1 %v4099_v35 }
 0x66a   :  { %v5441_v25 = vpop.f32.mrb[0].mxu1 }
 0x66b   :  { %v4287_v53 = vadd.f32 %v5441_v25, %v7081_v7  ;;  %v4199_v19 = vpop.f32.mrb[1].mxu1 }
 0x66c   :  { %v4285_v54 = vadd.f32 %v7081_v7, %v4199_v19  ;;  %v5442_v52 = vpop.f32.mrb[2].mxu1 }
 0x66d   :  { %v4303_v2 = vmax.f32 %v4287_v53, 0.0  ;;  %v4288_v11 = vadd.f32 %v5442_v52, %v7081_v7  ;;  %v4202_v27 = vpop.f32.mrb[3].mxu1 }
 0x66e   :  { %v4301_v46 = vmax.f32 %v4285_v54, 0.0  ;;  %v4286_v9 = vadd.f32 %v7081_v7, %v4202_v27  ;;  %v7228_v27 = vld [vmem:[#allocation30_spill] sm:$0xff] }
 0x66f   :  { %v4319_v13 = vsel %vm182_vm0, %v4303_v2, %v6714_v14  ;;  %v4304_v21 = vmax.f32 %v4288_v11, 0.0 }
 0x670   :  { %4335 = vst [vmem:[#allocation11 + $0x10] sm:$0xff] %v4319_v13  ;;  %v4317_v61 = vsel %vm182_vm0, %v4301_v46, %v7217_v57  ;;  %v4302_v38 = vmax.f32 %v4286_v9, 0.0  ;;  %v7229_v13 = vld [vmem:[#allocation28_spill] sm:$0xff] }
 0x671   :  { %4333 = vst [vmem:[#allocation11] sm:$0xff] %v4317_v61  ;;  %v4320_v18 = vsel %vm182_vm0, %v4304_v21, %v7218_v17  ;;  %v7230_v61 = vld [vmem:[#allocation31_spill] sm:$0xff] }
 0x672   :  { %4336 = vst [vmem:[#allocation11 + $0x18] sm:$0xff] %v4320_v18  ;;  %v4318_v29 = vsel %vm182_vm0, %v4302_v38, %v7219_v20  ;;  %v5445_v8 = vpop.f32.mrb[4].mxu1 }
 0x673   :  { %4334 = vst [vmem:[#allocation11 + $0x8] sm:$0xff] %v4318_v29  ;;  %v4291_v14 = vadd.f32 %v5445_v8, %v7081_v7  ;;  %v4215_v22 = vpop.f32.mrb[5].mxu1 }
 0x674   :  { %v4289_v44 = vadd.f32 %v7081_v7, %v4215_v22  ;;  %v5446_v31 = vpop.f32.mrb[6].mxu1 }
 0x675   :  { %v4307_v23 = vmax.f32 %v4291_v14, 0.0  ;;  %v4292_v47 = vadd.f32 %v5446_v31, %v7081_v7  ;;  %v4218_v6 = vpop.f32.mrb[7].mxu1 }
 0x676   :  { %v4305_v63 = vmax.f32 %v4289_v44, 0.0  ;;  %v4290_v4 = vadd.f32 %v7081_v7, %v4218_v6 }
 0x677   :  { %v4323_v50 = vsel %vm182_vm0, %v4307_v23, %v7220_v56  ;;  %v4308_v59 = vmax.f32 %v4292_v47, 0.0 }
 0x678   :  { %4339 = vst [vmem:[#allocation11 + $0x30] sm:$0xff] %v4323_v50  ;;  %v4321_v10 = vsel %vm182_vm0, %v4305_v63, %v7221_v55  ;;  %v4306_v45 = vmax.f32 %v4290_v4, 0.0 }
 0x679   :  { %4337 = vst [vmem:[#allocation11 + $0x20] sm:$0xff] %v4321_v10  ;;  %v4324_v3 = vsel %vm182_vm0, %v4308_v59, %v7222_v60 }
 0x67a   :  { %4340 = vst [vmem:[#allocation11 + $0x38] sm:$0xff] %v4324_v3  ;;  %v4322_v33 = vsel %vm182_vm0, %v4306_v45, %v7223_v48  ;;  %v5449_v26 = vpop.f32.mrb[8].mxu1 }
 0x67b   :  { %4338 = vst [vmem:[#allocation11 + $0x28] sm:$0xff] %v4322_v33  ;;  %v4295_v58 = vadd.f32 %v5449_v26, %v7081_v7  ;;  %v4231_v51 = vpop.f32.mrb[9].mxu1 }
 0x67c   :  { %v4293_v12 = vadd.f32 %v7081_v7, %v4231_v51  ;;  %v5450_v0 = vpop.f32.mrb[10].mxu1 }
 0x67d   :  { %v4311_v41 = vmax.f32 %v4295_v58, 0.0  ;;  %v4296_v37 = vadd.f32 %v5450_v0, %v7081_v7  ;;  %v4234_v15 = vpop.f32.mrb[11].mxu1 }
 0x67e   :  { %v4309_v1 = vmax.f32 %v4293_v12, 0.0  ;;  %v4294_v16 = vadd.f32 %v7081_v7, %v4234_v15 }
 0x67f   :  { %v4327_v32 = vsel %vm182_vm0, %v4311_v41, %v7224_v28  ;;  %v4312_v39 = vmax.f32 %v4296_v37, 0.0 }
 0x680   :  { %4343 = vst [vmem:[#allocation11 + $0x50] sm:$0xff] %v4327_v32  ;;  %v4325_v34 = vsel %vm182_vm0, %v4309_v1, %v7225_v30  ;;  %v4310_v42 = vmax.f32 %v4294_v16, 0.0 }
 0x681   :  { %4341 = vst [vmem:[#allocation11 + $0x40] sm:$0xff] %v4325_v34  ;;  %v4328_v40 = vsel %vm182_vm0, %v4312_v39, %v7226_v24 }
 0x682   :  { %4344 = vst [vmem:[#allocation11 + $0x58] sm:$0xff] %v4328_v40  ;;  %v4326_v62 = vsel %vm182_vm0, %v4310_v42, %v7227_v43  ;;  %v5453_v5 = vpop.f32.mrb[12].mxu1 }
 0x683   :  { %4342 = vst [vmem:[#allocation11 + $0x48] sm:$0xff] %v4326_v62  ;;  %v4299_v36 = vadd.f32 %v5453_v5, %v7081_v7  ;;  %v4247_v35 = vpop.f32.mrb[13].mxu1 }
 0x684   :  { %v4297_v25 = vadd.f32 %v7081_v7, %v4247_v35  ;;  %v5454_v53 = vpop.f32.mrb[14].mxu1 }
 0x685   :  { %v4315_v19 = vmax.f32 %v4299_v36, 0.0  ;;  %v4300_v54 = vadd.f32 %v5454_v53, %v7081_v7  ;;  %v4250_v52 = vpop.f32.mrb[15].mxu1 }
 0x686   :  { %v4313_v2 = vmax.f32 %v4297_v25, 0.0  ;;  %v4298_v11 = vadd.f32 %v7081_v7, %v4250_v52  ;;  %v7231_v7 = vld [vmem:[#allocation29_spill] sm:$0xff] }
 0x687   :  { %v4331_v46 = vsel %vm182_vm0, %v4315_v19, %v7228_v27  ;;  %v4316_v9 = vmax.f32 %v4300_v54, 0.0 }
 0x688   :  { %4347 = vst [vmem:[#allocation11 + $0x70] sm:$0xff] %v4331_v46  ;;  %v4329_v21 = vsel %vm182_vm0, %v4313_v2, %v7229_v13  ;;  %v4314_v57 = vmax.f32 %v4298_v11, 0.0 }
 0x689   :  { %4345 = vst [vmem:[#allocation11 + $0x60] sm:$0xff] %v4329_v21  ;;  %v4332_v38 = vsel %vm182_vm0, %v4316_v9, %v7230_v61 }
 0x68a   :  { %4348 = vst [vmem:[#allocation11 + $0x78] sm:$0xff] %v4332_v38  ;;  %v4330_v17 = vsel %vm182_vm0, %v4314_v57, %v7231_v7 }
 0x68b   :  { %4346 = vst [vmem:[#allocation11 + $0x68] sm:$0xff] %v4330_v17 }
 0x68c   :  { %6013 = shalt.err (!%p6010_p8)
}
 0x68d   :  { %s6014_s9 = scalar_lea.hbm %s7166_s7, 2048 }
 0x68e   :  { %p6015_p9 = scmp.ne.s32.totalorder %s7166_s7, %s6014_s9  ;;  %p6018_p10 = scmp.lt.u32.totalorder %s6014_s9, %s7166_s7 }
 0x690   :  { %p6020_p11 = pnand %p6018_p10, %p6015_p9 }
 0x692   :  { %6023 = shalt.err (!%p6020_p11)
}
 0x693   :  { %s6042_s16 = smov 128   ;;  %s6043_s0 = smov 8  }
 0x694   :  { %4360 = dma.vmem_to_hbm [thread:$0]  %s4355_s28, 2048, %s7166_s7, [#allocation5], %s6042_s16, %s6042_s16, %s6043_s0  }
 0x695   :  { %6030 = dma.done.wait [#allocation5], 2048  }
 0x696   :  { %6031 = vsyncadd [#allocation5], 4294965248 }
 0x697   :  { %4364 = vsyncpa [#allocation4], 1 }
 0x698   :  { %4365 = vsyncpa [#allocation7], 1 }
 0x699   :  { %4366 = vsyncpa [#allocation10], 1 }
 0x69a   :  { %4367 = vsyncpa [#allocation5], 1 }

</bundles_post_ra>
